<compile_context>
chip_gen: v7x
topology: tpu7x:2x2x1
jax: 0.10.0
libtpu: 0.0.40
codegen_flags: <defaults>
</compile_context>

<pallas_src>
import functools

import jax
import jax.numpy as jnp
import numpy as np
from jax import lax
from jax.experimental import pallas as pl
from jax.experimental.pallas import tpu as pltpu


def _round_up(x, m):
    return (x + m - 1) // m * m


# ----------------------------------------------------------------------- glue
def spectral_normalize(w, u, n_iter=1, eps=1e-12):
    """PyTorch-style spectral norm: one power iteration on weight.view(out, -1)."""
    wmat = w.reshape(w.shape[0], -1)
    v = None
    for _ in range(n_iter):
        v = wmat.T @ u
        v = v / (jnp.linalg.norm(v) + eps)
        u = wmat @ v
        u = u / (jnp.linalg.norm(u) + eps)
    sigma = jnp.dot(u, wmat @ v)
    return w / sigma


def avg_pool_nchw(x, k):
    n, c, h, w = x.shape
    return x.reshape(n, c, h // k, k, w // k, k).mean(axis=(3, 5))


# --------------------------------------------------------------------- kernel
def _resblock_kernel(xpad_ref, wa_ref, b1_ref, wb_ref, b2_ref, *rest,
                     H, W, He, We, has_shortcut):
    # xpad_ref: (He+2, We+2, Cin_p)  bf16, halo(2)-padded, lane-padded channels
    # wa_ref:   (9*Cin_p,  Cout_p)   bf16 im2col weight for conv1
    # wb_ref:   (9*Cout_p, Cout_p)   bf16 im2col weight for conv2
    # b*_ref:   (1, Cout_p) f32
    # [ws_ref (Cin_p, Cout_p) bf16, bs_ref (1, Cout_p) f32]  only if has_shortcut
    # o_ref:    (H*W, Cout_p) f32
    # h1_scr:   (He, We, Cout_p) f32  -- zero-masked padded conv1 output
    if has_shortcut:
        ws_ref, bs_ref, o_ref, h1_scr = rest
    else:
        o_ref, h1_scr = rest

    cin_p = xpad_ref.shape[-1]
    cout_p = wa_ref.shape[-1]
    cdt = wa_ref.dtype                                    # MXU operand dtype (bf16)

    # ---- conv1 on the extended He x We domain: ONE im2col matmul -------------
    taps1 = [xpad_ref[pl.ds(dy, He), pl.ds(dx, We), :].reshape(He * We, cin_p)
             for dy in range(3) for dx in range(3)]
    t1 = jnp.concatenate(taps1, axis=-1)                  # (He*We, 9*Cin_p) bf16
    h1 = jnp.dot(t1, wa_ref[...], preferred_element_type=jnp.float32)
    h1 = jnp.maximum(h1 + b1_ref[...], 0.0).reshape(He, We, cout_p)

    # Zero everything outside rows 1..H / cols 1..W.  That ring is exactly the
    # zero padding conv2 needs -> no separate pad / per-step scratch zeroing.
    ri = lax.broadcasted_iota(jnp.int32, (He, We, cout_p), 0)
    ci = lax.broadcasted_iota(jnp.int32, (He, We, cout_p), 1)
    inside = (ri >= 1) & (ri <= H) & (ci >= 1) & (ci <= W)
    h1_scr[...] = jnp.where(inside, h1, 0.0)              # single full aligned store

    # ---- conv2 on the H x W domain: ONE im2col matmul -------------------------
    taps2 = [h1_scr[pl.ds(dy, H), pl.ds(dx, W), :].reshape(H * W, cout_p)
             for dy in range(3) for dx in range(3)]
    t2 = jnp.concatenate(taps2, axis=-1).astype(cdt)      # (H*W, 9*Cout_p) bf16
    h2 = jnp.dot(t2, wb_ref[...], preferred_element_type=jnp.float32)
    h2 = jnp.maximum(h2 + b2_ref[...], 0.0)               # (H*W, Cout_p) f32

    # ---- shortcut -------------------------------------------------------------
    xc = xpad_ref[pl.ds(2, H), pl.ds(2, W), :].astype(jnp.float32)
    xc = xc.reshape(H * W, cin_p)
    if has_shortcut:
        sc = jnp.dot(xc.astype(cdt), ws_ref[...],
                     preferred_element_type=jnp.float32) + bs_ref[...]
    else:
        sc = xc                                           # Cin_p == Cout_p identity

    o_ref[...] = (h2 + sc).astype(o_ref.dtype)


# -------------------------------------------------------------------- wrapper
def discriminator_res_block(x_nchw, params, downsampling,
                            *, compute_dtype=jnp.bfloat16):
    x_nchw = x_nchw.astype(jnp.float32)
    if downsampling > 1:
        x_nchw = avg_pool_nchw(x_nchw, downsampling)
    n, cin, h, w = x_nchw.shape

    cout = params["w1"].shape[0]
    has_shortcut = (cin != cout) or (downsampling > 1)

    cin_p = _round_up(cin, 128)                           # lane-dense channels
    cout_p = _round_up(cout, 128)

    # Extended conv1 output domain, rounded so the in-kernel (He,We,C)->(He*We,C)
    # flattening is sublane-tile aligned (16 rows/tile for bf16, 8 for f32).
    sub = 8 * (4 // jnp.dtype(compute_dtype).itemsize)
    he = _round_up(h + 2, 8)
    we = _round_up(w + 2, sub)

    # ---- parameter preprocessing (plain JAX): spectral norm + im2col packing
    w1 = spectral_normalize(params["w1"], params["u1"])   # (cout, cin, 3, 3)
    w2 = spectral_normalize(params["w2"], params["u2"])   # (cout, cout, 3, 3)

    def pack3x3(w_oihw, ci, ci_p):
        w_hwio = jnp.transpose(w_oihw, (2, 3, 1, 0))      # (3, 3, ci, cout)
        w_hwio = jnp.pad(w_hwio, ((0, 0), (0, 0),
                                  (0, ci_p - ci), (0, cout_p - cout)))
        return w_hwio.reshape(9 * ci_p, cout_p).astype(compute_dtype)

    def pack_bias(b):
        return jnp.pad(b, (0, cout_p - cout)).reshape(1, cout_p).astype(jnp.float32)

    wa, b1 = pack3x3(w1, cin, cin_p), pack_bias(params["b1"])
    wb, b2 = pack3x3(w2, cout, cout_p), pack_bias(params["b2"])

    # ---- lane-dense, halo(2)-padded NHWC input, bf16 -------------------------
    x = jnp.transpose(x_nchw, (0, 2, 3, 1))               # NHWC
    xpad = jnp.pad(x, ((0, 0), (2, he - h), (2, we - w), (0, cin_p - cin)))
    xpad = xpad.astype(compute_dtype)                     # (n, he+2, we+2, cin_p)

    in_specs = [
        pl.BlockSpec((None, he + 2, we + 2, cin_p), lambda b: (b, 0, 0, 0)),
        pl.BlockSpec((9 * cin_p, cout_p), lambda b: (0, 0)),
        pl.BlockSpec((1, cout_p), lambda b: (0, 0)),
        pl.BlockSpec((9 * cout_p, cout_p), lambda b: (0, 0)),
        pl.BlockSpec((1, cout_p), lambda b: (0, 0)),
    ]
    args = [xpad, wa, b1, wb, b2]
    if has_shortcut:
        ws = spectral_normalize(params["ws"], params["us"])       # (cout, cin, 1, 1)
        ws_mat = jnp.pad(ws[:, :, 0, 0].T,
                         ((0, cin_p - cin), (0, cout_p - cout))).astype(compute_dtype)
        in_specs += [pl.BlockSpec((cin_p, cout_p), lambda b: (0, 0)),
                     pl.BlockSpec((1, cout_p), lambda b: (0, 0))]
        args += [ws_mat, pack_bias(params["bs"])]

    kernel = functools.partial(_resblock_kernel, H=h, W=w, He=he, We=we,
                               has_shortcut=has_shortcut)

    out = pl.pallas_call(
        kernel,
        out_shape=jax.ShapeDtypeStruct((n, h * w, cout_p), jnp.float32),
        grid=(n,),
        in_specs=in_specs,
        out_specs=pl.BlockSpec((None, h * w, cout_p), lambda b: (b, 0, 0)),
        scratch_shapes=[pltpu.VMEM((he, we, cout_p), jnp.float32)],
        compiler_params=pltpu.CompilerParams(
            dimension_semantics=("parallel",)),
    )(*args)

    out = out.reshape(n, h, w, cout_p)[..., :cout]        # drop channel padding
    return jnp.transpose(out, (0, 3, 1, 2))               # NHWC -> NCHW


# --------------------------------------------------------- reference (plain JAX)
def reference(x_nchw, params, downsampling):
    if downsampling > 1:
        x_nchw = avg_pool_nchw(x_nchw, downsampling)
    cin = x_nchw.shape[1]
    cout = params["w1"].shape[0]
    has_shortcut = (cin != cout) or (downsampling > 1)

    def conv(x, w, b, pad):
        y = lax.conv_general_dilated(
            x, w, (1, 1), [(pad, pad), (pad, pad)],
            dimension_numbers=("NCHW", "OIHW", "NCHW"))
        return y + b[None, :, None, None]

    w1 = spectral_normalize(params["w1"], params["u1"])
    w2 = spectral_normalize(params["w2"], params["u2"])
    sc = x_nchw
    if has_shortcut:
        ws = spectral_normalize(params["ws"], params["us"])
        sc = conv(x_nchw, ws, params["bs"], 0)
    hh = jax.nn.relu(conv(x_nchw, w1, params["b1"], 1))
    hh = jax.nn.relu(conv(hh, w2, params["b2"], 1))
    return hh + sc


# ------------------------------------------------------------------------ main
def _xavier_uniform(key, shape):  # OIHW
    fan_out = shape[0] * shape[2] * shape[3]
    fan_in = shape[1] * shape[2] * shape[3]
    bound = (6.0 / (fan_in + fan_out)) ** 0.5
    return jax.random.uniform(key, shape, jnp.float32, -bound, bound)


def _bias_init(key, fan_in, c_out):
    bound = 1.0 / (fan_in ** 0.5)
    return jax.random.uniform(key, (c_out,), jnp.float32, -bound, bound)


def _unit_vec(key, n):
    u = jax.random.normal(key, (n,), jnp.float32)
    return u / (jnp.linalg.norm(u) + 1e-12)


if __name__ == "__main__":
    configs = [
        dict(in_ch=4, out_ch=8, downsampling=2, N=2, H=16, W=16),  # shortcut-conv path
        dict(in_ch=8, out_ch=8, downsampling=1, N=2, H=8,  W=8),   # identity-shortcut path
    ]
    key = jax.random.PRNGKey(0)
    for cfg in configs:
        in_ch, out_ch, ds = cfg["in_ch"], cfg["out_ch"], cfg["downsampling"]
        N, H, W = cfg["N"], cfg["H"], cfg["W"]
        key, *ks = jax.random.split(key, 11)
        has_shortcut = (in_ch != out_ch) or (ds > 1)

        params = {
            "w1": _xavier_uniform(ks[0], (out_ch, in_ch, 3, 3)),
            "b1": _bias_init(ks[1], in_ch * 9, out_ch),
            "u1": _unit_vec(ks[2], out_ch),
            "w2": _xavier_uniform(ks[3], (out_ch, out_ch, 3, 3)),
            "b2": _bias_init(ks[4], out_ch * 9, out_ch),
            "u2": _unit_vec(ks[5], out_ch),
        }
        if has_shortcut:
            params.update({
                "ws": _xavier_uniform(ks[6], (out_ch, in_ch, 1, 1)),
                "bs": _bias_init(ks[7], in_ch, out_ch),
                "us": _unit_vec(ks[8], out_ch),
            })

        x = jax.random.normal(ks[9], (N, in_ch, H, W), jnp.float32)

        out = jax.block_until_ready(discriminator_res_block(x, params, ds))
        ref = jax.block_until_ready(reference(x, params, ds))

        assert out.shape == (N, out_ch, H // ds, W // ds)
        # bf16 MXU operands (f32 accumulation) -> loosened tolerance vs f32 reference
        np.testing.assert_allclose(np.asarray(out), np.asarray(ref),
                                   rtol=3e-2, atol=3e-2)

    print("KERNEL_OK")
</pallas_src>

<mosaic_0001>
module attributes {stable_mosaic.version = 11 : i64} {
  func.func @_resblock_kernel(%arg0: i32, %arg1: memref<1x18x18x128xbf16, #tpu.memory_space<vmem>>, %arg2: memref<1152x128xbf16, #tpu.memory_space<vmem>>, %arg3: memref<1x128xf32, #tpu.memory_space<vmem>>, %arg4: memref<1152x128xbf16, #tpu.memory_space<vmem>>, %arg5: memref<1x128xf32, #tpu.memory_space<vmem>>, %arg6: memref<128x128xbf16, #tpu.memory_space<vmem>>, %arg7: memref<1x128xf32, #tpu.memory_space<vmem>>, %arg8: memref<1x64x128xf32, #tpu.memory_space<vmem>>, %arg9: memref<16x16x128xf32, #tpu.memory_space<vmem>>) attributes {dimension_semantics = [#tpu.dimension_semantics<parallel>], iteration_bounds = array<i64: 2>, scalar_prefetch = 0 : i64, scratch_operands = 1 : i64, tpu.core_type = #tpu.core_type<tc>, window_params = [{transform_indices = @transform_0, window_bounds = array<i64: 1, 18, 18, 128>}, {pipeline_mode = #tpu.pipeline_mode<synchronous>, transform_indices = @transform_1, window_bounds = array<i64: 1152, 128>}, {pipeline_mode = #tpu.pipeline_mode<synchronous>, transform_indices = @transform_2, window_bounds = array<i64: 1, 128>}, {pipeline_mode = #tpu.pipeline_mode<synchronous>, transform_indices = @transform_3, window_bounds = array<i64: 1152, 128>}, {pipeline_mode = #tpu.pipeline_mode<synchronous>, transform_indices = @transform_4, window_bounds = array<i64: 1, 128>}, {pipeline_mode = #tpu.pipeline_mode<synchronous>, transform_indices = @transform_5, window_bounds = array<i64: 128, 128>}, {pipeline_mode = #tpu.pipeline_mode<synchronous>, transform_indices = @transform_6, window_bounds = array<i64: 1, 128>}, {transform_indices = @transform_7, window_bounds = array<i64: 1, 64, 128>}]} {
    %c0 = arith.constant 0 : index
    %c0_0 = arith.constant 0 : index
    %c0_1 = arith.constant 0 : index
    %c0_2 = arith.constant 0 : index
    %0 = vector.load %arg1[%c0, %c0_0, %c0_1, %c0_2] : memref<1x18x18x128xbf16, #tpu.memory_space<vmem>>, vector<1x16x16x128xbf16>
    %1 = vector.shape_cast %0 : vector<1x16x16x128xbf16> to vector<16x16x128xbf16>
    %2 = vector.shape_cast %1 : vector<16x16x128xbf16> to vector<256x128xbf16>
    %c0_3 = arith.constant 0 : index
    %c0_4 = arith.constant 0 : index
    %c1 = arith.constant 1 : index
    %c0_5 = arith.constant 0 : index
    %3 = vector.load %arg1[%c0_3, %c0_4, %c1, %c0_5] : memref<1x18x18x128xbf16, #tpu.memory_space<vmem>>, vector<1x16x16x128xbf16>
    %4 = vector.shape_cast %3 : vector<1x16x16x128xbf16> to vector<16x16x128xbf16>
    %5 = vector.shape_cast %4 : vector<16x16x128xbf16> to vector<256x128xbf16>
    %c0_6 = arith.constant 0 : index
    %c0_7 = arith.constant 0 : index
    %c2 = arith.constant 2 : index
    %c0_8 = arith.constant 0 : index
    %6 = vector.load %arg1[%c0_6, %c0_7, %c2, %c0_8] : memref<1x18x18x128xbf16, #tpu.memory_space<vmem>>, vector<1x16x16x128xbf16>
    %7 = vector.shape_cast %6 : vector<1x16x16x128xbf16> to vector<16x16x128xbf16>
    %8 = vector.shape_cast %7 : vector<16x16x128xbf16> to vector<256x128xbf16>
    %c0_9 = arith.constant 0 : index
    %c1_10 = arith.constant 1 : index
    %c0_11 = arith.constant 0 : index
    %c0_12 = arith.constant 0 : index
    %9 = vector.load %arg1[%c0_9, %c1_10, %c0_11, %c0_12] : memref<1x18x18x128xbf16, #tpu.memory_space<vmem>>, vector<1x16x16x128xbf16>
    %10 = vector.shape_cast %9 : vector<1x16x16x128xbf16> to vector<16x16x128xbf16>
    %11 = vector.shape_cast %10 : vector<16x16x128xbf16> to vector<256x128xbf16>
    %c0_13 = arith.constant 0 : index
    %c1_14 = arith.constant 1 : index
    %c1_15 = arith.constant 1 : index
    %c0_16 = arith.constant 0 : index
    %12 = vector.load %arg1[%c0_13, %c1_14, %c1_15, %c0_16] : memref<1x18x18x128xbf16, #tpu.memory_space<vmem>>, vector<1x16x16x128xbf16>
    %13 = vector.shape_cast %12 : vector<1x16x16x128xbf16> to vector<16x16x128xbf16>
    %14 = vector.shape_cast %13 : vector<16x16x128xbf16> to vector<256x128xbf16>
    %c0_17 = arith.constant 0 : index
    %c1_18 = arith.constant 1 : index
    %c2_19 = arith.constant 2 : index
    %c0_20 = arith.constant 0 : index
    %15 = vector.load %arg1[%c0_17, %c1_18, %c2_19, %c0_20] : memref<1x18x18x128xbf16, #tpu.memory_space<vmem>>, vector<1x16x16x128xbf16>
    %16 = vector.shape_cast %15 : vector<1x16x16x128xbf16> to vector<16x16x128xbf16>
    %17 = vector.shape_cast %16 : vector<16x16x128xbf16> to vector<256x128xbf16>
    %c0_21 = arith.constant 0 : index
    %c2_22 = arith.constant 2 : index
    %c0_23 = arith.constant 0 : index
    %c0_24 = arith.constant 0 : index
    %18 = vector.load %arg1[%c0_21, %c2_22, %c0_23, %c0_24] : memref<1x18x18x128xbf16, #tpu.memory_space<vmem>>, vector<1x16x16x128xbf16>
    %19 = vector.shape_cast %18 : vector<1x16x16x128xbf16> to vector<16x16x128xbf16>
    %20 = vector.shape_cast %19 : vector<16x16x128xbf16> to vector<256x128xbf16>
    %c0_25 = arith.constant 0 : index
    %c2_26 = arith.constant 2 : index
    %c1_27 = arith.constant 1 : index
    %c0_28 = arith.constant 0 : index
    %21 = vector.load %arg1[%c0_25, %c2_26, %c1_27, %c0_28] : memref<1x18x18x128xbf16, #tpu.memory_space<vmem>>, vector<1x16x16x128xbf16>
    %22 = vector.shape_cast %21 : vector<1x16x16x128xbf16> to vector<16x16x128xbf16>
    %23 = vector.shape_cast %22 : vector<16x16x128xbf16> to vector<256x128xbf16>
    %c0_29 = arith.constant 0 : index
    %c2_30 = arith.constant 2 : index
    %c2_31 = arith.constant 2 : index
    %c0_32 = arith.constant 0 : index
    %24 = vector.load %arg1[%c0_29, %c2_30, %c2_31, %c0_32] : memref<1x18x18x128xbf16, #tpu.memory_space<vmem>>, vector<1x16x16x128xbf16>
    %25 = vector.shape_cast %24 : vector<1x16x16x128xbf16> to vector<16x16x128xbf16>
    %26 = vector.shape_cast %25 : vector<16x16x128xbf16> to vector<256x128xbf16>
    %27 = tpu.concatenate %2, %5, %8, %11, %14, %17, %20, %23, %26 in 1 : vector<256x128xbf16>, vector<256x128xbf16>, vector<256x128xbf16>, vector<256x128xbf16>, vector<256x128xbf16>, vector<256x128xbf16>, vector<256x128xbf16>, vector<256x128xbf16>, vector<256x128xbf16> -> vector<256x1152xbf16>
    %c0_33 = arith.constant 0 : index
    %c0_34 = arith.constant 0 : index
    %28 = vector.load %arg2[%c0_33, %c0_34] : memref<1152x128xbf16, #tpu.memory_space<vmem>>, vector<1152x128xbf16>
    %cst = arith.constant dense<0.000000e+00> : vector<256x128xf32>
    %29 = tpu.matmul %27, %28, %cst {dimension_numbers = #tpu.dot_dimension_numbers<[1], [0], [0], [1], [0, 0, 1, 1], [], []>} : vector<256x1152xbf16>, vector<1152x128xbf16>, vector<256x128xf32> -> vector<256x128xf32>
    %c0_35 = arith.constant 0 : index
    %c0_36 = arith.constant 0 : index
    %30 = vector.load %arg3[%c0_35, %c0_36] : memref<1x128xf32, #tpu.memory_space<vmem>>, vector<1x128xf32>
    %31 = vector.broadcast %30 : vector<1x128xf32> to vector<256x128xf32>
    %32 = arith.addf %29, %31 : vector<256x128xf32>
    %cst_37 = arith.constant 0.000000e+00 : f32
    %33 = vector.broadcast %cst_37 : f32 to vector<256x128xf32>
    %34 = arith.maximumf %32, %33 : vector<256x128xf32>
    %35 = vector.shape_cast %34 : vector<256x128xf32> to vector<16x16x128xf32>
    %36 = tpu.iota {dimensions = array<i32: 0>} : vector<16x16x128xi32>
    %37 = tpu.iota {dimensions = array<i32: 1>} : vector<16x16x128xi32>
    %c1_i32 = arith.constant 1 : i32
    %38 = vector.broadcast %c1_i32 : i32 to vector<16x16x128xi32>
    %39 = arith.cmpi sge, %36, %38 : vector<16x16x128xi32>
    %c8_i32 = arith.constant 8 : i32
    %40 = vector.broadcast %c8_i32 : i32 to vector<16x16x128xi32>
    %41 = arith.cmpi sle, %36, %40 : vector<16x16x128xi32>
    %42 = arith.andi %39, %41 : vector<16x16x128xi1>
    %c1_i32_38 = arith.constant 1 : i32
    %43 = vector.broadcast %c1_i32_38 : i32 to vector<16x16x128xi32>
    %44 = arith.cmpi sge, %37, %43 : vector<16x16x128xi32>
    %45 = arith.andi %42, %44 : vector<16x16x128xi1>
    %c8_i32_39 = arith.constant 8 : i32
    %46 = vector.broadcast %c8_i32_39 : i32 to vector<16x16x128xi32>
    %47 = arith.cmpi sle, %37, %46 : vector<16x16x128xi32>
    %48 = arith.andi %45, %47 : vector<16x16x128xi1>
    %cst_40 = arith.constant 0.000000e+00 : f32
    %49 = vector.broadcast %cst_40 : f32 to vector<16x16x128xf32>
    %50 = arith.select %48, %35, %49 : vector<16x16x128xi1>, vector<16x16x128xf32>
    %c0_41 = arith.constant 0 : index
    %c0_42 = arith.constant 0 : index
    %c0_43 = arith.constant 0 : index
    %51 = vector.load %arg9[%c0_41, %c0_42, %c0_43] : memref<16x16x128xf32, #tpu.memory_space<vmem>>, vector<16x16x128xf32>
    tpu.vector_store %arg9[%c0_41, %c0_42, %c0_43], %50 {strides = array<i32>} : memref<16x16x128xf32, #tpu.memory_space<vmem>>, vector<16x16x128xf32>,
    %c0_44 = arith.constant 0 : index
    %c0_45 = arith.constant 0 : index
    %c0_46 = arith.constant 0 : index
    %52 = vector.load %arg9[%c0_44, %c0_45, %c0_46] : memref<16x16x128xf32, #tpu.memory_space<vmem>>, vector<8x8x128xf32>
    %53 = vector.shape_cast %52 : vector<8x8x128xf32> to vector<64x128xf32>
    %c0_47 = arith.constant 0 : index
    %c1_48 = arith.constant 1 : index
    %c0_49 = arith.constant 0 : index
    %54 = vector.load %arg9[%c0_47, %c1_48, %c0_49] : memref<16x16x128xf32, #tpu.memory_space<vmem>>, vector<8x8x128xf32>
    %55 = vector.shape_cast %54 : vector<8x8x128xf32> to vector<64x128xf32>
    %c0_50 = arith.constant 0 : index
    %c2_51 = arith.constant 2 : index
    %c0_52 = arith.constant 0 : index
    %56 = vector.load %arg9[%c0_50, %c2_51, %c0_52] : memref<16x16x128xf32, #tpu.memory_space<vmem>>, vector<8x8x128xf32>
    %57 = vector.shape_cast %56 : vector<8x8x128xf32> to vector<64x128xf32>
    %c1_53 = arith.constant 1 : index
    %c0_54 = arith.constant 0 : index
    %c0_55 = arith.constant 0 : index
    %58 = vector.load %arg9[%c1_53, %c0_54, %c0_55] : memref<16x16x128xf32, #tpu.memory_space<vmem>>, vector<8x8x128xf32>
    %59 = vector.shape_cast %58 : vector<8x8x128xf32> to vector<64x128xf32>
    %c1_56 = arith.constant 1 : index
    %c1_57 = arith.constant 1 : index
    %c0_58 = arith.constant 0 : index
    %60 = vector.load %arg9[%c1_56, %c1_57, %c0_58] : memref<16x16x128xf32, #tpu.memory_space<vmem>>, vector<8x8x128xf32>
    %61 = vector.shape_cast %60 : vector<8x8x128xf32> to vector<64x128xf32>
    %c1_59 = arith.constant 1 : index
    %c2_60 = arith.constant 2 : index
    %c0_61 = arith.constant 0 : index
    %62 = vector.load %arg9[%c1_59, %c2_60, %c0_61] : memref<16x16x128xf32, #tpu.memory_space<vmem>>, vector<8x8x128xf32>
    %63 = vector.shape_cast %62 : vector<8x8x128xf32> to vector<64x128xf32>
    %c2_62 = arith.constant 2 : index
    %c0_63 = arith.constant 0 : index
    %c0_64 = arith.constant 0 : index
    %64 = vector.load %arg9[%c2_62, %c0_63, %c0_64] : memref<16x16x128xf32, #tpu.memory_space<vmem>>, vector<8x8x128xf32>
    %65 = vector.shape_cast %64 : vector<8x8x128xf32> to vector<64x128xf32>
    %c2_65 = arith.constant 2 : index
    %c1_66 = arith.constant 1 : index
    %c0_67 = arith.constant 0 : index
    %66 = vector.load %arg9[%c2_65, %c1_66, %c0_67] : memref<16x16x128xf32, #tpu.memory_space<vmem>>, vector<8x8x128xf32>
    %67 = vector.shape_cast %66 : vector<8x8x128xf32> to vector<64x128xf32>
    %c2_68 = arith.constant 2 : index
    %c2_69 = arith.constant 2 : index
    %c0_70 = arith.constant 0 : index
    %68 = vector.load %arg9[%c2_68, %c2_69, %c0_70] : memref<16x16x128xf32, #tpu.memory_space<vmem>>, vector<8x8x128xf32>
    %69 = vector.shape_cast %68 : vector<8x8x128xf32> to vector<64x128xf32>
    %70 = tpu.concatenate %53, %55, %57, %59, %61, %63, %65, %67, %69 in 1 : vector<64x128xf32>, vector<64x128xf32>, vector<64x128xf32>, vector<64x128xf32>, vector<64x128xf32>, vector<64x128xf32>, vector<64x128xf32>, vector<64x128xf32>, vector<64x128xf32> -> vector<64x1152xf32>
    %71 = arith.truncf %70 : vector<64x1152xf32> to vector<64x1152xbf16>
    %c0_71 = arith.constant 0 : index
    %c0_72 = arith.constant 0 : index
    %72 = vector.load %arg4[%c0_71, %c0_72] : memref<1152x128xbf16, #tpu.memory_space<vmem>>, vector<1152x128xbf16>
    %cst_73 = arith.constant dense<0.000000e+00> : vector<64x128xf32>
    %73 = tpu.matmul %71, %72, %cst_73 {dimension_numbers = #tpu.dot_dimension_numbers<[1], [0], [0], [1], [0, 0, 1, 1], [], []>} : vector<64x1152xbf16>, vector<1152x128xbf16>, vector<64x128xf32> -> vector<64x128xf32>
    %c0_74 = arith.constant 0 : index
    %c0_75 = arith.constant 0 : index
    %74 = vector.load %arg5[%c0_74, %c0_75] : memref<1x128xf32, #tpu.memory_space<vmem>>, vector<1x128xf32>
    %75 = vector.broadcast %74 : vector<1x128xf32> to vector<64x128xf32>
    %76 = arith.addf %73, %75 : vector<64x128xf32>
    %cst_76 = arith.constant 0.000000e+00 : f32
    %77 = vector.broadcast %cst_76 : f32 to vector<64x128xf32>
    %78 = arith.maximumf %76, %77 : vector<64x128xf32>
    %c0_77 = arith.constant 0 : index
    %c2_78 = arith.constant 2 : index
    %c2_79 = arith.constant 2 : index
    %c0_80 = arith.constant 0 : index
    %79 = vector.load %arg1[%c0_77, %c2_78, %c2_79, %c0_80] : memref<1x18x18x128xbf16, #tpu.memory_space<vmem>>, vector<1x8x8x128xbf16>
    %80 = vector.shape_cast %79 : vector<1x8x8x128xbf16> to vector<8x8x128xbf16>
    %81 = arith.extf %80 : vector<8x8x128xbf16> to vector<8x8x128xf32>
    %82 = vector.shape_cast %81 : vector<8x8x128xf32> to vector<64x128xf32>
    %83 = arith.truncf %82 : vector<64x128xf32> to vector<64x128xbf16>
    %c0_81 = arith.constant 0 : index
    %c0_82 = arith.constant 0 : index
    %84 = vector.load %arg6[%c0_81, %c0_82] : memref<128x128xbf16, #tpu.memory_space<vmem>>, vector<128x128xbf16>
    %cst_83 = arith.constant dense<0.000000e+00> : vector<64x128xf32>
    %85 = tpu.matmul %83, %84, %cst_83 {dimension_numbers = #tpu.dot_dimension_numbers<[1], [0], [0], [1], [0, 0, 1, 1], [], []>} : vector<64x128xbf16>, vector<128x128xbf16>, vector<64x128xf32> -> vector<64x128xf32>
    %c0_84 = arith.constant 0 : index
    %c0_85 = arith.constant 0 : index
    %86 = vector.load %arg7[%c0_84, %c0_85] : memref<1x128xf32, #tpu.memory_space<vmem>>, vector<1x128xf32>
    %87 = vector.broadcast %86 : vector<1x128xf32> to vector<64x128xf32>
    %88 = arith.addf %85, %87 : vector<64x128xf32>
    %89 = arith.addf %78, %88 : vector<64x128xf32>
    %c0_86 = arith.constant 0 : index
    %c0_87 = arith.constant 0 : index
    %c0_88 = arith.constant 0 : index
    %90 = vector.load %arg8[%c0_86, %c0_87, %c0_88] : memref<1x64x128xf32, #tpu.memory_space<vmem>>, vector<1x64x128xf32>
    %91 = vector.shape_cast %90 : vector<1x64x128xf32> to vector<64x128xf32>
    %92 = vector.shape_cast %89 : vector<64x128xf32> to vector<1x64x128xf32>
    tpu.vector_store %arg8[%c0_86, %c0_87, %c0_88], %92 {strides = array<i32>} : memref<1x64x128xf32, #tpu.memory_space<vmem>>, vector<1x64x128xf32>,
    return
  }
  func.func @transform_0(%arg0: i32) -> (i32, i32, i32, i32) {
    %c0_i32 = arith.constant 0 : i32
    %c0_i32_0 = arith.constant 0 : i32
    %c0_i32_1 = arith.constant 0 : i32
    %c0_i32_2 = arith.constant 0 : i32
    return %arg0, %c0_i32, %c0_i32_0, %c0_i32_1 : i32, i32, i32, i32
  }
  func.func @transform_1(%arg0: i32) -> (i32, i32) {
    %c0_i32 = arith.constant 0 : i32
    %c0_i32_0 = arith.constant 0 : i32
    %c0_i32_1 = arith.constant 0 : i32
    return %c0_i32, %c0_i32_0 : i32, i32
  }
  func.func @transform_2(%arg0: i32) -> (i32, i32) {
    %c0_i32 = arith.constant 0 : i32
    %c0_i32_0 = arith.constant 0 : i32
    %c0_i32_1 = arith.constant 0 : i32
    return %c0_i32, %c0_i32_0 : i32, i32
  }
  func.func @transform_3(%arg0: i32) -> (i32, i32) {
    %c0_i32 = arith.constant 0 : i32
    %c0_i32_0 = arith.constant 0 : i32
    %c0_i32_1 = arith.constant 0 : i32
    return %c0_i32, %c0_i32_0 : i32, i32
  }
  func.func @transform_4(%arg0: i32) -> (i32, i32) {
    %c0_i32 = arith.constant 0 : i32
    %c0_i32_0 = arith.constant 0 : i32
    %c0_i32_1 = arith.constant 0 : i32
    return %c0_i32, %c0_i32_0 : i32, i32
  }
  func.func @transform_5(%arg0: i32) -> (i32, i32) {
    %c0_i32 = arith.constant 0 : i32
    %c0_i32_0 = arith.constant 0 : i32
    %c0_i32_1 = arith.constant 0 : i32
    return %c0_i32, %c0_i32_0 : i32, i32
  }
  func.func @transform_6(%arg0: i32) -> (i32, i32) {
    %c0_i32 = arith.constant 0 : i32
    %c0_i32_0 = arith.constant 0 : i32
    %c0_i32_1 = arith.constant 0 : i32
    return %c0_i32, %c0_i32_0 : i32, i32
  }
  func.func @transform_7(%arg0: i32) -> (i32, i32, i32) {
    %c0_i32 = arith.constant 0 : i32
    %c0_i32_0 = arith.constant 0 : i32
    %c0_i32_1 = arith.constant 0 : i32
    return %arg0, %c0_i32, %c0_i32_0 : i32, i32, i32
  }
}

</mosaic_0001>

<bundles_post_ra>
// kernel: tpu_custom_call.1
= control target key start
LH: loop header
LB: loop body
LE: loop exit
PB: predicated region body
PF: predicated region fallthrough
CT: control target
= control target key end

     0   :  { %12 = vsyncpa [#allocation4], 0  ;;  %s9437_s0 = inlined_call_operand.vmem [shape: bf16[2,18,18,128], index: 0, kind: input, shape index: {}]   ;;  %s9438_s1 = inlined_call_operand.vmem [shape: bf16[1152,128], index: 1, kind: input, shape index: {}]   ;;  %s9439_s2 = inlined_call_operand.vmem [shape: f32[1,128], index: 2, kind: input, shape index: {}]   ;;  %s9440_s3 = inlined_call_operand.hbm [shape: bf16[1152,128], index: 3, kind: input, shape index: {}]   ;;  %s9441_s4 = inlined_call_operand.vmem [shape: f32[1,128], index: 4, kind: input, shape index: {}]   ;;  %s9442_s5 = inlined_call_operand.vmem [shape: bf16[128,128], index: 5, kind: input, shape index: {}]   ;;  %s9443_s6 = inlined_call_operand.vmem [shape: f32[1,128], index: 6, kind: input, shape index: {}]   ;;  %s9444_s7 = inlined_call_operand.hbm [shape: f32[2,64,128], index: 7, kind: output, shape index: {}]  }
   0x1   :  { %13 = vsyncpa [#allocation5], 0 }
   0x2   :  { %15 = vsyncpa [#allocation5 + $0x1], 0  ;;  %s7326_s24 = smov 0   ;;  %s7328_s25 = smov 0  }
   0x3   :  { %s7330_s26 = smov 0   ;;  %s7332_s27 = smov 0  }
   0x4 LB: > { %s7347_s28 = sadd.s32 4294967295, %s7276_s27   ;;  %s5599_s29 = sadd.s32 4294967294, %s7276_s27   ;;  %s7276_s27 = sphi %s7332_s27, %s9513_s27   ;;  %s7272_s26 = sphi %s7330_s26, %s9512_s26   ;;  %s7268_s25 = sphi %s7328_s25, %s9511_s25   ;;  %s7264_s24 = sphi %s7326_s24, %s9510_s24  }
   0x5   : > { %s7351_s30 = sadd.s32 1, %s7276_s27   ;;  %s180_s8 = sadd.s32 1, %s7272_s26 }
   0x6   : > { %s177_s9 = ssub.s32 %s7276_s27, %s7351_s30  ;;  %p190_p0 = scmp.ne.s32.totalorder %s7272_s26, %s7268_s25 }
   0x7   : > { %p178_p1 = scmp.eq.s32.totalorder %s177_s9, 0  ;;  %p191_p2 = scmp.eq.s32.totalorder %s7347_s28, 1 }
   0x8   : > { %p196_p3 = scmp.ne.s32.totalorder %s7268_s25, %s7264_s24  ;;  %p197_p4 = scmp.eq.s32.totalorder %s5599_s29, 1 }
   0x9   : > { %s7362_s10 = scalar_select %p178_p1, %s7272_s26, %s180_s8  }
   0xa   : > { %p7364_p5 = por %p191_p2, %p190_p0  ;;  %p7368_p6 = por %p197_p4, %p196_p3 }
   0xb   : > { %p5600_p7 = scmp.ge.s32.totalorder %s7276_s27, 1  ;;  %p204_p8 = scmp.lt.s32.totalorder %s7276_s27, 3 }
   0xc   : > { %s9453_s11 = scalar_select %p7364_p5, 1, 0 }
   0xd   : > { %s9454_s12 = scalar_select %p7368_p6, 1, 0 }
   0xe   : > { %p9445_p9 = scmp.eq.s32.totalorder %s7347_s28, 0  ;;  %p7375_p10 = pnand %p5600_p7, %p204_p8 }
   0xf   : > { %s7278_s14 = smov [#allocation3]   ;;  %s7182_s19 = scalar_lea.hbm %s9440_s3, 9216 }
  0x10   : > { %s9455_s13 = scalar_select %p7375_p10, 1, 0 }
  0x11   : > { %s222_s15 = sshll.u32 %s7278_s14, 4  ;;  %p6863_p11 = pneg %p7375_p10  ;;  %s223_s15 = int_to_ptr.vmem [resolvable:$true] %s222_s15 }
  0x12   : > { %p7183_p13 = scmp.ne.s32.totalorder %s9440_s3, %s7182_s19  ;;  %p7189_p3 = scmp.lt.u32.totalorder %s7182_s19, %s9440_s3 }
  0x13   : > { %p7383_p12 = pnand %p9445_p9, %p6863_p11 }
  0x15   : > { %p7184_p0 = pneg %p7383_p12 }
  0x17   : > { %p7185_p1 = pnand %p7184_p0, %p7183_p13 }
  0x19   : > { %p7186_p2 = pneg %p7185_p1 }
  0x1b   : > { %p7191_p4 = pnand %p7189_p3, %p7186_p2 }
  0x1d   : > { %7194 = shalt.err (!%p7191_p4)
}
  0x1e   : > { %s7195_s29 = scalar_lea.vmem %s223_s15, 9216  ;;  %p7203_p9 = scmp.lt.s32.totalorder %s223_s15, %s223_s15 }
  0x1f   : > { %p7196_p7 = scmp.ne.s32.totalorder %s223_s15, %s7195_s29  ;;  %p7204_p6 = scmp.lt.s32.totalorder %s7195_s29, %s7195_s29 }
  0x21   : > { %p7198_p8 = pnand %p7196_p7, %p7184_p0  ;;  %p7205_p5 = por %p7204_p6, %p7203_p9 }
  0x23   : > { %p7199_p11 = pneg %p7198_p8 }
  0x25   : > { %p7206_p10 = pnand %p7205_p5, %p7199_p11 }
  0x27   : > { %7209 = shalt.err (!%p7206_p10)
}
  0x28   : > { %s7279_s8 = smov 64   ;;  %s7280_s9 = smov 4  }
  0x29   : > { %6866 = dma.hbm_to_vmem [thread:$0]  (!%p7383_p12), %s9440_s3, 9216, %s223_s15, [#allocation4], %s7279_s8, %s7279_s8, %s7280_s9  }
  0x2a   : > { %p9457_p13 = scmp.ne.s32.totalorder %s9455_s13, 0 }
  0x2c   : > { %255 = sbr.rel (%p9457_p13) target bundleno = 919 (0x397), region = 48 }
  0x33   : > { %p9458_p1 = scmp.eq.s32.totalorder %s7347_s28, 0 }
  0x35   : > { %7255 = dma.done.wait (%p9458_p1), [#allocation4], 9216   ;;  %p9459_p0 = pmov %p9458_p1 }
  0x36   : > { %v6912_v0 = vld [vmem:[%s9438_s1 + $0x40] sm:$0xff]   ;;  %v6916_v4 = vld [vmem:[%s9438_s1 + $0x48] sm:$0xff]   ;;  %v6920_v8 = vld [vmem:[%s9438_s1 + $0x50] sm:$0xff]   ;;  %p287_p5 = scmp.lt.s32.totalorder %s7347_s28, 1  ;;  %vm341_vm0 = vsmask.f32 3328 }
  0x37   : > { %7257 = vsyncadd (%p9459_p0), [#allocation4], 4294958080  ;;  %v6913_v1 = vld [vmem:[%s9438_s1] sm:$0xff]   ;;  %6104 = vmatprep.subr.bf16.mxu0 %v6912_v0  ;;  %v6917_v5 = vld [vmem:[%s9438_s1 + $0x8] sm:$0xff]   ;;  %vm342_vm1 = vsmask.f32 7440 }
  0x38   : > { %v6914_v2 = vld [vmem:[%s9438_s1 + $0xc0] sm:$0xff]   ;;  %6105 = vmatpush3.bf16.msra.mxu0 %v6913_v1  ;;  %v6918_v6 = vld [vmem:[%s9438_s1 + $0xc8] sm:$0xff]   ;;  %v6921_v9 = vld [vmem:[%s9438_s1 + $0x10] sm:$0xff]   ;;  %s288_s18 = scalar_select %p287_p5, %s7347_s28, 1  ;;  %vm792_vm2 = vcmask 1042432   ;;  %vm793_vm3 = vcmask 1046532  }
  0x39   : > { %v6915_v3 = vld [vmem:[%s9438_s1 + $0x80] sm:$0xff]   ;;  %6216 = vmatprep.subr.bf16.mxu1 %v6914_v2  ;;  %6106 = vmatprep.subr.bf16.mxu0 %v6916_v4  ;;  %v6919_v7 = vld [vmem:[%s9438_s1 + $0x88] sm:$0xff]   ;;  %v6922_v10 = vld [vmem:[%s9438_s1 + $0xd0] sm:$0xff]   ;;  %vm7282_vm8 = vmmov 1   ;;  %vm5322_vm11 = vcmask 1045504   ;;  %s284_s23 = sand.u32 1, %s7268_s25  }
  0x3a   : > { %6217 = vmatpush3.bf16.msra.mxu1 %v6915_v3  ;;  %v6923_v11 = vld [vmem:[%s9438_s1 + $0x90] sm:$0xff]   ;;  %v6924_v12 = vld [vmem:[%s9438_s1 + $0x58] sm:$0xff]   ;;  %v6928_v16 = vld [vmem:[%s9438_s1 + $0x60] sm:$0xff]   ;;  %s6856_s29 = smul.u32 216, %s288_s18  ;;  %s6103_s19 = sshll.u32 %s7347_s28, 10 }
  0x3b   : > { %6218 = vmatprep.subr.bf16.mxu1 %v6918_v6  ;;  %v6925_v13 = vld [vmem:[%s9438_s1 + $0x18] sm:$0xff]   ;;  %v6929_v17 = vld [vmem:[%s9438_s1 + $0x20] sm:$0xff]   ;;  %v6932_v20 = vld [vmem:[%s9438_s1 + $0x68] sm:$0xff]   ;;  %s9390_s18 = scalar_lea.hbm %s9444_s7, %s6103_s19  ;;  %s9396_s28 = scalar_lea.sflag [#allocation5], %s284_s23 }
  0x3c   : > { %6107 = vmatpush3.bf16.msra.mxu0 %v6917_v5  ;;  %v6926_v14 = vld [vmem:[%s9438_s1 + $0xd8] sm:$0xff]   ;;  %v6930_v18 = vld [vmem:[%s9438_s1 + $0xe0] sm:$0xff]   ;;  %v6933_v21 = vld [vmem:[%s9438_s1 + $0x28] sm:$0xff]   ;;  %s7501_s13 = scalar_lea.vmem %s9437_s0, %s6856_s29  ;;  %s5605_s29 = sshll.u32 %s284_s23, 6 }
  0x3d   : > { %6108 = vmatprep.subr.bf16.mxu0 %v6920_v8  ;;  %v6927_v15 = vld [vmem:[%s9438_s1 + $0x98] sm:$0xff]   ;;  %v6931_v19 = vld [vmem:[%s9438_s1 + $0xa0] sm:$0xff]   ;;  %v6934_v22 = vld [vmem:[%s9438_s1 + $0xe8] sm:$0xff]   ;;  %s9375_s14 = scalar_lea.vmem [#allocation6], %s5605_s29  ;;  %p9508_p9 = scmp.ne.s32.totalorder %s9453_s11, 0 }
  0x3e   : > { %6219 = vmatpush3.bf16.msra.mxu1 %v6919_v7  ;;  %v6935_v23 = vld [vmem:[%s9438_s1 + $0xa8] sm:$0xff]   ;;  %v6936_v24 = vld [vmem:[%s9438_s1 + $0x70] sm:$0xff]   ;;  %v6940_v28 = vld [vmem:[%s9438_s1 + $0x78] sm:$0xff]   ;;  %s5525_s17 = sshll.u32 %s9375_s14, 4  ;;  %s7283_s15 = smov [#allocation6]   ;;  %s9383_s17 = int_to_ptr.vmem [resolvable:$true] %s5525_s17 }
  0x3f   : > { %6220 = vmatprep.subr.bf16.mxu1 %v6922_v10  ;;  %v6937_v25 = vld [vmem:[%s9438_s1 + $0x30] sm:$0xff]   ;;  %v6941_v29 = vld [vmem:[%s9438_s1 + $0x38] sm:$0xff]   ;;  %v7510_v31 = vld [vmem:[%s7501_s13] sm:$0xf]  ;;  %s7210_s16 = scalar_lea.vmem %s9383_s17, 1024 }
  0x40   : > { %6109 = vmatpush3.bf16.msra.mxu0 %v6921_v9  ;;  %v6938_v26 = vld [vmem:[%s9438_s1 + $0xf0] sm:$0xff]   ;;  %v6942_v30 = vld [vmem:[%s9438_s1 + $0xf8] sm:$0xff]   ;;  %v7513_v32 = vld [vmem:[%s7501_s13 + $0x4] sm:$0xf]  ;;  %v345_v34 = vshrl.u32 %v7510_v31, 16  ;;  %v348_v35 = vshll.u32 %v7510_v31, 16  ;;  %p7211_p6 = scmp.ne.s32.totalorder %s9383_s17, %s7210_s16 }
  0x41   : > { %6110 = vmatprep.subr.bf16.mxu0 %v6924_v12  ;;  %v6939_v27 = vld [vmem:[%s9438_s1 + $0xb0] sm:$0xff]   ;;  %v325_v33 = vld [vmem:[%s7501_s13 + $0x8] sm:$0x1]  ;;  %v354_v36 = vshll.u32 %v7513_v32, 16  ;;  %v358_v37 = vshrl.u32 %v7513_v32, 16  ;;  %v6943_v39 = vld [vmem:[%s9438_s1 + $0xb8] sm:$0xff]   ;;  %v5783_v54 = vcombine.low %v7510_v31, %v7513_v32 }
  0x42   : > { %6221 = vmatpush3.bf16.msra.mxu1 %v6923_v11  ;;  %v364_v38 = vshll.u32 %v325_v33, 16  ;;  %v6945_v40 = vld [vmem:[%s9438_s1 + $0x140] sm:$0xff]   ;;  %v347_v41 = vrot.slane %v345_v34, 4  ;;  %v350_v42 = vrot.slane %v348_v35, 5  ;;  %v800_v46 = vrot.slane %v325_v33, 5  ;;  %vm7532_vm4 = vmor %vm341_vm0, %vm342_vm1  ;;  %v6953_v34 = vld [vmem:[%s9438_s1 + $0x108] sm:$0xff]   ;;  %p7212_p10 = pnand %p7211_p6, %p9508_p9 }
  0x43   : > { %6222 = vmatprep.subr.bf16.mxu1 %v6926_v14  ;;  %v356_v43 = vrot.slane %v354_v36, 5  ;;  %v360_v44 = vrot.slane %v358_v37, 4  ;;  %v5623_v47 = vld [vmem:[%s7501_s13 + $0xc] sm:$0xf]  ;;  %v7528_v50 = vld [vmem:[%s7501_s13 + $0x10] sm:$0xf]  ;;  %vm7544_vm5 = vmor %vm792_vm2, %vm793_vm3 }
  0x44   : > { %6111 = vmatpush3.bf16.msra.mxu0 %v6925_v13  ;;  %v366_v45 = vrot.slane %v364_v38, 5  ;;  %v351_v48 = vor.u32 %v350_v42, %v347_v41  ;;  %v957_v51 = vshrl.u32 %v5623_v47, 16  ;;  %v960_v52 = vshll.u32 %v5623_v47, 16  ;;  %v728_v62 = vld [vmem:[%s7501_s13] sm:$0xe]  ;;  %p7213_p12 = pneg %p7212_p10 }
  0x45   : > { %6112 = vmatprep.subr.bf16.mxu0 %v6928_v16  ;;  %v361_v49 = vor.u32 %v360_v44, %v356_v43  ;;  %v966_v55 = vshll.u32 %v7528_v50, 16  ;;  %v970_v56 = vshrl.u32 %v7528_v50, 16  ;;  %v5831_v57 = vcombine.low %v5623_v47, %v7528_v50  ;;  %v7553_v4 = vld [vmem:[%s7501_s13 + $0xc] sm:$0xf]  ;;  %v7560_v8 = vld [vmem:[%s7501_s13 + $0x10] sm:$0xf] }
  0x46   : > { %6223 = vmatpush3.bf16.msra.mxu1 %v6927_v15  ;;  %v352_v58 = vrot.slane %v351_v48, 4  ;;  %v959_v60 = vrot.slane %v957_v51, 4  ;;  %v962_v61 = vrot.slane %v960_v52, 5  ;;  %v5607_v2 = vrot.slane %v728_v62, 9  ;;  %v326_v9 = vld [vmem:[%s7501_s13 + $0x14] sm:$0x1] }
  0x47   : > { %6224 = vmatprep.subr.bf16.mxu1 %v6930_v18  ;;  %v362_v59 = vrot.slane %v361_v49, 4  ;;  %v7548_v0 = vrot.slane %v966_v55, 5  ;;  %3525 = vmatprep.mubr.bf16.mxu1 %v5831_v57  ;;  %v797_v3 = vrot.slane %v7513_v32, 5  ;;  %v369_v10 = vshrl.u32 %v7553_v4, 16  ;;  %v6947_v13 = vld [vmem:[%s9438_s1 + $0x100] sm:$0xff]  }
  0x48   : > { %6113 = vmatpush3.bf16.msra.mxu0 %v6929_v17  ;;  %v357_v5 = vsel %vm7532_vm4, %v352_v58, %v356_v43  ;;  %v963_v7 = vor.u32 %v962_v61, %v959_v60  ;;  %v7564_v12 = vrot.slane %v970_v56, 4  ;;  %v372_v18 = vshll.u32 %v7553_v4, 16  ;;  %v7593_v33 = vld [vmem:[%s7501_s13 + $0x18] sm:$0xf]  ;;  %v6959_v56 = vld [vmem:[%s9438_s1 + $0x110] sm:$0xff]  }
  0x49   : > { %6114 = vmatprep.subr.bf16.mxu0 %v6932_v20  ;;  %v367_v6 = vsel %vm7532_vm4, %v362_v59, %v366_v45  ;;  %v798_v14 = vsel %vm7544_vm5, %v5607_v2, %v797_v3  ;;  %v799_v15 = vrot.slane %v797_v3, 4  ;;  %v371_v17 = vrot.slane %v369_v10, 4  ;;  %v6951_v20 = vld [vmem:[%s9438_s1 + $0x148] sm:$0xff]   ;;  %v7609_v45 = vld [vmem:[%s7501_s13 + $0x20] sm:$0x1]  ;;  %v6963_v61 = vld [vmem:[%s9438_s1 + $0x158] sm:$0xff]  }
  0x4a   : > { %6225 = vmatpush3.bf16.msra.mxu1 %v6931_v19  ;;  %v5799_v11 = vcombine.low %v357_v5, %v367_v6  ;;  %v7571_v16 = vrot.slane %v963_v7, 4  ;;  %v378_v19 = vshll.u32 %v7560_v8, 16  ;;  %v973_v31 = vor.u32 %v7564_v12, %v7548_v0  ;;  %v7631_v5 = vld [vmem:[%s7501_s13 + $0x24] sm:$0xf]  ;;  %v7634_v6 = vld [vmem:[%s7501_s13 + $0x28] sm:$0xf] }
  0x4b   : > { %6226 = vmatprep.subr.bf16.mxu1 %v6934_v22  ;;  %v382_v22 = vshrl.u32 %v7560_v8, 16  ;;  %v5784_v37 = vcombine.low %v7553_v4, %v7560_v8  ;;  %v804_v44 = vrot.slane %v7560_v8, 5  ;;  %v807_v48 = vrot.slane %v326_v9, 5 }
  0x4c   : > { %6115 = vmatpush3.bf16.msra.mxu0 %v6933_v21  ;;  %3364 = vmatprep.mubr.bf16.mxu0 %v5799_v11  ;;  %v801_v21 = vsel %vm7544_vm5, %v799_v15, %v800_v46  ;;  %v393_v49 = vshrl.u32 %v7593_v33, 16  ;;  %v396_v55 = vshll.u32 %v7593_v33, 16  ;;  %v412_v4 = vshll.u32 %v7609_v45, 16  ;;  %v730_v11 = vld [vmem:[%s7501_s13 + $0x18] sm:$0xe] }
  0x4d   : > { %6116 = vmatprep.subr.bf16.mxu0 %v6936_v24  ;;  %v5625_v24 = vld [vmem:[%s7501_s13 + $0x18] sm:$0xf]  ;;  %v384_v32 = vrot.slane %v382_v22, 4  ;;  %v7637_v12 = vrot.slane %v973_v31, 4  ;;  %v5833_v22 = vcombine.low %v7631_v5, %v7634_v6  ;;  %v7662_v31 = vld [vmem:[%s7501_s13 + $0x2c] sm:$0x1] }
  0x4e   : > { %6227 = vmatpush3.bf16.msra.mxu1 %v6935_v23  ;;  %v388_v23 = vshll.u32 %v326_v9, 16  ;;  %v981_v42 = vshrl.u32 %v5625_v24, 16  ;;  %v984_v47 = vshll.u32 %v5625_v24, 16  ;;  %v395_v58 = vrot.slane %v393_v49, 4 }
  0x4f   : > { %6228 = vmatprep.subr.bf16.mxu1 %v6938_v26  ;;  %v398_v3 = vrot.slane %v396_v55, 5  ;;  %v1008_v55 = vshll.u32 %v7631_v5, 16 }
  0x50   : > { %6117 = vmatpush3.bf16.msra.mxu0 %v6937_v25  ;;  %v7583_v25 = vld [vmem:[%s7501_s13 + $0x1c] sm:$0xf]  ;;  %v390_v36 = vrot.slane %v388_v23, 5  ;;  %v7653_v23 = vld [vmem:[%s7501_s13 + $0x28] sm:$0xf] }
  0x51   : > { %6118 = vmatprep.subr.bf16.mxu0 %v6940_v28  ;;  %v374_v28 = vrot.slane %v372_v18, 5  ;;  %v5832_v38 = vcombine.low %v5625_v24, %v7583_v25  ;;  %v399_v15 = vor.u32 %v398_v3, %v395_v58  ;;  %v6965_v18 = vld [vmem:[%s9438_s1 + $0x118] sm:$0xff]   ;;  %v6969_v24 = vld [vmem:[%s9438_s1 + $0x160] sm:$0xff]   ;;  %v6977_v3 = vld [vmem:[%s9438_s1 + $0x128] sm:$0xff]  }
  0x52   : > { %6229 = vmatpush3.bf16.msra.mxu1 %v6939_v27  ;;  %v5815_v27 = vcombine.low %v798_v14, %v801_v21  ;;  %v414_v21 = vrot.slane %v412_v4, 5 }
  0x53   : > { %6230 = vmatprep.subr.bf16.mxu1 %v6942_v30  ;;  %v729_v30 = vld [vmem:[%s7501_s13 + $0xc] sm:$0xe]  ;;  %v375_v35 = vor.u32 %v374_v28, %v371_v17  ;;  %v7643_v17 = vld [vmem:[%s7501_s13 + $0x24] sm:$0xf] }
  0x54   : > { %6119 = vmatpush3.bf16.msra.mxu0 %v6941_v29  ;;  %v380_v29 = vrot.slane %v378_v19, 5  ;;  %v5608_v43 = vrot.slane %v729_v30, 9  ;;  %v7648_v19 = vrot.slane %v984_v47, 5  ;;  %v731_v47 = vld [vmem:[%s7501_s13 + $0x24] sm:$0xe] }
  0x55   : > { %6328 = vmatprep.subr.bf16.mxu0 %v6945_v40  ;;  %v6957_v40 = vld [vmem:[%s9438_s1 + $0x150] sm:$0xff]   ;;  %v376_v46 = vrot.slane %v375_v35, 4  ;;  %v1005_v35 = vshrl.u32 %v7631_v5, 16 }
  0x56   : > { %6231 = vmatpush3.bf16.msra.mxu1 %v6943_v39  ;;  %v7602_v39 = vld [vmem:[%s7501_s13 + $0x1c] sm:$0xf]  ;;  %v385_v41 = vor.u32 %v384_v32, %v380_v29  ;;  %v805_v52 = vsel %vm7544_vm5, %v5608_v43, %v804_v44  ;;  %v6971_v32 = vld [vmem:[%s9438_s1 + $0x120] sm:$0xff]  }
  0x57   : > { %3365 = vmatmul.mubr.bf16.vlgmr.msra.gmra.mrb[0].mxu0 %v5783_v54  ;;  %v806_v54 = vrot.slane %v804_v44, 4  ;;  %v381_v57 = vsel %vm7532_vm4, %v376_v46, %v380_v29  ;;  %v402_v59 = vshll.u32 %v7602_v39, 16  ;;  %v406_v60 = vshrl.u32 %v7602_v39, 16 }
  0x58   : > { %6329 = vmatpush3.bf16.msra.mxu0 %v6947_v13  ;;  %v386_v51 = vrot.slane %v385_v41, 4  ;;  %v7639_v13 = vrot.slane %v981_v42, 4  ;;  %v5785_v28 = vcombine.low %v7593_v33, %v7602_v39  ;;  %v5609_v29 = vrot.slane %v730_v11, 9  ;;  %v7676_v41 = vld [vmem:[%s7501_s13 + $0x30] sm:$0xf] }
  0x59   : > { %3526 = vmatmul.mubr.bf16.vlgmr.msra.gmra.mrb[0].mxu1 %v5815_v27  ;;  %6330 = vmatprep.subr.bf16.mxu0 %v6951_v20  ;;  %v808_v2 = vsel %vm7544_vm5, %v806_v54, %v807_v48  ;;  %v404_v9 = vrot.slane %v402_v59, 5  ;;  %v408_v10 = vrot.slane %v406_v60, 4  ;;  %v400_v27 = vrot.slane %v399_v15, 4  ;;  %v7679_v42 = vld [vmem:[%s7501_s13 + $0x34] sm:$0xf]  ;;  %v6975_v48 = vld [vmem:[%s9438_s1 + $0x168] sm:$0xff]  }
  0x5a   : > { %3533 = vmatprep.mubr.bf16.mxu1 %v5832_v38  ;;  %v391_v62 = vsel %vm7532_vm4, %v386_v51, %v390_v36  ;;  %v5816_v8 = vcombine.low %v805_v52, %v808_v2  ;;  %v811_v30 = vrot.slane %v7602_v39, 5  ;;  %v814_v36 = vrot.slane %v7609_v45, 5  ;;  %v7699_v2 = vld [vmem:[%s7501_s13 + $0x30] sm:$0xf] }
  0x5b   : > { %v5800_v7 = vcombine.low %v381_v57, %v391_v62  ;;  %v409_v20 = vor.u32 %v408_v10, %v404_v9  ;;  %v417_v33 = vshrl.u32 %v7643_v17, 16  ;;  %v426_v45 = vshll.u32 %v7653_v23, 16 }
  0x5c   : > { %6331 = vmatpush3.bf16.msra.mxu0 %v6953_v34  ;;  %v812_v38 = vsel %vm7544_vm5, %v5609_v29, %v811_v30  ;;  %v813_v39 = vrot.slane %v811_v30, 4  ;;  %v430_v46 = vshrl.u32 %v7653_v23, 16  ;;  %v436_v54 = vshll.u32 %v7662_v31, 16  ;;  %v7724_v30 = vld [vmem:[%s7501_s13 + $0x3c] sm:$0xf] }
  0x5d   : > { %6332 = vmatprep.subr.bf16.mxu0 %v6957_v40  ;;  %3372 = vmatprep.mubr.bf16.mxu0 %v5800_v7  ;;  %v410_v34 = vrot.slane %v409_v20, 4  ;;  %v420_v40 = vshll.u32 %v7643_v17, 16  ;;  %v419_v44 = vrot.slane %v417_v33, 4  ;;  %v428_v57 = vrot.slane %v426_v45, 5  ;;  %v732_v33 = vld [vmem:[%s7501_s13 + $0x30] sm:$0xe] }
  0x5e   : > { %v815_v51 = vsel %vm7544_vm5, %v813_v39, %v814_v36  ;;  %v432_v58 = vrot.slane %v430_v46, 4  ;;  %v7693_v59 = vrot.slane %v1005_v35, 4  ;;  %v5786_v62 = vcombine.low %v7643_v17, %v7653_v23 }
  0x5f   : > { %3373 = vmatmul.mubr.bf16.gmra.mrb[4].mxu0 %v5784_v37  ;;  %v405_v37 = vsel %vm7532_vm4, %v400_v27, %v404_v9  ;;  %v415_v43 = vsel %vm7532_vm4, %v410_v34, %v414_v21  ;;  %v422_v52 = vrot.slane %v420_v40, 5  ;;  %v438_v5 = vrot.slane %v436_v54, 5  ;;  %v7707_v9 = vld [vmem:[%s7501_s13 + $0x34] sm:$0xf]  ;;  %v7714_v21 = vld [vmem:[%s7501_s13 + $0x38] sm:$0x1] }
  0x60   : > { %6333 = vmatpush3.bf16.msra.mxu0 %v6959_v56  ;;  %v5801_v49 = vcombine.low %v405_v37, %v415_v43  ;;  %v5817_v56 = vcombine.low %v812_v38, %v815_v51  ;;  %v433_v4 = vor.u32 %v432_v58, %v428_v57  ;;  %v5834_v7 = vcombine.low %v7676_v41, %v7679_v42  ;;  %v6980_v37 = vld [vmem:[%s9438_s1 + $0x1c0] sm:$0xff]  }
  0x61   : > { %3534 = vmatmul.mubr.bf16.gmra.mrb[4].mxu1 %v5816_v8  ;;  %6334 = vmatprep.subr.bf16.mxu0 %v6963_v61  ;;  %v423_v61 = vor.u32 %v422_v52, %v419_v44  ;;  %v5610_v8 = vrot.slane %v731_v47, 9  ;;  %v1029_v11 = vshrl.u32 %v7676_v41, 16  ;;  %v1032_v15 = vshll.u32 %v7676_v41, 16  ;;  %v7742_v47 = vld [vmem:[%s7501_s13 + $0x3c] sm:$0xf] }
  0x62   : > { %3541 = vmatprep.mubr.bf16.mxu1 %v5833_v22  ;;  %3380 = vmatprep.mubr.bf16.mxu0 %v5801_v49  ;;  %v818_v17 = vrot.slane %v7653_v23, 5  ;;  %v821_v20 = vrot.slane %v7662_v31, 5  ;;  %v441_v22 = vshrl.u32 %v7699_v2, 16  ;;  %v450_v23 = vshll.u32 %v7707_v9, 16 }
  0x63   : > { %v424_v10 = vrot.slane %v423_v61, 4  ;;  %v454_v36 = vshrl.u32 %v7707_v9, 16  ;;  %v460_v41 = vshll.u32 %v7714_v21, 16  ;;  %v7739_v43 = vrot.slane %v1008_v55, 5  ;;  %6440 = vmatprep.subr.bf16.mxu1 %v6980_v37  ;;  %v7755_v61 = vld [vmem:[%s7501_s13 + $0x40] sm:$0xf] }
  0x64   : > { %6335 = vmatpush3.bf16.msra.mxu0 %v6965_v18  ;;  %v434_v18 = vrot.slane %v433_v4, 4  ;;  %v820_v29 = vrot.slane %v818_v17, 4  ;;  %v443_v34 = vrot.slane %v441_v22, 4  ;;  %v452_v40 = vrot.slane %v450_v23, 5  ;;  %v6986_v23 = vld [vmem:[%s9438_s1 + $0x1c8] sm:$0xff]  }
  0x65   : > { %6336 = vmatprep.subr.bf16.mxu0 %v6969_v24  ;;  %v444_v24 = vshll.u32 %v7699_v2, 16  ;;  %v429_v27 = vsel %vm7532_vm4, %v424_v10, %v428_v57  ;;  %v456_v46 = vrot.slane %v454_v36, 4  ;;  %v7747_v49 = vrot.slane %v1029_v11, 4  ;;  %v733_v37 = vld [vmem:[%s7501_s13 + $0x3c] sm:$0xe] }
  0x66   : > { %v439_v31 = vsel %vm7532_vm4, %v434_v18, %v438_v5  ;;  %v822_v39 = vsel %vm7544_vm5, %v820_v29, %v821_v20  ;;  %v7749_v51 = vrot.slane %v1032_v15, 5  ;;  %v462_v54 = vrot.slane %v460_v41, 5  ;;  %v7783_v29 = vld [vmem:[%s7501_s13 + $0x48] sm:$0xf] }
  0x67   : > { %3381 = vmatmul.mubr.bf16.gmra.mrb[8].mxu0 %v5785_v28  ;;  %v819_v28 = vsel %vm7544_vm5, %v5610_v8, %v818_v17  ;;  %v446_v35 = vrot.slane %v444_v24, 5  ;;  %v5802_v38 = vcombine.low %v429_v27, %v439_v31  ;;  %v5611_v58 = vrot.slane %v732_v33, 9  ;;  %v7763_v8 = vld [vmem:[%s7501_s13 + $0x44] sm:$0x1]  ;;  %v7791_v33 = vld [vmem:[%s7501_s13 + $0x4c] sm:$0xf] }
  0x68   : > { %6337 = vmatpush3.bf16.msra.mxu0 %v6971_v32  ;;  %v7727_v32 = vld [vmem:[%s7501_s13 + $0x40] sm:$0xf]  ;;  %v5818_v44 = vcombine.low %v819_v28, %v822_v39  ;;  %v1053_v4 = vshrl.u32 %v7724_v30, 16  ;;  %v825_v5 = vrot.slane %v7707_v9, 5  ;;  %v468_v15 = vshll.u32 %v7742_v47, 16 }
  0x69   : > { %3542 = vmatmul.mubr.bf16.gmra.mrb[8].mxu1 %v5817_v56  ;;  %6338 = vmatprep.subr.bf16.mxu0 %v6975_v48  ;;  %v447_v45 = vor.u32 %v446_v35, %v443_v34  ;;  %v6981_v48 = vld [vmem:[%s9438_s1 + $0x180] sm:$0xff]   ;;  %v457_v56 = vor.u32 %v456_v46, %v452_v40  ;;  %v5835_v57 = vcombine.low %v7724_v30, %v7727_v32  ;;  %v474_v18 = vshll.u32 %v7755_v61, 16  ;;  %v7796_v41 = vld [vmem:[%s7501_s13 + $0x48] sm:$0xf] }
  0x6a   : > { %3549 = vmatprep.mubr.bf16.mxu1 %v5834_v7  ;;  %3388 = vmatprep.mubr.bf16.mxu0 %v5802_v38  ;;  %v828_v7 = vrot.slane %v7714_v21, 5  ;;  %v827_v17 = vrot.slane %v825_v5, 4  ;;  %v478_v20 = vshrl.u32 %v7755_v61, 16  ;;  %v6985_v21 = vld [vmem:[%s9438_s1 + $0x130] sm:$0xff]   ;;  %v470_v27 = vrot.slane %v468_v15, 5 }
  0x6b   : > { %v448_v55 = vrot.slane %v447_v45, 4  ;;  %6441 = vmatpush3.bf16.msra.mxu1 %v6981_v48  ;;  %v458_v11 = vrot.slane %v457_v56, 4  ;;  %v484_v28 = vshll.u32 %v7763_v8, 16  ;;  %v476_v35 = vrot.slane %v474_v18, 5  ;;  %v6987_v45 = vld [vmem:[%s9438_s1 + $0x188] sm:$0xff]   ;;  %v6991_v15 = vld [vmem:[%s9438_s1 + $0x190] sm:$0xff]  }
  0x6c   : > { %6339 = vmatpush3.bf16.msra.mxu0 %v6977_v3  ;;  %v5787_v3 = vcombine.low %v7699_v2, %v7707_v9  ;;  %v6983_v2 = vld [vmem:[%s9438_s1 + $0x170] sm:$0xff]   ;;  %v826_v9 = vsel %vm7544_vm5, %v5611_v58, %v825_v5  ;;  %v829_v34 = vsel %vm7544_vm5, %v827_v17, %v828_v7  ;;  %v480_v36 = vrot.slane %v478_v20, 4  ;;  %6442 = vmatprep.subr.bf16.mxu1 %v6986_v23  ;;  %v7843_v23 = vld [vmem:[%s7501_s13 + $0x58] sm:$0xf] }
  0x6d   : > { %v453_v10 = vsel %vm7532_vm4, %v448_v55, %v452_v40  ;;  %v463_v22 = vsel %vm7532_vm4, %v458_v11, %v462_v54  ;;  %6340 = vmatprep.subr.bf16.mxu0 %v6983_v2  ;;  %v1056_v38 = vshll.u32 %v7724_v30, 16  ;;  %v5819_v39 = vcombine.low %v826_v9, %v829_v34  ;;  %v7808_v56 = vld [vmem:[%s7501_s13 + $0x50] sm:$0x1]  ;;  %v8000_v48 = vld [vmem:[%s7501_s13 + $0x78] sm:$0xf] }
  0x6e   : > { %v5803_v31 = vcombine.low %v453_v10, %v463_v22  ;;  %v7804_v46 = vrot.slane %v1053_v4, 4  ;;  %v481_v54 = vor.u32 %v480_v36, %v476_v35  ;;  %v486_v55 = vrot.slane %v484_v28, 5  ;;  %v6990_v30 = vld [vmem:[%s9438_s1 + $0x1d0] sm:$0xff]  }
  0x6f   : > { %3389 = vmatmul.mubr.bf16.gmra.mrb[12].mxu0 %v5786_v62  ;;  %v465_v62 = vshrl.u32 %v7742_v47, 16  ;;  %v5836_v58 = vcombine.low %v7783_v29, %v7791_v33  ;;  %v5612_v5 = vrot.slane %v733_v37, 9  ;;  %v832_v4 = vrot.slane %v7755_v61, 5  ;;  %6443 = vmatpush3.bf16.msra.mxu1 %v6987_v45  ;;  %v734_v37 = vld [vmem:[%s7501_s13 + $0x48] sm:$0xe] }
  0x70   : > { %6341 = vmatpush3.bf16.msra.mxu0 %v6985_v21  ;;  %3396 = vmatprep.mubr.bf16.mxu0 %v5803_v31  ;;  %v482_v7 = vrot.slane %v481_v54, 4  ;;  %v5788_v10 = vcombine.low %v7742_v47, %v7755_v61  ;;  %v1077_v11 = vshrl.u32 %v7783_v29, 16  ;;  %v489_v47 = vshrl.u32 %v7796_v41, 16  ;;  %v7829_v61 = vld [vmem:[%s7501_s13 + $0x54] sm:$0xf]  ;;  %v6992_v21 = vld [vmem:[%s9438_s1 + $0x1d8] sm:$0xff]  }
  0x71   : > { %3550 = vmatmul.mubr.bf16.gmra.mrb[12].mxu1 %v5818_v44  ;;  %v467_v24 = vrot.slane %v465_v62, 4  ;;  %v7799_v44 = vld [vmem:[%s7501_s13 + $0x4c] sm:$0xf]  ;;  %v835_v62 = vrot.slane %v7763_v8, 5  ;;  %v834_v9 = vrot.slane %v832_v4, 4  ;;  %6444 = vmatprep.subr.bf16.mxu1 %v6990_v30  ;;  %v492_v17 = vshll.u32 %v7796_v41, 16 }
  0x72   : > { %3557 = vmatprep.mubr.bf16.mxu1 %v5835_v57  ;;  %v487_v8 = vsel %vm7532_vm4, %v482_v7, %v486_v55  ;;  %v498_v18 = vshll.u32 %v7799_v44, 16  ;;  %v502_v20 = vshrl.u32 %v7799_v44, 16  ;;  %v508_v28 = vshll.u32 %v7808_v56, 16  ;;  %v7850_v45 = vld [vmem:[%s7501_s13 + $0x54] sm:$0xf]  ;;  %v6993_v54 = vld [vmem:[%s9438_s1 + $0x198] sm:$0xff]  }
  0x73   : > { %v471_v40 = vor.u32 %v470_v27, %v467_v24  ;;  %v836_v24 = vsel %vm7544_vm5, %v834_v9, %v835_v62  ;;  %v491_v27 = vrot.slane %v489_v47, 4  ;;  %v494_v34 = vrot.slane %v492_v17, 5  ;;  %6445 = vmatpush3.bf16.msra.mxu1 %v6991_v15  ;;  %v6995_v55 = vld [vmem:[%s9438_s1 + $0x178] sm:$0xff]  }
  0x74   : > { %v504_v36 = vrot.slane %v502_v20, 4  ;;  %6446 = vmatprep.subr.bf16.mxu1 %v6992_v21  ;;  %v5613_v62 = vrot.slane %v734_v37, 9  ;;  %v839_v15 = vrot.slane %v7799_v44, 5  ;;  %6342 = vmatprep.subr.bf16.mxu0 %v6995_v55  ;;  %v842_v9 = vrot.slane %v7808_v56, 5  ;;  %v7872_v47 = vld [vmem:[%s7501_s13 + $0x5c] sm:$0x1] }
  0x75   : > { %v472_v57 = vrot.slane %v471_v40, 4  ;;  %v1080_v40 = vshll.u32 %v7783_v29, 16  ;;  %v495_v30 = vor.u32 %v494_v34, %v491_v27  ;;  %v6997_v29 = vld [vmem:[%s9438_s1 + $0x138] sm:$0xff]   ;;  %v6998_v56 = vld [vmem:[%s9438_s1 + $0x1e0] sm:$0xff]  }
  0x76   : > { %v841_v17 = vrot.slane %v839_v15, 4  ;;  %6343 = vmatpush3.bf16.msra.mxu0 %v6997_v29  ;;  %v1101_v29 = vshrl.u32 %v7829_v61, 16 }
  0x77   : > { %3397 = vmatmul.mubr.bf16.gmra.mrb[16].mxu0 %v5787_v3  ;;  %v477_v2 = vsel %vm7532_vm4, %v472_v57, %v476_v35  ;;  %v833_v3 = vsel %vm7544_vm5, %v5612_v5, %v832_v4  ;;  %v500_v35 = vrot.slane %v498_v18, 5  ;;  %v7861_v5 = vld [vmem:[%s7501_s13 + $0x58] sm:$0xf]  ;;  %v7866_v4 = vrot.slane %v1077_v11, 4  ;;  %6447 = vmatpush3.bf16.msra.mxu1 %v6993_v54 }
  0x78   : > { %v5804_v22 = vcombine.low %v477_v2, %v487_v8  ;;  %v5820_v31 = vcombine.low %v833_v3, %v836_v24  ;;  %v496_v2 = vrot.slane %v495_v30, 4  ;;  %v513_v11 = vshrl.u32 %v7850_v45, 16  ;;  %6448 = vmatprep.subr.bf16.mxu1 %v6998_v56  ;;  %v7919_v56 = vld [vmem:[%s7501_s13 + $0x68] sm:$0x1] }
  0x79   : > { %3558 = vmatmul.mubr.bf16.gmra.mrb[16].mxu1 %v5819_v39  ;;  %v7846_v39 = vrot.slane %v1056_v38, 5  ;;  %v505_v57 = vor.u32 %v504_v36, %v500_v35  ;;  %v5837_v38 = vcombine.low %v7829_v61, %v7843_v23  ;;  %v840_v8 = vsel %vm7544_vm5, %v5613_v62, %v839_v15 }
  0x7a   : > { %3565 = vmatprep.mubr.bf16.mxu1 %v5836_v58  ;;  %3404 = vmatprep.mubr.bf16.mxu0 %v5804_v22  ;;  %v510_v58 = vrot.slane %v508_v28, 5  ;;  %v516_v18 = vshll.u32 %v7850_v45, 16  ;;  %v522_v20 = vshll.u32 %v7861_v5, 16  ;;  %v501_v21 = vsel %vm7532_vm4, %v496_v2, %v500_v35  ;;  %v7891_v28 = vld [vmem:[%s7501_s13 + $0x64] sm:$0xf] }
  0x7b   : > { %v506_v3 = vrot.slane %v505_v57, 4  ;;  %v515_v24 = vrot.slane %v513_v11, 4  ;;  %v526_v27 = vshrl.u32 %v7861_v5, 16  ;;  %v843_v36 = vsel %vm7544_vm5, %v841_v17, %v842_v9  ;;  %v6999_v2 = vld [vmem:[%s9438_s1 + $0x1a0] sm:$0xff]  }
  0x7c   : > { %v518_v37 = vrot.slane %v516_v18, 5  ;;  %v524_v54 = vrot.slane %v522_v20, 5  ;;  %v5789_v35 = vcombine.low %v7796_v41, %v7799_v44  ;;  %v5821_v55 = vcombine.low %v840_v8, %v843_v36  ;;  %v7912_v11 = vld [vmem:[%s7501_s13 + $0x64] sm:$0xf]  ;;  %v7929_v36 = vld [vmem:[%s7501_s13 + $0x6c] sm:$0xf]  ;;  %6449 = vmatpush3.bf16.msra.mxu1 %v6999_v2 }
  0x7d   : > { %v511_v22 = vsel %vm7532_vm4, %v506_v3, %v510_v58  ;;  %v528_v30 = vrot.slane %v526_v27, 4  ;;  %v532_v57 = vshll.u32 %v7872_v47, 16  ;;  %v7900_v58 = vld [vmem:[%s7501_s13 + $0x60] sm:$0xf]  ;;  %v1104_v62 = vshll.u32 %v7829_v61, 16 }
  0x7e   : > { %v5805_v34 = vcombine.low %v501_v21, %v511_v22  ;;  %v519_v15 = vor.u32 %v518_v37, %v515_v24  ;;  %v846_v17 = vrot.slane %v7861_v5, 5  ;;  %v849_v20 = vrot.slane %v7872_v47, 5  ;;  %v7932_v37 = vld [vmem:[%s7501_s13 + $0x70] sm:$0xf]  ;;  %v7945_v2 = vld [vmem:[%s7501_s13 + $0x6c] sm:$0xf] }
  0x7f   : > { %3405 = vmatmul.mubr.bf16.gmra.mrb[20].mxu0 %v5788_v10  ;;  %v7880_v10 = vld [vmem:[%s7501_s13 + $0x60] sm:$0xf]  ;;  %v529_v41 = vor.u32 %v528_v30, %v524_v54  ;;  %v534_v44 = vrot.slane %v532_v57, 5  ;;  %v537_v21 = vshrl.u32 %v7900_v58, 16  ;;  %v540_v22 = vshll.u32 %v7900_v58, 16  ;;  %9464 = vst [vmem:[#allocation9_spill] sm:$0xff] %v7932_v37 }
  0x80   : > { %3412 = vmatprep.mubr.bf16.mxu0 %v5805_v34  ;;  %v5838_v3 = vcombine.low %v7880_v10, %v7891_v28  ;;  %v520_v61 = vrot.slane %v519_v15, 4  ;;  %v1125_v8 = vshrl.u32 %v7880_v10, 16  ;;  %v546_v34 = vshll.u32 %v7912_v11, 16  ;;  %v7000_v57 = vld [vmem:[%s9438_s1 + $0x1e8] sm:$0xff]  }
  0x81   : > { %3566 = vmatmul.mubr.bf16.gmra.mrb[20].mxu1 %v5820_v31  ;;  %v735_v31 = vld [vmem:[%s7501_s13 + $0x54] sm:$0xe]  ;;  %v530_v18 = vrot.slane %v529_v41, 4  ;;  %v550_v30 = vshrl.u32 %v7912_v11, 16  ;;  %6450 = vmatprep.subr.bf16.mxu1 %v7000_v57  ;;  %v564_v57 = vshll.u32 %v7945_v2, 16 }
  0x82   : > { %3573 = vmatprep.mubr.bf16.mxu1 %v5837_v38  ;;  %v7902_v38 = vrot.slane %v1080_v40, 5  ;;  %v5614_v9 = vrot.slane %v735_v31, 9  ;;  %v525_v24 = vsel %vm7532_vm4, %v520_v61, %v524_v54  ;;  %v848_v31 = vrot.slane %v846_v17, 4  ;;  %v736_v54 = vld [vmem:[%s7501_s13 + $0x60] sm:$0xe] }
  0x83   : > { %v535_v47 = vsel %vm7532_vm4, %v530_v18, %v534_v44  ;;  %v5790_v44 = vcombine.low %v7850_v45, %v7861_v5  ;;  %v552_v18 = vrot.slane %v550_v30, 4  ;;  %v5839_v45 = vcombine.low %v7929_v36, %v7932_v37 }
  0x84   : > { %v847_v27 = vsel %vm7544_vm5, %v5614_v9, %v846_v17  ;;  %v5806_v15 = vcombine.low %v525_v24, %v535_v47  ;;  %v850_v41 = vsel %vm7544_vm5, %v848_v31, %v849_v20  ;;  %v556_v9 = vshll.u32 %v7919_v56, 16 }
  0x85   : > { %v5822_v61 = vcombine.low %v847_v27, %v850_v41  ;;  %v7954_v20 = vrot.slane %v1104_v62, 5  ;;  %v1128_v24 = vshll.u32 %v7880_v10, 16  ;;  %v5615_v5 = vrot.slane %v736_v54, 9  ;;  %v7960_v27 = vld [vmem:[%s7501_s13 + $0x70] sm:$0xf] }
  0x86   : > { %v558_v31 = vrot.slane %v556_v9, 5  ;;  %v853_v62 = vrot.slane %v7912_v11, 5  ;;  %v856_v10 = vrot.slane %v7919_v56, 5  ;;  %v570_v9 = vshll.u32 %v7960_v27, 16 }
  0x87   : > { %3413 = vmatmul.mubr.bf16.gmra.mrb[24].mxu0 %v5789_v35  ;;  %v539_v35 = vrot.slane %v537_v21, 4  ;;  %v7001_v21 = vld [vmem:[%s9438_s1 + $0x1a8] sm:$0xff]  }
  0x88   : > { %3420 = vmatprep.mubr.bf16.mxu0 %v5806_v15  ;;  %6451 = vmatpush3.bf16.msra.mxu1 %v7001_v21  ;;  %v7004_v15 = vld [vmem:[%s9438_s1 + $0x1f0] sm:$0xff]   ;;  %v854_v56 = vsel %vm7544_vm5, %v5615_v5, %v853_v62  ;;  %v855_v41 = vrot.slane %v853_v62, 4  ;;  %v7006_v5 = vld [vmem:[%s9438_s1 + $0x1f8] sm:$0xff]   ;;  %v572_v40 = vrot.slane %v570_v9, 5 }
  0x89   : > { %3574 = vmatmul.mubr.bf16.gmra.mrb[24].mxu1 %v5821_v55  ;;  %v542_v55 = vrot.slane %v540_v22, 5  ;;  %v7952_v22 = vrot.slane %v1101_v29, 4  ;;  %6452 = vmatprep.subr.bf16.mxu1 %v7004_v15  ;;  %v8007_v15 = vld [vmem:[%s7501_s13 + $0x7c] sm:$0xf] }
  0x8a   : > { %3581 = vmatprep.mubr.bf16.mxu1 %v5838_v3  ;;  %v548_v3 = vrot.slane %v546_v34, 5  ;;  %v857_v29 = vsel %vm7544_vm5, %v855_v41, %v856_v10  ;;  %v7007_v9 = vld [vmem:[%s9438_s1 + $0x1b8] sm:$0xff]  }
  0x8b   : > { %v543_v17 = vor.u32 %v542_v55, %v539_v35  ;;  %v7962_v35 = vrot.slane %v1125_v8, 4  ;;  %v7968_v55 = vld [vmem:[%s7501_s13 + $0x74] sm:$0x1]  ;;  %v561_v8 = vshrl.u32 %v7945_v2, 16 }
  0x8c   : > { %v553_v47 = vor.u32 %v552_v18, %v548_v3 }
  0x8d   : > { %v544_v34 = vrot.slane %v543_v17, 4  ;;  %v7005_v17 = vld [vmem:[%s9438_s1 + $0x1b0] sm:$0xff]   ;;  %v563_v21 = vrot.slane %v561_v8, 4  ;;  %v5823_v8 = vcombine.low %v854_v56, %v857_v29  ;;  %v860_v56 = vrot.slane %v7960_v27, 5 }
  0x8e   : > { %v554_v54 = vrot.slane %v553_v47, 4  ;;  %v580_v47 = vshll.u32 %v7968_v55, 16  ;;  %6453 = vmatpush3.bf16.msra.mxu1 %v7005_v17 }
  0x8f   : > { %3421 = vmatmul.mubr.bf16.gmra.mrb[28].mxu0 %v5790_v44  ;;  %v549_v30 = vsel %vm7532_vm4, %v544_v34, %v548_v3  ;;  %v574_v3 = vshrl.u32 %v7960_v27, 16  ;;  %v7982_v44 = vld [vmem:[%s7501_s13 + $0x78] sm:$0xf]  ;;  %v566_v34 = vrot.slane %v564_v57, 5  ;;  %6454 = vmatprep.subr.bf16.mxu1 %v7006_v5  ;;  %v8032_v5 = vld [vmem:[%s7501_s13 + $0x84] sm:$0xf] }
  0x90   : > { %v559_v18 = vsel %vm7532_vm4, %v554_v54, %v558_v31  ;;  %v8002_v31 = vrot.slane %v1128_v24, 5  ;;  %v5791_v54 = vcombine.low %v7900_v58, %v7912_v11  ;;  %v582_v41 = vrot.slane %v580_v47, 5  ;;  %v8016_v24 = vld [vmem:[%s9438_s1 + $0x200] sm:$0xff]  }
  0x91   : > { %3582 = vmatmul.mubr.bf16.gmra.mrb[28].mxu1 %v5822_v61  ;;  %v7985_v61 = vld [vmem:[%s7501_s13 + $0x7c] sm:$0xf]  ;;  %v5807_v62 = vcombine.low %v549_v30, %v559_v18  ;;  %v576_v7 = vrot.slane %v574_v3, 4  ;;  %v567_v57 = vor.u32 %v566_v34, %v563_v21  ;;  %v1149_v30 = vshrl.u32 %v7929_v36, 16  ;;  %v335_v21 = vld [vmem:[%s7501_s13 + $0x80] sm:$0x1]  ;;  %6760 = vmatprep.subr.bf16.mxu0 %v8016_v24 }
  0x92   : > { %3589 = vmatprep.mubr.bf16.mxu1 %v5839_v45  ;;  %9465 = vst [vmem:[#allocation10_spill] sm:$0xff] %v7985_v61  ;;  %v737_v45 = vld [vmem:[%s7501_s13 + $0x6c] sm:$0xe]  ;;  %v5840_v11 = vcombine.low %v7982_v44, %v7985_v61  ;;  %v863_v18 = vrot.slane %v7968_v55, 5  ;;  %6455 = vmatpush3.bf16.msra.mxu1 %v7007_v9  ;;  %v5792_v9 = vcombine.low %v7945_v2, %v7960_v27  ;;  %v8128_v61 = vld [vmem:[%s7501_s13 + $0x9c] sm:$0xf] }
  0x93   : > { %3428 = vmatprep.mubr.bf16.mxu0 %v5807_v62  ;;  %v577_v10 = vor.u32 %v576_v7, %v572_v40  ;;  %v568_v58 = vrot.slane %v567_v57, 4  ;;  %v5616_v29 = vrot.slane %v737_v45, 9  ;;  %v1152_v7 = vshll.u32 %v7929_v36, 16  ;;  %v8035_v62 = vld [vmem:[%s7501_s13 + $0x88] sm:$0xf] }
  0x94   : > { %v862_v45 = vrot.slane %v860_v56, 4  ;;  %v585_v36 = vshrl.u32 %v8000_v48, 16  ;;  %9466 = vst [vmem:[#allocation11_spill] sm:$0xff] %v8035_v62 }
  0x95   : > { %v578_v17 = vrot.slane %v577_v10, 4  ;;  %v573_v34 = vsel %vm7532_vm4, %v568_v58, %v572_v40  ;;  %v861_v47 = vsel %vm7544_vm5, %v5616_v29, %v860_v56  ;;  %v594_v40 = vshll.u32 %v8007_v15, 16  ;;  %v738_v29 = vld [vmem:[%s7501_s13 + $0x78] sm:$0xe] }
  0x96   : > { %v864_v10 = vsel %vm7544_vm5, %v862_v45, %v863_v18  ;;  %v587_v58 = vrot.slane %v585_v36, 4  ;;  %v8050_v14 = vrot.slane %v1152_v7, 5  ;;  %v1173_v18 = vshrl.u32 %v7982_v44, 16 }
  0x97   : > { %3429 = vmatmul.mubr.bf16.gmra.mrb[32].mxu0 %v5791_v54  ;;  %v583_v55 = vsel %vm7532_vm4, %v578_v17, %v582_v41  ;;  %v588_v54 = vshll.u32 %v8000_v48, 16  ;;  %v5824_v56 = vcombine.low %v861_v47, %v864_v10  ;;  %v596_v52 = vrot.slane %v594_v40, 5  ;;  %v8046_v41 = vld [vmem:[%s7501_s13 + $0x84] sm:$0xf] }
  0x98   : > { %v5808_v57 = vcombine.low %v573_v34, %v583_v55  ;;  %v8048_v17 = vrot.slane %v1149_v30, 4  ;;  %v8056_v34 = vld [vmem:[%s7501_s13 + $0x88] sm:$0xf]  ;;  %v5841_v55 = vcombine.low %v8032_v5, %v8035_v62  ;;  %v5617_v7 = vrot.slane %v738_v29, 9  ;;  %v739_v30 = vld [vmem:[%s7501_s13 + $0x84] sm:$0xe] }
  0x99   : > { %3590 = vmatmul.mubr.bf16.gmra.mrb[32].mxu1 %v5823_v8  ;;  %v598_v8 = vshrl.u32 %v8007_v15, 16  ;;  %v590_v3 = vrot.slane %v588_v54, 5  ;;  %v1176_v54 = vshll.u32 %v7982_v44, 16  ;;  %v867_v40 = vrot.slane %v8007_v15, 5  ;;  %v8167_v62 = vld [vmem:[%s7501_s13 + $0xa8] sm:$0xf] }
  0x9a   : > { %3597 = vmatprep.mubr.bf16.mxu1 %v5840_v11  ;;  %v604_v11 = vshll.u32 %v335_v21, 16  ;;  %3436 = vmatprep.mubr.bf16.mxu0 %v5808_v57  ;;  %v870_v57 = vrot.slane %v335_v21, 5  ;;  %v612_v10 = vshll.u32 %v8046_v41, 16 }
  0x9b   : > { %v600_v60 = vrot.slane %v598_v8, 4  ;;  %v591_v45 = vor.u32 %v590_v3, %v587_v58  ;;  %v8064_v8 = vld [vmem:[%s7501_s13 + $0x8c] sm:$0x1]  ;;  %v868_v44 = vsel %vm7544_vm5, %v5617_v7, %v867_v40  ;;  %v869_v3 = vrot.slane %v867_v40, 4  ;;  %v8082_v40 = vld [vmem:[%s7501_s13 + $0x94] sm:$0xf] }
  0x9c   : > { %v606_v36 = vrot.slane %v604_v11, 5  ;;  %v618_v58 = vshll.u32 %v8056_v34, 16  ;;  %9467 = vst [vmem:[#allocation12_spill] sm:$0xff] %v8082_v40 }
  0x9d   : > { %v601_v47 = vor.u32 %v600_v60, %v596_v52  ;;  %v592_v2 = vrot.slane %v591_v45, 4  ;;  %v609_v60 = vshrl.u32 %v8046_v41, 16 }
  0x9e   : > { %v620_v7 = vrot.slane %v618_v58, 5 }
  0x9f   : > { %v602_v27 = vrot.slane %v601_v47, 4  ;;  %3437 = vmatmul.mubr.bf16.gmra.mrb[36].mxu0 %v5792_v9  ;;  %v597_v11 = vsel %vm7532_vm4, %v592_v2, %v596_v52  ;;  %v611_v29 = vrot.slane %v609_v60, 4  ;;  %v8077_v9 = vld [vmem:[%s7501_s13 + $0x90] sm:$0xf]  ;;  %v871_v47 = vsel %vm7544_vm5, %v869_v3, %v870_v57 }
  0xa0   : > { %v5825_v52 = vcombine.low %v868_v44, %v871_v47  ;;  %v8088_v60 = vrot.slane %v1176_v54, 5  ;;  %v8093_v3 = vld [vmem:[%s7501_s13 + $0x90] sm:$0xf]  ;;  %v5842_v44 = vcombine.low %v8077_v9, %v8082_v40  ;;  %v1200_v54 = vshll.u32 %v8032_v5, 16 }
  0xa1   : > { %3598 = vmatmul.mubr.bf16.gmra.mrb[36].mxu1 %v5824_v56  ;;  %v607_v21 = vsel %vm7532_vm4, %v602_v27, %v606_v36  ;;  %v622_v56 = vshrl.u32 %v8056_v34, 16  ;;  %v628_v36 = vshll.u32 %v8064_v8, 16  ;;  %v8086_v27 = vrot.slane %v1173_v18, 4 }
  0xa2   : > { %3605 = vmatprep.mubr.bf16.mxu1 %v5841_v55  ;;  %v5809_v45 = vcombine.low %v597_v11, %v607_v21  ;;  %v614_v55 = vrot.slane %v612_v10, 5  ;;  %9469 = vst [vmem:[#allocation14_spill] sm:$0xff] %v8088_v60  ;;  %v5793_v11 = vcombine.low %v8000_v48, %v8007_v15  ;;  %v5618_v21 = vrot.slane %v739_v30, 9  ;;  %v8104_v15 = vld [vmem:[%s7501_s13 + $0x98] sm:$0x1] }
  0xa3   : > { %v624_v2 = vrot.slane %v622_v56, 4  ;;  %9468 = vst [vmem:[#allocation13_spill] sm:$0xff] %v8086_v27  ;;  %v630_v58 = vrot.slane %v628_v36, 5  ;;  %v8098_v56 = vld [vmem:[%s7501_s13 + $0x94] sm:$0xf]  ;;  %v1197_v18 = vshrl.u32 %v8032_v5, 16 }
  0xa4   : > { %3444 = vmatprep.mubr.bf16.mxu0 %v5809_v45  ;;  %v615_v57 = vor.u32 %v614_v55, %v611_v29  ;;  %v874_v48 = vrot.slane %v8056_v34, 5  ;;  %v877_v47 = vrot.slane %v8064_v8, 5  ;;  %v633_v30 = vshrl.u32 %v8093_v3, 16  ;;  %v740_v8 = vld [vmem:[%s7501_s13 + $0x90] sm:$0xe] }
  0xa5   : > { %v625_v10 = vor.u32 %v624_v2, %v620_v7  ;;  %v636_v55 = vshll.u32 %v8093_v3, 16  ;;  %v8140_v60 = vld [vmem:[%s7501_s13 + $0xa0] sm:$0xf] }
  0xa6   : > { %v616_v45 = vrot.slane %v615_v57, 4  ;;  %v875_v5 = vsel %vm7544_vm5, %v5618_v21, %v874_v48  ;;  %v876_v36 = vrot.slane %v874_v48, 4  ;;  %v642_v57 = vshll.u32 %v8098_v56, 16 }
  0xa7   : > { %v626_v29 = vrot.slane %v625_v10, 4  ;;  %3445 = vmatmul.mubr.bf16.gmra.mrb[40].mxu0 %v5793_v11  ;;  %v8118_v10 = vld [vmem:[%s7501_s13 + $0xa0] sm:$0xf]  ;;  %v635_v11 = vrot.slane %v633_v30, 4  ;;  %v638_v1 = vrot.slane %v636_v55, 5  ;;  %v652_v48 = vshll.u32 %v8104_v15, 16 }
  0xa8   : > { %v621_v2 = vsel %vm7532_vm4, %v616_v45, %v620_v7  ;;  %v646_v7 = vshrl.u32 %v8098_v56, 16  ;;  %v644_v21 = vrot.slane %v642_v57, 5  ;;  %v8133_v30 = vrot.slane %v1200_v54, 5 }
  0xa9   : > { %3606 = vmatmul.mubr.bf16.gmra.mrb[40].mxu1 %v5825_v52  ;;  %v8115_v52 = vld [vmem:[%s7501_s13 + $0x9c] sm:$0xf]  ;;  %v631_v26 = vsel %vm7532_vm4, %v626_v29, %v630_v58  ;;  %v639_v37 = vor.u32 %v638_v1, %v635_v11  ;;  %v8131_v29 = vrot.slane %v1197_v18, 4  ;;  %v5619_v57 = vrot.slane %v740_v8, 9  ;;  %v338_v11 = vld [vmem:[%s7501_s13 + $0xa4] sm:$0x1] }
  0xaa   : > { %3613 = vmatprep.mubr.bf16.mxu1 %v5842_v44  ;;  %v5810_v45 = vcombine.low %v621_v2, %v631_v26  ;;  %v878_v44 = vsel %vm7544_vm5, %v876_v36, %v877_v47  ;;  %v648_v58 = vrot.slane %v646_v7, 4  ;;  %9471 = vst [vmem:[#allocation16_spill] sm:$0xff] %v8133_v30  ;;  %v5794_v26 = vcombine.low %v8046_v41, %v8056_v34 }
  0xab   : > { %v5826_v27 = vcombine.low %v875_v5, %v878_v44  ;;  %9470 = vst [vmem:[#allocation15_spill] sm:$0xff] %v8131_v29  ;;  %v654_v47 = vrot.slane %v652_v48, 5  ;;  %v640_v55 = vrot.slane %v639_v37, 4  ;;  %v5843_v36 = vcombine.low %v8115_v52, %v8118_v10 }
  0xac   : > { %3452 = vmatprep.mubr.bf16.mxu0 %v5810_v45  ;;  %v649_v2 = vor.u32 %v648_v58, %v644_v21  ;;  %v1221_v1 = vshrl.u32 %v8077_v9, 16  ;;  %v1224_v18 = vshll.u32 %v8077_v9, 16  ;;  %v881_v54 = vrot.slane %v8098_v56, 5  ;;  %v8156_v45 = vld [vmem:[%s7501_s13 + $0xa8] sm:$0xf] }
  0xad   : > { %v884_v5 = vrot.slane %v8104_v15, 5  ;;  %v645_v37 = vsel %vm7532_vm4, %v640_v55, %v644_v21  ;;  %v657_v34 = vshrl.u32 %v8128_v61, 16  ;;  %v660_v8 = vshll.u32 %v8128_v61, 16 }
  0xae   : > { %v650_v41 = vrot.slane %v649_v2, 4  ;;  %v882_v9 = vsel %vm7544_vm5, %v5619_v57, %v881_v54  ;;  %v883_v7 = vrot.slane %v881_v54, 4  ;;  %v666_v15 = vshll.u32 %v8140_v60, 16  ;;  %v741_v54 = vld [vmem:[%s7501_s13 + $0x9c] sm:$0xe] }
  0xaf   : > { %3453 = vmatmul.mubr.bf16.gmra.mrb[44].mxu0 %v5794_v26  ;;  %v659_v21 = vrot.slane %v657_v34, 4  ;;  %v662_v48 = vrot.slane %v660_v8, 5  ;;  %v676_v58 = vshll.u32 %v338_v11, 16  ;;  %v8161_v26 = vld [vmem:[%s7501_s13 + $0xac] sm:$0xf]  ;;  %v8169_v30 = vrot.slane %v1221_v1, 4 }
  0xb0   : > { %v655_v44 = vsel %vm7532_vm4, %v650_v41, %v654_v47  ;;  %9472 = vst [vmem:[#allocation17_spill] sm:$0xff] %v8161_v26  ;;  %v885_v2 = vsel %vm7544_vm5, %v883_v7, %v884_v5  ;;  %v8173_v34 = vld [vmem:[%s7501_s13 + $0xac] sm:$0xf]  ;;  %v8175_v8 = vrot.slane %v1224_v18, 5  ;;  %v1245_v18 = vshrl.u32 %v8115_v52, 16 }
  0xb1   : > { %3614 = vmatmul.mubr.bf16.gmra.mrb[44].mxu1 %v5826_v27  ;;  %v670_v27 = vshrl.u32 %v8140_v60, 16  ;;  %v5811_v55 = vcombine.low %v645_v37, %v655_v44  ;;  %v5827_v47 = vcombine.low %v882_v9, %v885_v2  ;;  %v663_v41 = vor.u32 %v662_v48, %v659_v21 }
  0xb2   : > { %3621 = vmatprep.mubr.bf16.mxu1 %v5843_v36  ;;  %v668_v36 = vrot.slane %v666_v15, 5  ;;  %9473 = vst [vmem:[#allocation18_spill] sm:$0xff] %v8175_v8  ;;  %v5795_v37 = vcombine.low %v8093_v3, %v8098_v56  ;;  %v678_v7 = vrot.slane %v676_v58, 5  ;;  %v8180_v15 = vld [vmem:[%s7501_s13 + $0xb0] sm:$0x1]  ;;  %v5620_v9 = vrot.slane %v741_v54, 9 }
  0xb3   : > { %v672_v57 = vrot.slane %v670_v27, 4  ;;  %3460 = vmatprep.mubr.bf16.mxu0 %v5811_v55  ;;  %v664_v1 = vrot.slane %v663_v41, 4  ;;  %v5844_v27 = vcombine.low %v8156_v45, %v8161_v26  ;;  %v888_v44 = vrot.slane %v8140_v60, 5  ;;  %v5652_v54 = vld [vmem:[%s7501_s13 + $0xb8] sm:$0xf] }
  0xb4   : > { %v1248_v21 = vshll.u32 %v8115_v52, 16  ;;  %v891_v3 = vrot.slane %v338_v11, 5  ;;  %v681_v2 = vshrl.u32 %v8167_v62, 16  ;;  %v684_v11 = vshll.u32 %v8167_v62, 16  ;;  %v742_v41 = vld [vmem:[%s7501_s13 + $0xa8] sm:$0xe] }
  0xb5   : > { %v673_v5 = vor.u32 %v672_v57, %v668_v36  ;;  %v669_v56 = vsel %vm7532_vm4, %v664_v1, %v668_v36  ;;  %v889_v58 = vsel %vm7544_vm5, %v5620_v9, %v888_v44  ;;  %v890_v55 = vrot.slane %v888_v44, 4  ;;  %v8193_v57 = vld [vmem:[%s7501_s13 + $0xb4] sm:$0xf] }
  0xb6   : > { %v694_v36 = vshrl.u32 %v8173_v34, 16  ;;  %v683_v9 = vrot.slane %v681_v2, 4  ;;  %v8206_v29 = vrot.slane %v1245_v18, 4  ;;  %v8208_v40 = vrot.slane %v1248_v21, 5  ;;  %v8213_v8 = vld [vmem:[%s7501_s13 + $0xb4] sm:$0xf] }
  0xb7   : > { %v674_v48 = vrot.slane %v673_v5, 4  ;;  %3461 = vmatmul.mubr.bf16.gmra.mrb[48].mxu0 %v5795_v37  ;;  %v892_v1 = vsel %vm7544_vm5, %v890_v55, %v891_v3  ;;  %v700_v37 = vshll.u32 %v8180_v15, 16  ;;  %v5845_v44 = vcombine.low %v8193_v57, %v5652_v54 }
  0xb8   : > { %9474 = vst [vmem:[#allocation19_spill] sm:$0xff] %v8206_v29  ;;  %9475 = vst [vmem:[#allocation20_spill] sm:$0xff] %v8208_v40  ;;  %v1269_v18 = vshrl.u32 %v8156_v45, 16  ;;  %v1272_v21 = vshll.u32 %v8156_v45, 16  ;;  %v708_v45 = vshll.u32 %v8213_v8, 16 }
  0xb9   : > { %3622 = vmatmul.mubr.bf16.gmra.mrb[48].mxu1 %v5827_v47  ;;  %v679_v52 = vsel %vm7532_vm4, %v674_v48, %v678_v7  ;;  %v690_v47 = vshll.u32 %v8173_v34, 16  ;;  %v686_v7 = vrot.slane %v684_v11, 5  ;;  %v696_v48 = vrot.slane %v694_v36, 4  ;;  %v8217_v11 = vld [vmem:[%s7501_s13 + $0xb8] sm:$0xf] }
  0xba   : > { %3629 = vmatprep.mubr.bf16.mxu1 %v5844_v27  ;;  %v5812_v5 = vcombine.low %v669_v56, %v679_v52  ;;  %v5796_v56 = vcombine.low %v8128_v61, %v8140_v60  ;;  %v5828_v52 = vcombine.low %v889_v58, %v892_v1  ;;  %v702_v2 = vrot.slane %v700_v37, 5  ;;  %v743_v40 = vld [vmem:[%s7501_s13 + $0xb4] sm:$0xe] }
  0xbb   : > { %v692_v27 = vrot.slane %v690_v47, 5  ;;  %v687_v3 = vor.u32 %v686_v7, %v683_v9  ;;  %v5621_v47 = vrot.slane %v742_v41, 9  ;;  %v895_v36 = vrot.slane %v8173_v34, 5  ;;  %v340_v9 = vld [vmem:[%s7501_s13 + $0xbc] sm:$0x1] }
  0xbc   : > { %3468 = vmatprep.mubr.bf16.mxu0 %v5812_v5  ;;  %v898_v60 = vrot.slane %v8180_v15, 5  ;;  %v705_v58 = vshrl.u32 %v8213_v8, 16  ;;  %v714_v41 = vshll.u32 %v8217_v11, 16  ;;  %v8239_v29 = vrot.slane %v1269_v18, 4 }
  0xbd   : > { %v697_v55 = vor.u32 %v696_v48, %v692_v27  ;;  %v688_v5 = vrot.slane %v687_v3, 4  ;;  %v896_v54 = vsel %vm7544_vm5, %v5621_v47, %v895_v36  ;;  %v897_v1 = vrot.slane %v895_v36, 4 }
  0xbe   : > { %v707_v7 = vrot.slane %v705_v58, 4  ;;  %v718_v48 = vshrl.u32 %v8217_v11, 16  ;;  %v710_v47 = vrot.slane %v708_v45, 5  ;;  %v716_v36 = vrot.slane %v714_v41, 5  ;;  %9476 = vst [vmem:[#allocation21_spill] sm:$0xff] %v8239_v29 }
  0xbf   : > { %v698_v61 = vrot.slane %v697_v55, 4  ;;  %3469 = vmatmul.mubr.bf16.gmra.mrb[52].mxu0 %v5796_v56  ;;  %v693_v37 = vsel %vm7532_vm4, %v688_v5, %v692_v27  ;;  %v899_v55 = vsel %vm7544_vm5, %v897_v1, %v898_v60  ;;  %v5654_v56 = vld [vmem:[%s7501_s13 + $0xc4] sm:$0xf]  ;;  %v5797_v5 = vcombine.low %v8167_v62, %v8173_v34 }
  0xc0   : > { %v711_v58 = vor.u32 %v710_v47, %v707_v7  ;;  %v5622_v41 = vrot.slane %v743_v40, 9  ;;  %v8246_v18 = vrot.slane %v1272_v21, 5  ;;  %v1293_v27 = vshrl.u32 %v8193_v57, 16  ;;  %v8260_v47 = vld [vmem:[%s7501_s13 + $0x1c] sm:$0xf] }
  0xc1   : > { %3630 = vmatmul.mubr.bf16.gmra.mrb[52].mxu1 %v5828_v52  ;;  %v703_v15 = vsel %vm7532_vm4, %v698_v61, %v702_v2  ;;  %v5653_v52 = vld [vmem:[%s7501_s13 + $0xc0] sm:$0xf]  ;;  %v720_v2 = vrot.slane %v718_v48, 4  ;;  %v5829_v61 = vcombine.low %v896_v54, %v899_v55  ;;  %v905_v26 = vrot.slane %v340_v9, 5  ;;  %v8251_v54 = vld [vmem:[%s7501_s13 + $0x18] sm:$0xf] }
  0xc2   : > { %3637 = vmatprep.mubr.bf16.mxu1 %v5845_v44  ;;  %v5813_v3 = vcombine.low %v693_v37, %v703_v15  ;;  %v724_v44 = vshll.u32 %v340_v9, 16  ;;  %v5655_v37 = vld [vmem:[%s7501_s13 + $0x14] sm:$0x1]  ;;  %v5671_v15 = vld [vmem:[%s7501_s13 + $0xc] sm:$0xe]  ;;  %v5846_v45 = vcombine.low %v5653_v52, %v5654_v56  ;;  %v712_v48 = vrot.slane %v711_v58, 4 }
  0xc3   : > { %v721_v60 = vor.u32 %v720_v2, %v716_v36  ;;  %v976_v62 = vshll.u32 %v5655_v37, 16  ;;  %v5687_v34 = vrot.slane %v5671_v15, 9  ;;  %v9477_v52 = vrot.slane %v7528_v50, 5  ;;  %v5735_v15 = vld [vmem:[%s7501_s13 + $0x20] sm:$0x1] }
  0xc4   : > { %3476 = vmatprep.mubr.bf16.mxu0 %v5813_v3  ;;  %v726_v1 = vrot.slane %v724_v44, 5  ;;  %v902_v3 = vrot.slane %v8217_v11, 5  ;;  %v717_v7 = vsel %vm7532_vm4, %v712_v48, %v716_v36  ;;  %v1409_v44 = vrot.slane %v5655_v37, 5 }
  0xc5   : > { %v722_v29 = vrot.slane %v721_v60, 4  ;;  %v1408_v55 = vrot.slane %v9477_v52, 4  ;;  %v978_v56 = vrot.slane %v976_v62, 5  ;;  %v9478_v2 = vmov %v9477_v52 }
  0xc6   : > { %v903_v40 = vsel %vm7544_vm5, %v5622_v41, %v902_v3  ;;  %v904_v21 = vrot.slane %v902_v3, 4  ;;  %v1407_v36 = vsel %vm7544_vm5, %v5687_v34, %v9478_v2  ;;  %v1566_v60 = vshrl.u32 %v8251_v54, 16  ;;  %v5672_v41 = vld [vmem:[%s7501_s13 + $0x18] sm:$0xe]  ;;  %v5656_v3 = vld [vmem:[%s7501_s13 + $0x20] sm:$0x1] }
  0xc7   : > { %3477 = vmatmul.mubr.bf16.gmra.mrb[56].mxu0 %v5797_v5  ;;  %v727_v9 = vsel %vm7532_vm4, %v722_v29, %v726_v1  ;;  %v1569_v5 = vshll.u32 %v8251_v54, 16  ;;  %v5798_v29 = vcombine.low %v8213_v8, %v8217_v11  ;;  %v1410_v50 = vsel %vm7544_vm5, %v1408_v55, %v1409_v44  ;;  %v7112_v55 = vld [vmem:[%s7501_s13 + $0x1c] sm:$0xf] }
  0xc8   : > { %v906_v58 = vsel %vm7544_vm5, %v904_v21, %v905_v26  ;;  %v979_v37 = vsel %vm7532_vm4, %v7637_v12, %v978_v56  ;;  %v1575_v1 = vshll.u32 %v8260_v47, 16  ;;  %v1568_v8 = vrot.slane %v1566_v60, 4 }
  0xc9   : > { %3638 = vmatmul.mubr.bf16.gmra.mrb[56].mxu1 %v5829_v61  ;;  %v5814_v61 = vcombine.low %v717_v7, %v727_v9  ;;  %v5830_v26 = vcombine.low %v903_v40, %v906_v58  ;;  %v1571_v11 = vrot.slane %v1569_v5, 5  ;;  %v5863_v62 = vcombine.low %v1407_v36, %v1410_v50  ;;  %v8297_v36 = vld [vmem:[%s7501_s13 + $0x24] sm:$0xf]  ;;  %v8302_v50 = vld [vmem:[%s7501_s13 + $0x28] sm:$0xf] }
  0xca   : > { %3645 = vmatprep.mubr.bf16.mxu1 %v5846_v45  ;;  %v9479_v45 = vsel %vm7532_vm4, %v7571_v16, %v7548_v0  ;;  %v1577_v34 = vrot.slane %v1575_v1, 5  ;;  %v1579_v7 = vshrl.u32 %v8260_v47, 16  ;;  %v1585_v12 = vshll.u32 %v5735_v15, 16 }
  0xcb   : > { %3484 = vmatprep.mubr.bf16.mxu0 %v5814_v61  ;;  %v8287_v48 = vcombine.low %v9479_v45, %v979_v37  ;;  %v1572_v21 = vor.u32 %v1571_v11, %v1568_v8  ;;  %v5879_v40 = vcombine.low %v8251_v54, %v8260_v47  ;;  %v5688_v52 = vrot.slane %v5672_v41, 9  ;;  %v5736_v37 = vld [vmem:[%s7501_s13 + $0x2c] sm:$0x1] }
  0xcc   : > { %v1413_v9 = vrot.slane %v7112_v55, 5  ;;  %v1581_v0 = vrot.slane %v1579_v7, 4  ;;  %v1416_v16 = vrot.slane %v5656_v3, 5  ;;  %v987_v56 = vor.u32 %v7648_v19, %v7639_v13 }
  0xcd   : > { %v990_v2 = vshll.u32 %v7112_v55, 16  ;;  %v1573_v44 = vrot.slane %v1572_v21, 4  ;;  %v1587_v61 = vrot.slane %v1585_v12, 5  ;;  %v9480_v15 = vshrl.u32 %v7583_v25, 16  ;;  %v5673_v55 = vld [vmem:[%s7501_s13 + $0x24] sm:$0xe] }
  0xce   : > { %v1415_v58 = vrot.slane %v1413_v9, 4  ;;  %v1582_v47 = vor.u32 %v1581_v0, %v1577_v34  ;;  %v988_v60 = vrot.slane %v987_v56, 4  ;;  %v1000_v41 = vshll.u32 %v5656_v3, 16 }
  0xcf   : > { %v996_v54 = vrot.slane %v9480_v15, 4  ;;  %3485 = vmatmul.mubr.bf16.gmra.mrb[60].mxu0 %v5798_v29  ;;  %v992_v5 = vrot.slane %v990_v2, 5  ;;  %v1578_v13 = vsel %vm7532_vm4, %v1573_v44, %v1577_v34  ;;  %v1414_v19 = vsel %vm7544_vm5, %v5688_v52, %v1413_v9  ;;  %v5657_v2 = vld [vmem:[%s7501_s13 + $0x2c] sm:$0x1] }
  0xd0   : > { %3686 = vmatprep.mubr.bf16.mxu0 %v5863_v62  ;;  %v1590_v1 = vshrl.u32 %v8297_v36, 16  ;;  %v1593_v25 = vshll.u32 %v8297_v36, 16  ;;  %v1583_v29 = vrot.slane %v1582_v47, 4  ;;  %v1002_v11 = vrot.slane %v1000_v41, 5  ;;  %v7113_v41 = vld [vmem:[%s7501_s13 + $0x28] sm:$0xf] }
  0xd1   : > { %3646 = vmatmul.mubr.bf16.gmra.mrb[60].mxu1 %v5830_v26  ;;  %v1417_v26 = vsel %vm7544_vm5, %v1415_v58, %v1416_v16  ;;  %v993_v45 = vsel %vm7532_vm4, %v988_v60, %v992_v5  ;;  %v997_v8 = vor.u32 %v996_v54, %v992_v5  ;;  %v1599_v34 = vshll.u32 %v8302_v50, 16  ;;  %v7011_v54 = vld [vmem:[%s9438_s1 + $0x208] sm:$0xff]  }
  0xd2   : > { %v1592_v3 = vrot.slane %v1590_v1, 4  ;;  %v1595_v62 = vrot.slane %v1593_v25, 5  ;;  %v1588_v7 = vsel %vm7532_vm4, %v1583_v29, %v1587_v61  ;;  %v1603_v21 = vshrl.u32 %v8302_v50, 16  ;;  %v8336_v25 = vld [vmem:[%s7501_s13 + $0x34] sm:$0xf] }
  0xd3   : > { %v998_v12 = vrot.slane %v997_v8, 4  ;;  %v1609_v52 = vshll.u32 %v5736_v37, 16  ;;  %v5895_v9 = vcombine.low %v1578_v13, %v1588_v7  ;;  %v5864_v0 = vcombine.low %v1414_v19, %v1417_v26 }
  0xd4   : > { %v1596_v16 = vor.u32 %v1595_v62, %v1592_v3  ;;  %v1601_v56 = vrot.slane %v1599_v34, 5  ;;  %v1605_v58 = vrot.slane %v1603_v21, 4  ;;  %v5880_v61 = vcombine.low %v8297_v36, %v8302_v50  ;;  %v8333_v50 = vld [vmem:[%s7501_s13 + $0x30] sm:$0xf] }
  0xd5   : > { %v1003_v44 = vsel %vm7532_vm4, %v998_v12, %v1002_v11  ;;  %v1611_v15 = vrot.slane %v1609_v52, 5  ;;  %3847 = vmatprep.mubr.bf16.mxu1 %v5895_v9  ;;  %v5689_v5 = vrot.slane %v5673_v55, 9  ;;  %v1420_v13 = vrot.slane %v7113_v41, 5  ;;  %v5674_v9 = vld [vmem:[%s7501_s13 + $0x30] sm:$0xe] }
  0xd6   : > { %v5848_v47 = vcombine.low %v993_v45, %v1003_v44  ;;  %v1597_v60 = vrot.slane %v1596_v16, 4  ;;  %v1606_v19 = vor.u32 %v1605_v58, %v1601_v56  ;;  %v1423_v37 = vrot.slane %v5657_v2, 5  ;;  %v5658_v44 = vld [vmem:[%s7501_s13 + $0x38] sm:$0x1] }
  0xd7   : > { %3687 = vmatmul.mubr.bf16.vlgmr.msra.gmra.mrb[64].mxu0 %v8287_v48  ;;  %v1011_v1 = vor.u32 %v7739_v43, %v7693_v59  ;;  %v1014_v36 = vshll.u32 %v7113_v41, 16  ;;  %v1421_v48 = vsel %vm7544_vm5, %v5689_v5, %v1420_v13  ;;  %v9481_v26 = vshrl.u32 %v7634_v6, 16  ;;  %v5737_v59 = vld [vmem:[%s7501_s13 + $0x38] sm:$0x1]  ;;  %v7014_v43 = vld [vmem:[%s9438_s1 + $0x210] sm:$0xff]  }
  0xd8   : > { %6761 = vmatpush3.bf16.msra.mxu0 %v8016_v24  ;;  %3694 = vmatprep.mubr.bf16.mxu0 %v5864_v0  ;;  %v1602_v29 = vsel %vm7532_vm4, %v1597_v60, %v1601_v56  ;;  %v1607_v8 = vrot.slane %v1606_v19, 4  ;;  %v1024_v3 = vshll.u32 %v5657_v2, 16  ;;  %v1614_v34 = vshrl.u32 %v8333_v50, 16 }
  0xd9   : > { %3848 = vmatmul.mubr.bf16.vlgmr.msra.gmra.mrb[64].mxu1 %v5879_v40  ;;  %v1422_v40 = vrot.slane %v1420_v13, 4  ;;  %v1020_v45 = vrot.slane %v9481_v26, 4  ;;  %v1012_v11 = vrot.slane %v1011_v1, 4  ;;  %v1016_v24 = vrot.slane %v1014_v36, 5  ;;  %6762 = vmatprep.subr.bf16.mxu0 %v7011_v54  ;;  %v7114_v1 = vld [vmem:[%s7501_s13 + $0x34] sm:$0xf] }
  0xda   : > { %v1617_v6 = vshll.u32 %v8333_v50, 16  ;;  %v1623_v7 = vshll.u32 %v8336_v25, 16  ;;  %v1612_v12 = vsel %vm7532_vm4, %v1607_v8, %v1611_v15  ;;  %v1026_v16 = vrot.slane %v1024_v3, 5  ;;  %v7017_v15 = vld [vmem:[%s9438_s1 + $0x218] sm:$0xff]   ;;  %v8379_v3 = vld [vmem:[%s7501_s13 + $0x40] sm:$0xf] }
  0xdb   : > { %v1424_v62 = vsel %vm7544_vm5, %v1422_v40, %v1423_v37  ;;  %v1017_v52 = vsel %vm7532_vm4, %v1012_v11, %v1016_v24  ;;  %v1021_v55 = vor.u32 %v1020_v45, %v1016_v24  ;;  %v5896_v0 = vcombine.low %v1602_v29, %v1612_v12 }
  0xdc   : > { %v5865_v21 = vcombine.low %v1421_v48, %v1424_v62  ;;  %v1616_v56 = vrot.slane %v1614_v34, 4  ;;  %v1619_v2 = vrot.slane %v1617_v6, 5  ;;  %6763 = vmatpush3.bf16.msra.mxu0 %v7011_v54  ;;  %v1625_v60 = vrot.slane %v1623_v7, 5  ;;  %v8368_v54 = vld [vmem:[%s7501_s13 + $0x3c] sm:$0xf]  ;;  %v7020_v62 = vld [vmem:[%s9438_s1 + $0x220] sm:$0xff]  }
  0xdd   : > { %v1022_v58 = vrot.slane %v1021_v55, 4  ;;  %v1627_v5 = vshrl.u32 %v8336_v25, 16  ;;  %v1633_v41 = vshll.u32 %v5737_v59, 16  ;;  %6764 = vmatprep.subr.bf16.mxu0 %v7014_v43  ;;  %3855 = vmatprep.mubr.bf16.mxu1 %v5896_v0  ;;  %v5881_v19 = vcombine.low %v8333_v50, %v8336_v25  ;;  %v5738_v7 = vld [vmem:[%s7501_s13 + $0x44] sm:$0x1] }
  0xde   : > { %v1620_v13 = vor.u32 %v1619_v2, %v1616_v56  ;;  %v5690_v37 = vrot.slane %v5674_v9, 9  ;;  %v1427_v36 = vrot.slane %v7114_v1, 5  ;;  %v1430_v26 = vrot.slane %v5658_v44, 5 }
  0xdf   : > { %3695 = vmatmul.mubr.bf16.gmra.mrb[68].mxu0 %v5848_v47  ;;  %v1027_v29 = vsel %vm7532_vm4, %v1022_v58, %v1026_v16  ;;  %v1629_v48 = vrot.slane %v1627_v5, 4  ;;  %v1635_v40 = vrot.slane %v1633_v41, 5  ;;  %v1038_v47 = vshll.u32 %v7114_v1, 16 }
  0xe0   : > { %3702 = vmatprep.mubr.bf16.mxu0 %v5865_v21  ;;  %v5849_v45 = vcombine.low %v1017_v52, %v1027_v29  ;;  %v1621_v59 = vrot.slane %v1620_v13, 4  ;;  %v1428_v50 = vsel %vm7544_vm5, %v5690_v37, %v1427_v36  ;;  %v1429_v25 = vrot.slane %v1427_v36, 4  ;;  %6765 = vmatpush3.bf16.msra.mxu0 %v7014_v43 }
  0xe1   : > { %3856 = vmatmul.mubr.bf16.gmra.mrb[68].mxu1 %v5880_v61  ;;  %v1630_v8 = vor.u32 %v1629_v48, %v1625_v60  ;;  %v1035_v61 = vor.u32 %v7749_v51, %v7747_v49  ;;  %v9482_v11 = vshrl.u32 %v7679_v42, 16  ;;  %6766 = vmatprep.subr.bf16.mxu0 %v7017_v15  ;;  %v1048_v6 = vshll.u32 %v5658_v44, 16  ;;  %v5675_v42 = vld [vmem:[%s7501_s13 + $0x3c] sm:$0xe] }
  0xe2   : > { %v1626_v34 = vsel %vm7532_vm4, %v1621_v59, %v1625_v60  ;;  %v1431_v43 = vsel %vm7544_vm5, %v1429_v25, %v1430_v26  ;;  %v1638_v49 = vshrl.u32 %v8368_v54, 16  ;;  %v1040_v52 = vrot.slane %v1038_v47, 5  ;;  %v5659_v60 = vld [vmem:[%s7501_s13 + $0x44] sm:$0x1]  ;;  %v7115_v59 = vld [vmem:[%s7501_s13 + $0x40] sm:$0xf] }
  0xe3   : > { %v1044_v24 = vrot.slane %v9482_v11, 4  ;;  %v1631_v51 = vrot.slane %v1630_v8, 4  ;;  %v5866_v12 = vcombine.low %v1428_v50, %v1431_v43  ;;  %v1036_v21 = vrot.slane %v1035_v61, 4  ;;  %v8410_v11 = vld [vmem:[%s7501_s13 + $0x48] sm:$0xf] }
  0xe4   : > { %v1050_v55 = vrot.slane %v1048_v6, 5  ;;  %v1640_v9 = vrot.slane %v1638_v49, 4  ;;  %v1641_v0 = vshll.u32 %v8368_v54, 16  ;;  %v1647_v16 = vshll.u32 %v8379_v3, 16  ;;  %6767 = vmatpush3.bf16.msra.mxu0 %v7017_v15  ;;  %v7022_v15 = vld [vmem:[%s9438_s1 + $0x228] sm:$0xff]  }
  0xe5   : > { %v1636_v56 = vsel %vm7532_vm4, %v1631_v51, %v1635_v40  ;;  %v1041_v2 = vsel %vm7532_vm4, %v1036_v21, %v1040_v52  ;;  %v1045_v44 = vor.u32 %v1044_v24, %v1040_v52  ;;  %v1651_v58 = vshrl.u32 %v8379_v3, 16  ;;  %6768 = vmatprep.subr.bf16.mxu0 %v7020_v62  ;;  %v8424_v51 = vld [vmem:[%s7501_s13 + $0x4c] sm:$0xf] }
  0xe6   : > { %v5897_v5 = vcombine.low %v1626_v34, %v1636_v56  ;;  %v1643_v41 = vrot.slane %v1641_v0, 5  ;;  %v1649_v13 = vrot.slane %v1647_v16, 5  ;;  %v1657_v37 = vshll.u32 %v5738_v7, 16  ;;  %v5676_v0 = vld [vmem:[%s7501_s13 + $0x48] sm:$0xe] }
  0xe7   : > { %3703 = vmatmul.mubr.bf16.gmra.mrb[72].mxu0 %v5849_v45  ;;  %v1046_v1 = vrot.slane %v1045_v44, 4  ;;  %v1653_v36 = vrot.slane %v1651_v58, 4  ;;  %v5882_v29 = vcombine.low %v8368_v54, %v8379_v3  ;;  %v5691_v48 = vrot.slane %v5675_v42, 9  ;;  %v7024_v58 = vld [vmem:[%s9438_s1 + $0x238] sm:$0xff]  }
  0xe8   : > { %3863 = vmatprep.mubr.bf16.mxu1 %v5897_v5  ;;  %3710 = vmatprep.mubr.bf16.mxu0 %v5866_v12  ;;  %v1644_v40 = vor.u32 %v1643_v41, %v1640_v9  ;;  %v1659_v26 = vrot.slane %v1657_v37, 5  ;;  %v1434_v50 = vrot.slane %v7115_v59, 5  ;;  %v1437_v25 = vrot.slane %v5659_v60, 5  ;;  %v5739_v12 = vld [vmem:[%s7501_s13 + $0x50] sm:$0x1] }
  0xe9   : > { %3864 = vmatmul.mubr.bf16.gmra.mrb[72].mxu1 %v5881_v19  ;;  %v1051_v8 = vsel %vm7532_vm4, %v1046_v1, %v1050_v55  ;;  %v1654_v61 = vor.u32 %v1653_v36, %v1649_v13  ;;  %v1059_v45 = vor.u32 %v7846_v39, %v7804_v46  ;;  %v1062_v47 = vshll.u32 %v7115_v59, 16  ;;  %6769 = vmatpush3.bf16.msra.mxu0 %v7020_v62  ;;  %v7023_v19 = vld [vmem:[%s9438_s1 + $0x230] sm:$0xff]  }
  0xea   : > { %v5850_v54 = vcombine.low %v1041_v2, %v1051_v8  ;;  %v1645_v24 = vrot.slane %v1644_v40, 4  ;;  %v1435_v3 = vsel %vm7544_vm5, %v5691_v48, %v1434_v50  ;;  %v1436_v34 = vrot.slane %v1434_v50, 4  ;;  %6770 = vmatprep.subr.bf16.mxu0 %v7022_v15  ;;  %v5660_v37 = vld [vmem:[%s7501_s13 + $0x50] sm:$0x1]  ;;  %v7116_v48 = vld [vmem:[%s7501_s13 + $0x4c] sm:$0xf] }
  0xeb   : > { %v1655_v43 = vrot.slane %v1654_v61, 4  ;;  %v1060_v46 = vrot.slane %v1059_v45, 4  ;;  %v1064_v39 = vrot.slane %v1062_v47, 5  ;;  %v9483_v6 = vshrl.u32 %v7727_v32, 16 }
  0xec   : > { %v1650_v62 = vsel %vm7532_vm4, %v1645_v24, %v1649_v13  ;;  %v1438_v49 = vsel %vm7544_vm5, %v1436_v34, %v1437_v25  ;;  %v1072_v42 = vshll.u32 %v5659_v60, 16  ;;  %v1662_v21 = vshrl.u32 %v8410_v11, 16  ;;  %v8453_v34 = vld [vmem:[%s7501_s13 + $0x58] sm:$0xf] }
  0xed   : > { %v1068_v7 = vrot.slane %v9483_v6, 4  ;;  %v1660_v52 = vsel %vm7532_vm4, %v1655_v43, %v1659_v26  ;;  %v5867_v55 = vcombine.low %v1435_v3, %v1438_v49  ;;  %v1065_v32 = vsel %vm7532_vm4, %v1060_v46, %v1064_v39  ;;  %6771 = vmatpush3.bf16.msra.mxu0 %v7022_v15  ;;  %v8444_v26 = vld [vmem:[%s7501_s13 + $0x54] sm:$0xf] }
  0xee   : > { %v5898_v16 = vcombine.low %v1650_v62, %v1660_v52  ;;  %v1074_v56 = vrot.slane %v1072_v42, 5  ;;  %v1664_v2 = vrot.slane %v1662_v21, 4  ;;  %v1665_v44 = vshll.u32 %v8410_v11, 16  ;;  %6772 = vmatprep.subr.bf16.mxu0 %v7023_v19 }
  0xef   : > { %v1069_v9 = vor.u32 %v1068_v7, %v1064_v39  ;;  %3711 = vmatmul.mubr.bf16.gmra.mrb[76].mxu0 %v5850_v54  ;;  %v1671_v5 = vshll.u32 %v8424_v51, 16  ;;  %v1675_v41 = vshrl.u32 %v8424_v51, 16  ;;  %v1681_v13 = vshll.u32 %v5739_v12, 16 }
  0xf0   : > { %3871 = vmatprep.mubr.bf16.mxu1 %v5898_v16  ;;  %3718 = vmatprep.mubr.bf16.mxu0 %v5867_v55  ;;  %v1667_v15 = vrot.slane %v1665_v44, 5  ;;  %v5883_v1 = vcombine.low %v8410_v11, %v8424_v51  ;;  %v5692_v36 = vrot.slane %v5676_v0, 9  ;;  %v1441_v40 = vrot.slane %v7116_v48, 5  ;;  %v5740_v51 = vld [vmem:[%s7501_s13 + $0x5c] sm:$0x1] }
  0xf1   : > { %v1070_v60 = vrot.slane %v1069_v9, 4  ;;  %3872 = vmatmul.mubr.bf16.gmra.mrb[76].mxu1 %v5882_v29  ;;  %v1673_v50 = vrot.slane %v1671_v5, 5  ;;  %v1677_v25 = vrot.slane %v1675_v41, 4  ;;  %v1683_v8 = vrot.slane %v1681_v13, 5  ;;  %6773 = vmatpush3.bf16.msra.mxu0 %v7023_v19  ;;  %v5661_v0 = vld [vmem:[%s7501_s13 + $0x5c] sm:$0x1] }
  0xf2   : > { %v1668_v45 = vor.u32 %v1667_v15, %v1664_v2  ;;  %v1442_v47 = vsel %vm7544_vm5, %v5692_v36, %v1441_v40  ;;  %v1443_v11 = vrot.slane %v1441_v40, 4  ;;  %6774 = vmatprep.subr.bf16.mxu0 %v7024_v58  ;;  %v1444_v24 = vrot.slane %v5660_v37, 5  ;;  %v8475_v13 = vld [vmem:[%s7501_s13 + $0x60] sm:$0xf] }
  0xf3   : > { %v1075_v59 = vsel %vm7532_vm4, %v1070_v60, %v1074_v56  ;;  %v1678_v54 = vor.u32 %v1677_v25, %v1673_v50  ;;  %v1083_v29 = vor.u32 %v7902_v38, %v7866_v4  ;;  %v1086_v3 = vshll.u32 %v7116_v48, 16  ;;  %v7117_v48 = vld [vmem:[%s7501_s13 + $0x58] sm:$0xf] }
  0xf4   : > { %v5851_v61 = vcombine.low %v1065_v32, %v1075_v59  ;;  %v1669_v43 = vrot.slane %v1668_v45, 4  ;;  %v9484_v19 = vshrl.u32 %v7791_v33, 16  ;;  %v1096_v39 = vshll.u32 %v5660_v37, 16  ;;  %v5677_v33 = vld [vmem:[%s7501_s13 + $0x54] sm:$0xe] }
  0xf5   : > { %v1686_v6 = vshrl.u32 %v8444_v26, 16  ;;  %v1679_v7 = vrot.slane %v1678_v54, 4  ;;  %v1445_v62 = vsel %vm7544_vm5, %v1443_v11, %v1444_v24  ;;  %v1084_v49 = vrot.slane %v1083_v29, 4  ;;  %6775 = vmatpush3.bf16.msra.mxu0 %v7024_v58 }
  0xf6   : > { %v1092_v46 = vrot.slane %v9484_v19, 4  ;;  %v1088_v42 = vrot.slane %v1086_v3, 5  ;;  %v1674_v4 = vsel %vm7532_vm4, %v1669_v43, %v1673_v50  ;;  %v5868_v38 = vcombine.low %v1442_v47, %v1445_v62 }
  0xf7   : > { %v1098_v12 = vrot.slane %v1096_v39, 5  ;;  %v1688_v21 = vrot.slane %v1686_v6, 4  ;;  %3719 = vmatmul.mubr.bf16.gmra.mrb[80].mxu0 %v5851_v61  ;;  %v1684_v52 = vsel %vm7532_vm4, %v1679_v7, %v1683_v8  ;;  %v1689_v9 = vshll.u32 %v8444_v26, 16  ;;  %v8483_v8 = vld [vmem:[%s7501_s13 + $0x64] sm:$0xf] }
  0xf8   : > { %v1089_v55 = vsel %vm7532_vm4, %v1084_v49, %v1088_v42  ;;  %v1093_v32 = vor.u32 %v1092_v46, %v1088_v42  ;;  %v5899_v16 = vcombine.low %v1674_v4, %v1684_v52  ;;  %3726 = vmatprep.mubr.bf16.mxu0 %v5868_v38  ;;  %v1695_v56 = vshll.u32 %v8453_v34, 16  ;;  %v5678_v46 = vld [vmem:[%s7501_s13 + $0x60] sm:$0xe]  ;;  %v5662_v49 = vld [vmem:[%s7501_s13 + $0x68] sm:$0x1] }
  0xf9   : > { %v1699_v2 = vshrl.u32 %v8453_v34, 16  ;;  %v1705_v44 = vshll.u32 %v5740_v51, 16  ;;  %v1691_v60 = vrot.slane %v1689_v9, 5  ;;  %v5884_v5 = vcombine.low %v8444_v26, %v8453_v34  ;;  %v5741_v34 = vld [vmem:[%s7501_s13 + $0x68] sm:$0x1] }
  0xfa   : > { %v1094_v58 = vrot.slane %v1093_v32, 4  ;;  %v5693_v41 = vrot.slane %v5677_v33, 9  ;;  %3879 = vmatprep.mubr.bf16.mxu1 %v5899_v16  ;;  %v1697_v37 = vrot.slane %v1695_v56, 5  ;;  %v1448_v40 = vrot.slane %v7117_v48, 5 }
  0xfb   : > { %v1701_v15 = vrot.slane %v1699_v2, 4  ;;  %v1707_v36 = vrot.slane %v1705_v44, 5  ;;  %3880 = vmatmul.mubr.bf16.gmra.mrb[80].mxu1 %v5883_v1  ;;  %v1692_v50 = vor.u32 %v1691_v60, %v1688_v21  ;;  %v1451_v25 = vrot.slane %v5661_v0, 5  ;;  %v7118_v2 = vld [vmem:[%s7501_s13 + $0x64] sm:$0xf] }
  0xfc   : > { %v1099_v59 = vsel %vm7532_vm4, %v1094_v58, %v1098_v12  ;;  %v1107_v26 = vor.u32 %v7954_v20, %v7952_v22  ;;  %v1449_v47 = vsel %vm7544_vm5, %v5693_v41, %v1448_v40  ;;  %v1450_v11 = vrot.slane %v1448_v40, 4  ;;  %v8508_v58 = vld [vmem:[%s7501_s13 + $0x6c] sm:$0xf] }
  0xfd   : > { %v5852_v61 = vcombine.low %v1089_v55, %v1099_v59  ;;  %v1702_v45 = vor.u32 %v1701_v15, %v1697_v37  ;;  %v1693_v54 = vrot.slane %v1692_v50, 4  ;;  %v1110_v24 = vshll.u32 %v7117_v48, 16 }
  0xfe   : > { %v1108_v1 = vrot.slane %v1107_v26, 4  ;;  %v9485_v29 = vshrl.u32 %v7843_v23, 16  ;;  %v1452_v22 = vsel %vm7544_vm5, %v1450_v11, %v1451_v25  ;;  %v1120_v20 = vshll.u32 %v5661_v0, 16  ;;  %v5679_v11 = vld [vmem:[%s7501_s13 + $0x6c] sm:$0xe] }
  0xff   : > { %v1703_v43 = vrot.slane %v1702_v45, 4  ;;  %v1710_v19 = vshrl.u32 %v8475_v13, 16  ;;  %3727 = vmatmul.mubr.bf16.gmra.mrb[84].mxu0 %v5852_v61  ;;  %v1698_v39 = vsel %vm7532_vm4, %v1693_v54, %v1697_v37  ;;  %v5869_v6 = vcombine.low %v1449_v47, %v1452_v22  ;;  %v5742_v47 = vld [vmem:[%s7501_s13 + $0x74] sm:$0x1] }
 0x100   : > { %v1116_v3 = vrot.slane %v9485_v29, 4  ;;  %v1112_v7 = vrot.slane %v1110_v24, 5  ;;  %v1713_v62 = vshll.u32 %v8475_v13, 16  ;;  %v1122_v42 = vrot.slane %v1120_v20, 5 }
 0x101   : > { %v1708_v23 = vsel %vm7532_vm4, %v1703_v43, %v1707_v36  ;;  %v1712_v51 = vrot.slane %v1710_v19, 4  ;;  %v1719_v4 = vshll.u32 %v8483_v8, 16  ;;  %3734 = vmatprep.mubr.bf16.mxu0 %v5869_v6  ;;  %v1723_v55 = vshrl.u32 %v8483_v8, 16  ;;  %v8513_v36 = vld [vmem:[%s7501_s13 + $0x70] sm:$0xf] }
 0x102   : > { %v5900_v38 = vcombine.low %v1698_v39, %v1708_v23  ;;  %v1113_v12 = vsel %vm7532_vm4, %v1108_v1, %v1112_v7  ;;  %v1117_v21 = vor.u32 %v1116_v3, %v1112_v7  ;;  %v1715_v33 = vrot.slane %v1713_v62, 5  ;;  %v5663_v3 = vld [vmem:[%s7501_s13 + $0x74] sm:$0x1] }
 0x103   : > { %v1721_v52 = vrot.slane %v1719_v4, 5  ;;  %v1729_v32 = vshll.u32 %v5741_v34, 16  ;;  %v5885_v9 = vcombine.low %v8475_v13, %v8483_v8  ;;  %v5694_v56 = vrot.slane %v5678_v46, 9 }
 0x104   : > { %3887 = vmatprep.mubr.bf16.mxu1 %v5900_v38  ;;  %v1118_v0 = vrot.slane %v1117_v21, 4  ;;  %v1716_v16 = vor.u32 %v1715_v33, %v1712_v51  ;;  %v1455_v44 = vrot.slane %v7118_v2, 5  ;;  %v1725_v60 = vrot.slane %v1723_v55, 4  ;;  %v8539_v38 = vld [vmem:[%s7501_s13 + $0x78] sm:$0xf] }
 0x105   : > { %3888 = vmatmul.mubr.bf16.gmra.mrb[84].mxu1 %v5884_v5  ;;  %v1731_v41 = vrot.slane %v1729_v32, 5  ;;  %v1458_v37 = vrot.slane %v5662_v49, 5  ;;  %v1131_v15 = vor.u32 %v8002_v31, %v7962_v35  ;;  %v1134_v26 = vshll.u32 %v7118_v2, 16  ;;  %v7119_v33 = vld [vmem:[%s7501_s13 + $0x70] sm:$0xf] }
 0x106   : > { %v1123_v13 = vsel %vm7532_vm4, %v1118_v0, %v1122_v42  ;;  %v1717_v48 = vrot.slane %v1716_v16, 4  ;;  %v1456_v40 = vsel %vm7544_vm5, %v5694_v56, %v1455_v44  ;;  %v1457_v59 = vrot.slane %v1455_v44, 4 }
 0x107   : > { %v5853_v5 = vcombine.low %v1113_v12, %v1123_v13  ;;  %v1726_v50 = vor.u32 %v1725_v60, %v1721_v52  ;;  %v1132_v25 = vrot.slane %v1131_v15, 4  ;;  %v9486_v31 = vshrl.u32 %v7891_v28, 16  ;;  %v9487_v13 = vld [vmem:[#allocation9_spill] sm:$0xff] }
 0x108   : > { %v1722_v8 = vsel %vm7532_vm4, %v1717_v48, %v1721_v52  ;;  %v1459_v35 = vsel %vm7544_vm5, %v1457_v59, %v1458_v37  ;;  %v1144_v45 = vshll.u32 %v5662_v49, 16  ;;  %v1136_v24 = vrot.slane %v1134_v26, 5  ;;  %v8552_v37 = vld [vmem:[%s7501_s13 + $0x80] sm:$0x1]  ;;  %v5680_v59 = vld [vmem:[%s7501_s13 + $0x78] sm:$0xe] }
 0x109   : > { %v1140_v61 = vrot.slane %v9486_v31, 4  ;;  %3735 = vmatmul.mubr.bf16.gmra.mrb[88].mxu0 %v5853_v5  ;;  %v1727_v54 = vrot.slane %v1726_v50, 4  ;;  %v5870_v1 = vcombine.low %v1456_v40, %v1459_v35  ;;  %v1734_v29 = vshrl.u32 %v8508_v58, 16 }
 0x10a   : > { %v1146_v34 = vrot.slane %v1144_v45, 5  ;;  %v1737_v43 = vshll.u32 %v8508_v58, 16  ;;  %v1743_v22 = vshll.u32 %v8513_v36, 16  ;;  %v1747_v20 = vshrl.u32 %v8513_v36, 16 }
 0x10b   : > { %v1732_v28 = vsel %vm7532_vm4, %v1727_v54, %v1731_v41  ;;  %3742 = vmatprep.mubr.bf16.mxu0 %v5870_v1  ;;  %v1137_v19 = vsel %vm7532_vm4, %v1132_v25, %v1136_v24  ;;  %v1141_v46 = vor.u32 %v1140_v61, %v1136_v24  ;;  %v1736_v39 = vrot.slane %v1734_v29, 4  ;;  %v8549_v41 = vld [vmem:[%s7501_s13 + $0x7c] sm:$0xf] }
 0x10c   : > { %v5901_v6 = vcombine.low %v1722_v8, %v1732_v28  ;;  %v1739_v7 = vrot.slane %v1737_v43, 5  ;;  %v1745_v62 = vrot.slane %v1743_v22, 5  ;;  %v1749_v49 = vrot.slane %v1747_v20, 4  ;;  %v7120_v20 = vld [vmem:[%s7501_s13 + $0x7c] sm:$0xf] }
 0x10d   : > { %v1142_v23 = vrot.slane %v1141_v46, 4  ;;  %v1753_v42 = vshll.u32 %v5742_v47, 16  ;;  %v5886_v51 = vcombine.low %v8508_v58, %v8513_v36  ;;  %v5695_v4 = vrot.slane %v5679_v11, 9  ;;  %v5664_v11 = vld [vmem:[%s7501_s13 + $0x80] sm:$0x1] }
 0x10e   : > { %3895 = vmatprep.mubr.bf16.mxu1 %v5901_v6  ;;  %v1740_v12 = vor.u32 %v1739_v7, %v1736_v39  ;;  %v1750_v21 = vor.u32 %v1749_v49, %v1745_v62  ;;  %v1462_v52 = vrot.slane %v7119_v33, 5  ;;  %v1465_v55 = vrot.slane %v5663_v3, 5 }
 0x10f   : > { %3896 = vmatmul.mubr.bf16.gmra.mrb[88].mxu1 %v5885_v9  ;;  %v1147_v32 = vsel %vm7532_vm4, %v1142_v23, %v1146_v34  ;;  %v1755_v0 = vrot.slane %v1753_v42, 5  ;;  %v1155_v16 = vor.u32 %v8050_v14, %v8048_v17  ;;  %v1158_v56 = vshll.u32 %v7119_v33, 16  ;;  %v5665_v42 = vld [vmem:[%s7501_s13 + $0x8c] sm:$0x1] }
 0x110   : > { %v5854_v2 = vcombine.low %v1137_v19, %v1147_v32  ;;  %v1741_v44 = vrot.slane %v1740_v12, 4  ;;  %v1751_v58 = vrot.slane %v1750_v21, 4  ;;  %v1463_v60 = vsel %vm7544_vm5, %v5695_v4, %v1462_v52  ;;  %v9489_v12 = vld [vmem:[#allocation13_spill] sm:$0xff]  ;;  %v9490_v21 = vld [vmem:[#allocation14_spill] sm:$0xff] }
 0x111   : > { %v1464_v15 = vrot.slane %v1462_v52, 4  ;;  %v1156_v9 = vrot.slane %v1155_v16, 4  ;;  %v1160_v36 = vrot.slane %v1158_v56, 5  ;;  %v9488_v48 = vshrl.u32 %v9487_v13, 16 }
 0x112   : > { %3743 = vmatmul.mubr.bf16.gmra.mrb[92].mxu0 %v5854_v2  ;;  %v1746_v14 = vsel %vm7532_vm4, %v1741_v44, %v1745_v62  ;;  %v1756_v17 = vsel %vm7532_vm4, %v1751_v58, %v1755_v0  ;;  %v1168_v5 = vshll.u32 %v5663_v3, 16  ;;  %v1758_v50 = vshrl.u32 %v8539_v38, 16  ;;  %v5681_v3 = vld [vmem:[%s7501_s13 + $0x84] sm:$0xe] }
 0x113   : > { %v1164_v40 = vrot.slane %v9488_v48, 4  ;;  %v5902_v25 = vcombine.low %v1746_v14, %v1756_v17  ;;  %v1466_v26 = vsel %vm7544_vm5, %v1464_v15, %v1465_v55  ;;  %v1161_v8 = vsel %vm7532_vm4, %v1156_v9, %v1160_v36  ;;  %v9491_v55 = vld [vmem:[#allocation10_spill] sm:$0xff]  ;;  %v5682_v15 = vld [vmem:[%s7501_s13 + $0x90] sm:$0xe] }
 0x114   : > { %v5871_v31 = vcombine.low %v1463_v60, %v1466_v26  ;;  %v1170_v61 = vrot.slane %v1168_v5, 5  ;;  %v1760_v45 = vrot.slane %v1758_v50, 4  ;;  %v1761_v47 = vshll.u32 %v8539_v38, 16  ;;  %v7121_v48 = vld [vmem:[%s7501_s13 + $0x88] sm:$0xf] }
 0x115   : > { %v1165_v35 = vor.u32 %v1164_v40, %v1160_v36  ;;  %3903 = vmatprep.mubr.bf16.mxu1 %v5902_v25  ;;  %v1767_v1 = vshll.u32 %v8549_v41, 16  ;;  %v1771_v24 = vshrl.u32 %v8549_v41, 16  ;;  %v1777_v29 = vshll.u32 %v8552_v37, 16  ;;  %v5666_v50 = vld [vmem:[%s7501_s13 + $0x98] sm:$0x1] }
 0x116   : > { %3750 = vmatprep.mubr.bf16.mxu0 %v5871_v31  ;;  %v1763_v34 = vrot.slane %v1761_v47, 5  ;;  %v5887_v43 = vcombine.low %v8539_v38, %v8549_v41  ;;  %v5696_v22 = vrot.slane %v5680_v59, 9  ;;  %v1469_v28 = vrot.slane %v7120_v20, 5  ;;  %v9494_v31 = vld [vmem:[#allocation16_spill] sm:$0xff] }
 0x117   : > { %v1166_v54 = vrot.slane %v1165_v35, 4  ;;  %3904 = vmatmul.mubr.bf16.gmra.mrb[92].mxu1 %v5886_v51  ;;  %v1769_v46 = vrot.slane %v1767_v1, 5  ;;  %v1773_v39 = vrot.slane %v1771_v24, 4  ;;  %v1779_v6 = vrot.slane %v1777_v29, 5  ;;  %v9493_v35 = vld [vmem:[#allocation15_spill] sm:$0xff] }
 0x118   : > { %v1764_v62 = vor.u32 %v1763_v34, %v1760_v45  ;;  %v1470_v49 = vsel %vm7544_vm5, %v5696_v22, %v1469_v28  ;;  %v1471_v23 = vrot.slane %v1469_v28, 4  ;;  %v1472_v38 = vrot.slane %v5664_v11, 5  ;;  %v7122_v22 = vld [vmem:[%s7501_s13 + $0x94] sm:$0xf] }
 0x119   : > { %v1171_v19 = vsel %vm7532_vm4, %v1166_v54, %v1170_v61  ;;  %v1774_v4 = vor.u32 %v1773_v39, %v1769_v46  ;;  %v1179_v51 = vor.u32 %v9490_v21, %v9489_v12  ;;  %v1182_v33 = vshll.u32 %v7120_v20, 16  ;;  %v7123_v28 = vld [vmem:[%s7501_s13 + $0xb4] sm:$0xf]  ;;  %v9497_v12 = vld [vmem:[#allocation18_spill] sm:$0xff] }
 0x11a   : > { %v5855_v7 = vcombine.low %v1161_v8, %v1171_v19  ;;  %v1765_v52 = vrot.slane %v1764_v62, 4  ;;  %v9492_v32 = vshrl.u32 %v9491_v55, 16  ;;  %v1192_v16 = vshll.u32 %v5664_v11, 16  ;;  %v9495_v11 = vld [vmem:[#allocation11_spill] sm:$0xff]  ;;  %v5683_v55 = vld [vmem:[%s7501_s13 + $0x9c] sm:$0xe] }
 0x11b   : > { %v5697_v56 = vrot.slane %v5681_v3, 9  ;;  %v1775_v2 = vrot.slane %v1774_v4, 4  ;;  %v1473_v44 = vsel %vm7544_vm5, %v1471_v23, %v1472_v38  ;;  %v1180_v58 = vrot.slane %v1179_v51, 4  ;;  %v9498_v51 = vld [vmem:[#allocation12_spill] sm:$0xff] }
 0x11c   : > { %3751 = vmatmul.mubr.bf16.gmra.mrb[96].mxu0 %v5855_v7  ;;  %v1188_v0 = vrot.slane %v9492_v32, 4  ;;  %v1184_v60 = vrot.slane %v1182_v33, 5  ;;  %v1770_v9 = vsel %vm7532_vm4, %v1765_v52, %v1769_v46  ;;  %v5872_v36 = vcombine.low %v1470_v49, %v1473_v44 }
 0x11d   : > { %v1194_v13 = vrot.slane %v1192_v16, 5  ;;  %v1476_v40 = vrot.slane %v7121_v48, 5  ;;  %v1780_v59 = vsel %vm7532_vm4, %v1775_v2, %v1779_v6  ;;  %v1479_v5 = vrot.slane %v5665_v42, 5  ;;  %v8619_v2 = vld [vmem:[%s7501_s13 + $0xb8] sm:$0xf] }
 0x11e   : > { %v1185_v14 = vsel %vm7532_vm4, %v1180_v58, %v1184_v60  ;;  %v1189_v17 = vor.u32 %v1188_v0, %v1184_v60  ;;  %v5903_v25 = vcombine.low %v1770_v9, %v1780_v59  ;;  %3758 = vmatprep.mubr.bf16.mxu0 %v5872_v36  ;;  %v1203_v61 = vor.u32 %v9494_v31, %v9493_v35  ;;  %v5667_v58 = vld [vmem:[%s7501_s13 + $0xa4] sm:$0x1]  ;;  %v7125_v60 = vld [vmem:[%s7501_s13 + $0xa0] sm:$0xf] }
 0x11f   : > { %v1477_v26 = vsel %vm7544_vm5, %v5697_v56, %v1476_v40  ;;  %v1478_v8 = vrot.slane %v1476_v40, 4  ;;  %v1206_v47 = vshll.u32 %v7121_v48, 16  ;;  %v9496_v54 = vshrl.u32 %v9495_v11, 16  ;;  %v9502_v11 = vld [vmem:[#allocation20_spill] sm:$0xff] }
 0x120   : > { %v1190_v45 = vrot.slane %v1189_v17, 4  ;;  %v1216_v24 = vshll.u32 %v5665_v42, 16  ;;  %3911 = vmatprep.mubr.bf16.mxu1 %v5903_v25  ;;  %v1204_v3 = vrot.slane %v1203_v61, 4  ;;  %v5698_v34 = vrot.slane %v5682_v15, 9 }
 0x121   : > { %v1212_v1 = vrot.slane %v9496_v54, 4  ;;  %v1480_v29 = vsel %vm7544_vm5, %v1478_v8, %v1479_v5  ;;  %v1483_v20 = vrot.slane %v7122_v22, 5  ;;  %v1296_v19 = vshll.u32 %v7123_v28, 16  ;;  %3912 = vmatmul.mubr.bf16.gmra.mrb[96].mxu1 %v5887_v43  ;;  %v5684_v8 = vld [vmem:[%s7501_s13 + $0xa8] sm:$0xe] }
 0x122   : > { %v1195_v46 = vsel %vm7532_vm4, %v1190_v45, %v1194_v13  ;;  %v5873_v39 = vcombine.low %v1477_v26, %v1480_v29  ;;  %v1208_v6 = vrot.slane %v1206_v47, 5  ;;  %v1486_v49 = vrot.slane %v5666_v50, 5  ;;  %v9501_v47 = vld [vmem:[#allocation19_spill] sm:$0xff] }
 0x123   : > { %v5856_v7 = vcombine.low %v1185_v14, %v1195_v46  ;;  %v1485_v62 = vrot.slane %v1483_v20, 4  ;;  %v1218_v42 = vrot.slane %v1216_v24, 5  ;;  %v1230_v4 = vshll.u32 %v7122_v22, 16 }
 0x124   : > { %v1213_v23 = vor.u32 %v1212_v1, %v1208_v6  ;;  %v1209_v38 = vsel %vm7532_vm4, %v1204_v3, %v1208_v6  ;;  %v1484_v43 = vsel %vm7544_vm5, %v5698_v34, %v1483_v20  ;;  %v1227_v21 = vor.u32 %v9497_v12, %v8169_v30  ;;  %v7126_v1 = vld [vmem:[%s7501_s13 + $0xac] sm:$0xf] }
 0x125   : > { %3759 = vmatmul.mubr.bf16.gmra.mrb[100].mxu0 %v5856_v7  ;;  %v9499_v33 = vshrl.u32 %v9498_v51, 16  ;;  %v1487_v0 = vsel %vm7544_vm5, %v1485_v62, %v1486_v49  ;;  %v1232_v16 = vrot.slane %v1230_v4, 5  ;;  %v1240_v56 = vshll.u32 %v5666_v50, 16 }
 0x126   : > { %3766 = vmatprep.mubr.bf16.mxu0 %v5873_v39  ;;  %v1214_v32 = vrot.slane %v1213_v23, 4  ;;  %v1306_v44 = vshrl.u32 %v8619_v2, 16  ;;  %v1490_v15 = vrot.slane %v7125_v60, 5  ;;  %v8626_v30 = vrot.slane %v1293_v27, 4 }
 0x127   : > { %v1236_v52 = vrot.slane %v9499_v33, 4  ;;  %v1254_v13 = vshll.u32 %v7125_v60, 16  ;;  %v5874_v59 = vcombine.low %v1484_v43, %v1487_v0  ;;  %v1228_v14 = vrot.slane %v1227_v21, 4  ;;  %v9503_v33 = vld [vmem:[#allocation17_spill] sm:$0xff] }
 0x128   : > { %v1219_v9 = vsel %vm7532_vm4, %v1214_v32, %v1218_v42  ;;  %v5699_v17 = vrot.slane %v5683_v55, 9  ;;  %v1242_v25 = vrot.slane %v1240_v56, 5  ;;  %v9500_v57 = vshrl.u32 %v8118_v10, 16  ;;  %v5668_v10 = vld [vmem:[%s7501_s13 + $0xb0] sm:$0x1] }
 0x129   : > { %v1237_v36 = vor.u32 %v1236_v52, %v1232_v16  ;;  %v5857_v48 = vcombine.low %v1209_v38, %v1219_v9  ;;  %v8630_v26 = vrot.slane %v1254_v13, 5  ;;  %v1492_v61 = vrot.slane %v1490_v15, 4  ;;  %v8655_v32 = vld [vmem:[%s7501_s13 + $0xc0] sm:$0xf]  ;;  %v8660_v56 = vld [vmem:[%s7501_s13 + $0xc4] sm:$0xf] }
 0x12a   : > { %v6120_v40 = vpop.f32.mrb[0].mxu0  ;;  %v1260_v27 = vrot.slane %v9500_v57, 4  ;;  %v1493_v45 = vrot.slane %v5667_v58, 5  ;;  %v1251_v54 = vor.u32 %v9502_v11, %v9501_v47  ;;  %v1497_v24 = vrot.slane %v7126_v1, 5  ;;  %v8666_v60 = vld [vmem:[%s9439_s2] ss:$0 sm:$0xff] }
 0x12b   : > { %v6121_v5 = vpop.f32.mrb[1].mxu0  ;;  %v1238_v50 = vrot.slane %v1237_v36, 4  ;;  %v1264_v20 = vshll.u32 %v5667_v58, 16  ;;  %v8640_v28 = vrot.slane %v1296_v19, 5  ;;  %v1233_v46 = vsel %vm7532_vm4, %v1228_v14, %v1232_v16 }
 0x12c   : > { %v6123_v35 = vpop.f32.mrb[2].mxu0  ;;  %v6232_v31 = vpop.f32.mrb[0].mxu1  ;;  %v1261_v22 = vor.u32 %v1260_v27, %v8630_v26  ;;  %v1278_v7 = vshll.u32 %v7126_v1, 16  ;;  %v1491_v62 = vsel %vm7544_vm5, %v5699_v17, %v1490_v15  ;;  %v1494_v49 = vsel %vm7544_vm5, %v1492_v61, %v1493_v45  ;;  %v5685_v5 = vld [vmem:[%s7501_s13 + $0xb4] sm:$0xe] }
 0x12d   : > { %v6124_v29 = vpop.f32.mrb[3].mxu0  ;;  %v6233_v3 = vpop.f32.mrb[1].mxu1  ;;  %3767 = vmatmul.mubr.bf16.gmra.mrb[104].mxu0 %v5857_v48  ;;  %v1243_v39 = vsel %vm7532_vm4, %v1238_v50, %v1242_v25  ;;  %v1252_v23 = vrot.slane %v1251_v54, 4  ;;  %v5700_v19 = vrot.slane %v5684_v8, 9  ;;  %v1499_v42 = vrot.slane %v1497_v24, 4 }
 0x12e   : > { %v6235_v34 = vpop.f32.mrb[2].mxu1  ;;  %3774 = vmatprep.mubr.bf16.mxu0 %v5874_v59  ;;  %v1500_v4 = vrot.slane %v5668_v10, 5  ;;  %v5858_v38 = vcombine.low %v1233_v46, %v1243_v39  ;;  %v1262_v43 = vrot.slane %v1261_v22, 4  ;;  %v1266_v12 = vrot.slane %v1264_v20, 5  ;;  %v9505_v59 = vld [vmem:[#allocation21_spill] sm:$0xff] }
 0x12f   : > { %v6236_v6 = vpop.f32.mrb[3].mxu1  ;;  %v5875_v21 = vcombine.low %v1491_v62, %v1494_v49  ;;  %v8650_v51 = vrot.slane %v1278_v7, 5  ;;  %v9504_v52 = vshrl.u32 %v9503_v33, 16  ;;  %v1317_v0 = vshrl.u32 %v8655_v32, 16 }
 0x130   : > { %v1320_v16 = vshll.u32 %v8655_v32, 16  ;;  %v1330_v58 = vshrl.u32 %v8660_v56, 16  ;;  %v1257_v9 = vsel %vm7532_vm4, %v1252_v23, %v8630_v26  ;;  %v1498_v48 = vsel %vm7544_vm5, %v5700_v19, %v1497_v24 }
 0x131   : > { %v1284_v55 = vrot.slane %v9504_v52, 4  ;;  %v1501_v40 = vsel %vm7544_vm5, %v1499_v42, %v1500_v4  ;;  %v1275_v14 = vor.u32 %v8246_v18, %v9505_v59  ;;  %v1288_v17 = vshll.u32 %v5668_v10, 16  ;;  %v5669_v18 = vld [vmem:[%s7501_s13 + $0xbc] sm:$0x1]  ;;  %v5686_v42 = vld [vmem:[%s7501_s13 + $0xc0] sm:$0xe] }
 0x132   : > { %v6126_v36 = vpop.f32.mrb[4].mxu0  ;;  %v1267_v26 = vsel %vm7532_vm4, %v1262_v43, %v1266_v12  ;;  %v1504_v27 = vrot.slane %v8619_v2, 5  ;;  %v1302_v8 = vshll.u32 %v8619_v2, 16  ;;  %v5876_v54 = vcombine.low %v1498_v48, %v1501_v40 }
 0x133   : > { %v6127_v50 = vpop.f32.mrb[5].mxu0  ;;  %v1285_v45 = vor.u32 %v1284_v55, %v8650_v51  ;;  %v5701_v1 = vrot.slane %v5685_v5, 9  ;;  %v5859_v3 = vcombine.low %v1257_v9, %v1267_v26  ;;  %v1276_v34 = vrot.slane %v1275_v14, 4 }
 0x134   : > { %v6238_v15 = vpop.f32.mrb[4].mxu1  ;;  %v6128_v35 = vadd.f32 %v6127_v50, %v6126_v36  ;;  %v6129_v31 = vpop.f32.mrb[6].mxu0  ;;  %v1290_v22 = vrot.slane %v1288_v17, 5  ;;  %v1506_v20 = vrot.slane %v1504_v27, 4  ;;  %v8685_v10 = vrot.slane %v1302_v8, 5 }
 0x135   : > { %v6239_v13 = vpop.f32.mrb[5].mxu1  ;;  %3775 = vmatmul.mubr.bf16.gmra.mrb[108].mxu0 %v5858_v38  ;;  %v6130_v47 = vpop.f32.mrb[7].mxu0  ;;  %v1308_v46 = vrot.slane %v1306_v44, 4  ;;  %v1286_v7 = vrot.slane %v1285_v45, 4  ;;  %v1507_v62 = vrot.slane %v5669_v18, 5  ;;  %v8692_v49 = vrot.slane %v1317_v0, 4 }
 0x136   : > { %v6240_v25 = vadd.f32 %v6239_v13, %v6238_v15  ;;  %v6241_v57 = vpop.f32.mrb[6].mxu1  ;;  %3782 = vmatprep.mubr.bf16.mxu0 %v5875_v21  ;;  %v3375_v24 = vadd.f32 %v6128_v35, %v8666_v60  ;;  %v6131_v29 = vadd.f32 %v6130_v47, %v6129_v31  ;;  %v1299_v19 = vor.u32 %v8640_v28, %v8626_v30  ;;  %v8707_v28 = vld [vmem:[%s7501_s13 + $0xc8] sm:$0x1]  ;;  %v7025_v45 = vld [vmem:[#allocation3 + $0x40] sm:$0xff]  }
 0x137   : > { %v6242_v61 = vpop.f32.mrb[7].mxu1  ;;  %v1312_v2 = vshll.u32 %v5669_v18, 16  ;;  %v1511_v44 = vrot.slane %v8660_v56, 5  ;;  %v1281_v52 = vsel %vm7532_vm4, %v1276_v34, %v8650_v51  ;;  %v1505_v55 = vsel %vm7544_vm5, %v5701_v1, %v1504_v27  ;;  %v7026_v18 = vld [vmem:[#allocation3] sm:$0xff]   ;;  %6576 = vmatprep.subr.bf16.mxu1 %v7025_v45 }
 0x138   : > { %v6243_v11 = vadd.f32 %v6242_v61, %v6241_v57  ;;  %v3378_v39 = vadd.f32 %v6131_v29, %v8666_v60  ;;  %v8690_v6 = vadd.f32 %v6240_v25, %v3375_v24  ;;  %v1309_v30 = vor.u32 %v1308_v46, %v8685_v10  ;;  %v7129_v46 = vld [vmem:[%s7501_s13 + $0x1c] sm:$0xf]  ;;  %6577 = vmatpush3.bf16.msra.mxu1 %v7026_v18 }
 0x139   : > { %v1291_v36 = vsel %vm7532_vm4, %v1286_v7, %v1290_v22  ;;  %v1508_v13 = vsel %vm7544_vm5, %v1506_v20, %v1507_v62  ;;  %v1326_v48 = vshll.u32 %v8660_v56, 16  ;;  %v1322_v51 = vrot.slane %v1320_v16, 5 }
 0x13a   : > { %v8697_v4 = vadd.f32 %v6243_v11, %v3378_v39  ;;  %v6132_v38 = vpop.f32.mrb[8].mxu0  ;;  %v1300_v14 = vrot.slane %v1299_v19, 4  ;;  %v5702_v17 = vrot.slane %v5686_v42, 9  ;;  %v1314_v25 = vrot.slane %v1312_v2, 5 }
 0x13b   : > { %v6133_v12 = vpop.f32.mrb[9].mxu0  ;;  %v1513_v57 = vrot.slane %v1511_v44, 4  ;;  %v5860_v26 = vcombine.low %v1281_v52, %v1291_v36  ;;  %v5877_v27 = vcombine.low %v1505_v55, %v1508_v13  ;;  %v1310_v8 = vrot.slane %v1309_v30, 4  ;;  %v7130_v52 = vld [vmem:[%s7501_s13 + $0x20] sm:$0x1] }
 0x13c   : > { %v6244_v23 = vpop.f32.mrb[8].mxu1  ;;  %v6134_v0 = vadd.f32 %v6133_v12, %v6132_v38  ;;  %v6135_v15 = vpop.f32.mrb[10].mxu0  ;;  %v1514_v35 = vrot.slane %v8707_v28, 5  ;;  %v8721_v32 = vrot.slane %v1326_v48, 5  ;;  %v1332_v16 = vrot.slane %v1330_v58, 4 }
 0x13d   : > { %v6245_v43 = vpop.f32.mrb[9].mxu1  ;;  %3783 = vmatmul.mubr.bf16.gmra.mrb[112].mxu0 %v5859_v3  ;;  %v6136_v40 = vpop.f32.mrb[11].mxu0  ;;  %v1323_v11 = vor.u32 %v1322_v51, %v8692_v49  ;;  %v8730_v29 = vsel %vm7544_vm5, %v5702_v17, %v1511_v44  ;;  %v5751_v3 = vld [vmem:[%s7501_s13 + $0x18] sm:$0xe]  ;;  %v1305_v22 = vsel %vm7532_vm4, %v1300_v14, %v8685_v10  ;;  %v1336_v20 = vshll.u32 %v8707_v28, 16 }
 0x13e   : > { %v6246_v21 = vadd.f32 %v6245_v43, %v6244_v23  ;;  %v6247_v33 = vpop.f32.mrb[10].mxu1  ;;  %3790 = vmatprep.mubr.bf16.mxu0 %v5876_v54  ;;  %v3383_v5 = vadd.f32 %v6134_v0, %v8666_v60  ;;  %v6137_v50 = vadd.f32 %v6136_v40, %v6135_v15  ;;  %v2015_v39 = vrot.slane %v7129_v46, 5  ;;  %v8744_v44 = vld [vmem:[%s7501_s13 + $0x24] sm:$0xe]  ;;  %v8747_v12 = vld [vmem:[%s7501_s13 + $0x30] sm:$0xe] }
 0x13f   : > { %v6248_v9 = vpop.f32.mrb[11].mxu1  ;;  %v1315_v23 = vsel %vm7532_vm4, %v1310_v8, %v1314_v25  ;;  %v1515_v19 = vsel %vm7544_vm5, %v1513_v57, %v1514_v35  ;;  %v1333_v10 = vor.u32 %v1332_v16, %v8721_v32  ;;  %v1324_v43 = vrot.slane %v1323_v11, 4  ;;  %v8752_v30 = vld [vmem:[%s7501_s13 + $0x28] sm:$0xf]  ;;  %v8757_v36 = vld [vmem:[%s7501_s13 + $0x34] sm:$0xf] }
 0x140   : > { %v6249_v59 = vadd.f32 %v6248_v9, %v6247_v33  ;;  %v3386_v31 = vadd.f32 %v6137_v50, %v8666_v60  ;;  %v8719_v61 = vadd.f32 %v6246_v21, %v3383_v5  ;;  %v5767_v2 = vrot.slane %v5751_v3, 9  ;;  %v8761_v48 = vld [vmem:[%s7501_s13 + $0x3c] sm:$0xe]  ;;  %v8767_v17 = vld [vmem:[%s7501_s13 + $0x2c] sm:$0x1] }
 0x141   : > { %v2018_v55 = vrot.slane %v7130_v52, 5  ;;  %v2022_v28 = vrot.slane %v8752_v30, 5  ;;  %v5861_v0 = vcombine.low %v1305_v22, %v1315_v23  ;;  %v5878_v15 = vcombine.low %v8730_v29, %v1515_v19  ;;  %v8788_v3 = vld [vmem:[%s7501_s13 + $0x48] sm:$0xe]  ;;  %v8794_v46 = vld [vmem:[%s7501_s13 + $0x40] sm:$0xf] }
 0x142   : > { %v8726_v54 = vadd.f32 %v6249_v59, %v3386_v31  ;;  %v6138_v1 = vpop.f32.mrb[12].mxu0  ;;  %v2017_v9 = vrot.slane %v2015_v39, 4  ;;  %v2029_v13 = vrot.slane %v8757_v36, 5  ;;  %v1334_v59 = vrot.slane %v1333_v10, 4  ;;  %v7139_v36 = vld [vmem:[%s7501_s13 + $0x58] sm:$0xf] }
 0x143   : > { %v6139_v34 = vpop.f32.mrb[13].mxu0  ;;  %v1338_v14 = vrot.slane %v1336_v20, 5  ;;  %v2025_v5 = vrot.slane %v8767_v17, 5  ;;  %v1329_v25 = vsel %vm7532_vm4, %v1324_v43, %v8721_v32  ;;  %v2016_v57 = vsel %vm7544_vm5, %v5767_v2, %v2015_v39 }
 0x144   : > { %v6250_v47 = vpop.f32.mrb[12].mxu1  ;;  %v6140_v7 = vadd.f32 %v6139_v34, %v6138_v1  ;;  %v6141_v62 = vpop.f32.mrb[14].mxu0  ;;  %v5768_v31 = vrot.slane %v8744_v44, 9  ;;  %v2024_v16 = vrot.slane %v2022_v28, 4  ;;  %v5769_v45 = vrot.slane %v8747_v12, 9 }
 0x145   : > { %v6251_v24 = vpop.f32.mrb[13].mxu1  ;;  %3791 = vmatmul.mubr.bf16.gmra.mrb[116].mxu0 %v5860_v26  ;;  %v6142_v42 = vpop.f32.mrb[15].mxu0  ;;  %v5759_v26 = vld [vmem:[%s7501_s13 + $0x78] sm:$0xe]  ;;  %v2019_v11 = vsel %vm7544_vm5, %v2017_v9, %v2018_v55  ;;  %v2031_v1 = vrot.slane %v2029_v13, 4  ;;  %v1339_v22 = vsel %vm7532_vm4, %v1334_v59, %v1338_v14  ;;  %v5770_v20 = vrot.slane %v8761_v48, 9 }
 0x146   : > { %v6252_v56 = vadd.f32 %v6251_v24, %v6250_v47  ;;  %v6253_v58 = vpop.f32.mrb[14].mxu1  ;;  %3798 = vmatprep.mubr.bf16.mxu0 %v5877_v27  ;;  %v3391_v21 = vadd.f32 %v6140_v7, %v8666_v60  ;;  %v6143_v33 = vadd.f32 %v6142_v42, %v6141_v62  ;;  %v7134_v24 = vld [vmem:[%s7501_s13 + $0x38] sm:$0x1]  ;;  %v2036_v39 = vrot.slane %v8794_v46, 5  ;;  %v7137_v55 = vld [vmem:[%s7501_s13 + $0x44] sm:$0x1] }
 0x147   : > { %v6254_v49 = vpop.f32.mrb[15].mxu1  ;;  %v2032_v29 = vrot.slane %v7134_v24, 5  ;;  %v5775_v19 = vrot.slane %v5759_v26, 9  ;;  %v2071_v10 = vrot.slane %v8549_v41, 5  ;;  %v5911_v43 = vcombine.low %v2016_v57, %v2019_v11  ;;  %v7028_v26 = vld [vmem:[#allocation3 + $0x8] sm:$0xff]  }
 0x148   : > { %v6255_v38 = vadd.f32 %v6254_v49, %v6253_v58  ;;  %v3394_v51 = vadd.f32 %v6143_v33, %v8666_v60  ;;  %v8764_v40 = vadd.f32 %v6252_v56, %v3391_v21  ;;  %v8798_v49 = vld [vmem:[%s7501_s13 + $0x4c] sm:$0xf]  ;;  %v5862_v2 = vcombine.low %v1329_v25, %v1339_v22  ;;  %v7138_v22 = vld [vmem:[%s7501_s13 + $0x50] sm:$0x1] }
 0x149   : > { %v2043_v23 = vrot.slane %v8798_v49, 5  ;;  %v8805_v44 = vsel %vm7544_vm5, %v5775_v19, %v2071_v10  ;;  %v2073_v12 = vrot.slane %v2071_v10, 4  ;;  %v2074_v21 = vrot.slane %v8552_v37, 5 }
 0x14a   : > { %v8776_v27 = vadd.f32 %v6255_v38, %v3394_v51  ;;  %v6144_v8 = vpop.f32.mrb[16].mxu0  ;;  %v5771_v41 = vrot.slane %v8788_v3, 9  ;;  %v2038_v51 = vrot.slane %v2036_v39, 4  ;;  %v2023_v24 = vsel %vm7544_vm5, %v5768_v31, %v2022_v28 }
 0x14b   : > { %v6145_v18 = vpop.f32.mrb[17].mxu0  ;;  %v8817_v59 = vsel %vm7544_vm5, %v2073_v12, %v2074_v21  ;;  %v2045_v25 = vrot.slane %v2043_v23, 4  ;;  %v2026_v3 = vsel %vm7544_vm5, %v2024_v16, %v2025_v5  ;;  %v2033_v30 = vsel %vm7544_vm5, %v2031_v1, %v2032_v29  ;;  %v5756_v1 = vld [vmem:[%s7501_s13 + $0x54] sm:$0xe] }
 0x14c   : > { %v6256_v50 = vpop.f32.mrb[16].mxu1  ;;  %v6146_v34 = vadd.f32 %v6145_v18, %v6144_v8  ;;  %v6147_v56 = vpop.f32.mrb[18].mxu0  ;;  %v5919_v57 = vcombine.low %v8805_v44, %v8817_v59  ;;  %v2046_v28 = vrot.slane %v7138_v22, 5  ;;  %v2050_v10 = vrot.slane %v7139_v36, 5  ;;  %v7143_v36 = vld [vmem:[%s7501_s13 + $0x70] sm:$0xf] }
 0x14d   : > { %v6257_v35 = vpop.f32.mrb[17].mxu1  ;;  %3799 = vmatmul.mubr.bf16.gmra.mrb[120].mxu0 %v5861_v0  ;;  %v6148_v7 = vpop.f32.mrb[19].mxu0  ;;  %v2039_v0 = vrot.slane %v7137_v55, 5 }
 0x14e   : > { %v6258_v32 = vadd.f32 %v6257_v35, %v6256_v50  ;;  %v6259_v47 = vpop.f32.mrb[18].mxu1  ;;  %3806 = vmatprep.mubr.bf16.mxu0 %v5878_v15  ;;  %v3399_v42 = vadd.f32 %v6146_v34, %v8666_v60  ;;  %v6149_v38 = vadd.f32 %v6148_v7, %v6147_v56  ;;  %v7027_v15 = vld [vmem:[#allocation3 + $0x48] sm:$0xff]   ;;  %v5912_v7 = vcombine.low %v2023_v24, %v2026_v3 }
 0x14f   : > { %v6260_v58 = vpop.f32.mrb[19].mxu1  ;;  %6578 = vmatprep.subr.bf16.mxu1 %v7027_v15  ;;  %v2040_v55 = vsel %vm7544_vm5, %v2038_v51, %v2039_v0  ;;  %v7141_v0 = vld [vmem:[%s7501_s13 + $0x5c] sm:$0x1] }
 0x150   : > { %v6261_v62 = vadd.f32 %v6260_v58, %v6259_v47  ;;  %v3402_v33 = vadd.f32 %v6149_v38, %v8666_v60  ;;  %v8809_v52 = vadd.f32 %v6258_v32, %v3399_v42  ;;  %6579 = vmatpush3.bf16.msra.mxu1 %v7028_v26  ;;  %v2030_v58 = vsel %vm7544_vm5, %v5769_v45, %v2029_v13  ;;  %v7140_v26 = vld [vmem:[%s7501_s13 + $0x64] sm:$0xf] }
 0x151   : > { %v2057_v46 = vrot.slane %v7140_v26, 5  ;;  %v2053_v51 = vrot.slane %v7141_v0, 5 }
 0x152   : > { %v8819_v14 = vadd.f32 %v6261_v62, %v3402_v33  ;;  %v6150_v37 = vpop.f32.mrb[20].mxu0  ;;  %v5913_v62 = vcombine.low %v2030_v58, %v2033_v30  ;;  %v2037_v33 = vsel %vm7544_vm5, %v5770_v20, %v2036_v39  ;;  %v5757_v20 = vld [vmem:[%s7501_s13 + $0x60] sm:$0xe] }
 0x153   : > { %v6151_v8 = vpop.f32.mrb[21].mxu0  ;;  %v5914_v39 = vcombine.low %v2037_v33, %v2040_v55  ;;  %v7144_v33 = vld [vmem:[%s7501_s13 + $0x74] sm:$0x1] }
 0x154   : > { %v6262_v9 = vpop.f32.mrb[20].mxu1  ;;  %v6152_v32 = vadd.f32 %v6151_v8, %v6150_v37  ;;  %v6153_v47 = vpop.f32.mrb[22].mxu0  ;;  %v2044_v37 = vsel %vm7544_vm5, %v5771_v41, %v2043_v23  ;;  %v2052_v23 = vrot.slane %v2050_v10, 4  ;;  %v2067_v55 = vrot.slane %v7144_v33, 5 }
 0x155   : > { %v6263_v50 = vpop.f32.mrb[21].mxu1  ;;  %3807 = vmatmul.mubr.bf16.gmra.mrb[124].mxu0 %v5862_v2  ;;  %v6154_v34 = vpop.f32.mrb[23].mxu0 }
 0x156   : > { %v6264_v35 = vadd.f32 %v6263_v50, %v6262_v9  ;;  %v6265_v18 = vpop.f32.mrb[22].mxu1  ;;  %6776 = vmatprep.mubr.bf16.mxu0 %v5911_v43  ;;  %v3407_v17 = vadd.f32 %v6152_v32, %v8666_v60  ;;  %v6155_v31 = vadd.f32 %v6154_v34, %v6153_v47  ;;  %v2047_v50 = vsel %vm7544_vm5, %v2045_v25, %v2046_v28  ;;  %v7029_v28 = vld [vmem:[#allocation3 + $0x50] sm:$0xff]  }
 0x157   : > { %v6266_v11 = vpop.f32.mrb[23].mxu1  ;;  %v5915_v32 = vcombine.low %v2044_v37, %v2047_v50  ;;  %v5773_v47 = vrot.slane %v5757_v20, 9  ;;  %v2059_v25 = vrot.slane %v2057_v46, 4  ;;  %6580 = vmatprep.subr.bf16.mxu1 %v7029_v28 }
 0x158   : > { %v6267_v56 = vadd.f32 %v6266_v11, %v6265_v18  ;;  %v3410_v5 = vadd.f32 %v6155_v31, %v8666_v60  ;;  %v8842_v16 = vadd.f32 %v6264_v35, %v3407_v17  ;;  %v5772_v35 = vrot.slane %v5756_v1, 9  ;;  %v7142_v11 = vld [vmem:[%s7501_s13 + $0x68] sm:$0x1] }
 0x159   : > { %v2060_v24 = vrot.slane %v7142_v11, 5 }
 0x15a   : > { %v8845_v42 = vadd.f32 %v6267_v56, %v3410_v5  ;;  %v6156_v13 = vpop.f32.mrb[24].mxu0  ;;  %v2051_v5 = vsel %vm7544_vm5, %v5772_v35, %v2050_v10 }
 0x15b   : > { %v6157_v29 = vpop.f32.mrb[25].mxu0 }
 0x15c   : > { %v6268_v19 = vpop.f32.mrb[24].mxu1  ;;  %v6158_v2 = vadd.f32 %v6157_v29, %v6156_v13  ;;  %v6159_v12 = vpop.f32.mrb[26].mxu0  ;;  %v2064_v13 = vrot.slane %v7143_v36, 5  ;;  %v2058_v29 = vsel %vm7544_vm5, %v5773_v47, %v2057_v46  ;;  %v8888_v46 = vld [vmem:[%s7501_s13 + $0x88] sm:$0xf] }
 0x15d   : > { %v6269_v45 = vpop.f32.mrb[25].mxu1  ;;  %6777 = vmatmul.mubr.bf16.vlgmr.msra.gmra.mrb[128].mxu0 %v5912_v7  ;;  %v6160_v15 = vpop.f32.mrb[27].mxu0  ;;  %v5760_v47 = vld [vmem:[%s7501_s13 + $0x84] sm:$0xe] }
 0x15e   : > { %v6270_v38 = vadd.f32 %v6269_v45, %v6268_v19  ;;  %v6271_v43 = vpop.f32.mrb[26].mxu1  ;;  %6780 = vmatprep.mubr.bf16.mxu0 %v5913_v62  ;;  %v3415_v48 = vadd.f32 %v6158_v2, %v8666_v60  ;;  %v6161_v8 = vadd.f32 %v6160_v15, %v6159_v12  ;;  %v2054_v62 = vsel %vm7544_vm5, %v2052_v23, %v2053_v51  ;;  %v5758_v19 = vld [vmem:[%s7501_s13 + $0x6c] sm:$0xe] }
 0x15f   : > { %v6272_v21 = vpop.f32.mrb[27].mxu1  ;;  %v5916_v12 = vcombine.low %v2051_v5, %v2054_v62  ;;  %v2066_v50 = vrot.slane %v2064_v13, 4 }
 0x160   : > { %v6273_v9 = vadd.f32 %v6272_v21, %v6271_v43  ;;  %v3418_v18 = vadd.f32 %v6161_v8, %v8666_v60  ;;  %v8867_v49 = vadd.f32 %v6270_v38, %v3415_v48  ;;  %v2061_v38 = vsel %vm7544_vm5, %v2059_v25, %v2060_v24  ;;  %v7030_v43 = vld [vmem:[#allocation3 + $0x10] sm:$0xff]  }
 0x161   : > { %v5774_v21 = vrot.slane %v5758_v19, 9  ;;  %6581 = vmatpush3.bf16.msra.mxu1 %v7030_v43  ;;  %v5917_v37 = vcombine.low %v2058_v29, %v2061_v38  ;;  %v2078_v25 = vrot.slane %v8888_v46, 5 }
 0x162   : > { %v8870_v3 = vadd.f32 %v6273_v9, %v3418_v18  ;;  %v6162_v34 = vpop.f32.mrb[28].mxu0 }
 0x163   : > { %v6163_v58 = vpop.f32.mrb[29].mxu0  ;;  %v2065_v23 = vsel %vm7544_vm5, %v5774_v21, %v2064_v13 }
 0x164   : > { %v6274_v41 = vpop.f32.mrb[28].mxu1  ;;  %v6164_v17 = vadd.f32 %v6163_v58, %v6162_v34  ;;  %v6165_v31 = vpop.f32.mrb[30].mxu0  ;;  %v5744_v34 = vld [vmem:[%s7501_s13 + $0x8c] sm:$0x1] }
 0x165   : > { %v6275_v56 = vpop.f32.mrb[29].mxu1  ;;  %6781 = vmatmul.mubr.bf16.gmra.mrb[132].mxu0 %v5914_v39  ;;  %v6166_v45 = vpop.f32.mrb[31].mxu0 }
 0x166   : > { %v6276_v30 = vadd.f32 %v6275_v56, %v6274_v41  ;;  %v6277_v22 = vpop.f32.mrb[30].mxu1  ;;  %6784 = vmatprep.mubr.bf16.mxu0 %v5915_v32  ;;  %v3423_v2 = vadd.f32 %v6164_v17, %v8666_v60  ;;  %v6167_v10 = vadd.f32 %v6166_v45, %v6165_v31  ;;  %v2068_v41 = vsel %vm7544_vm5, %v2066_v50, %v2067_v55  ;;  %v5721_v50 = vld [vmem:[%s7501_s13 + $0x84] sm:$0xf] }
 0x167   : > { %v6278_v7 = vpop.f32.mrb[31].mxu1  ;;  %v2080_v31 = vrot.slane %v2078_v25, 4 }
 0x168   : > { %v6279_v1 = vadd.f32 %v6278_v7, %v6277_v22  ;;  %v3426_v15 = vadd.f32 %v6167_v10, %v8666_v60  ;;  %v8885_v9 = vadd.f32 %v6276_v30, %v3423_v2  ;;  %v5918_v30 = vcombine.low %v2065_v23, %v2068_v41  ;;  %v7031_v2 = vld [vmem:[#allocation3 + $0x58] sm:$0xff]   ;;  %v7033_v23 = vld [vmem:[#allocation3 + $0x60] sm:$0xff]  }
 0x169   : > { %v5776_v22 = vrot.slane %v5760_v47, 9  ;;  %v2081_v7 = vrot.slane %v5744_v34, 5  ;;  %6582 = vmatprep.subr.bf16.mxu1 %v7031_v2  ;;  %v7034_v41 = vld [vmem:[#allocation3 + $0x20] sm:$0xff]   ;;  %v5888_v2 = vcombine.low %v5721_v50, %v8888_v46 }
 0x16a   : > { %v8890_v48 = vadd.f32 %v6279_v1, %v3426_v15  ;;  %v6168_v8 = vpop.f32.mrb[32].mxu0 }
 0x16b   : > { %v6169_v39 = vpop.f32.mrb[33].mxu0  ;;  %v2082_v29 = vsel %vm7544_vm5, %v2080_v31, %v2081_v7 }
 0x16c   : > { %v6280_v26 = vpop.f32.mrb[32].mxu1  ;;  %v6170_v51 = vadd.f32 %v6169_v39, %v6168_v8  ;;  %v6171_v18 = vpop.f32.mrb[34].mxu0  ;;  %v1785_v8 = vshll.u32 %v5721_v50, 16  ;;  %v1795_v39 = vshrl.u32 %v8888_v46, 16 }
 0x16d   : > { %v6281_v20 = vpop.f32.mrb[33].mxu1  ;;  %6785 = vmatmul.mubr.bf16.gmra.mrb[136].mxu0 %v5916_v12  ;;  %v6172_v11 = vpop.f32.mrb[35].mxu0  ;;  %v7032_v12 = vld [vmem:[#allocation3 + $0x18] sm:$0xff]  }
 0x16e   : > { %v6282_v35 = vadd.f32 %v6281_v20, %v6280_v26  ;;  %v6283_v0 = vpop.f32.mrb[34].mxu1  ;;  %6788 = vmatprep.mubr.bf16.mxu0 %v5917_v37  ;;  %v3431_v56 = vadd.f32 %v6170_v51, %v8666_v60  ;;  %v6173_v58 = vadd.f32 %v6172_v11, %v6171_v18  ;;  %6583 = vmatpush3.bf16.msra.mxu1 %v7032_v12  ;;  %v1782_v26 = vshrl.u32 %v5721_v50, 16 }
 0x16f   : > { %v6284_v32 = vpop.f32.mrb[35].mxu1  ;;  %v1791_v20 = vshll.u32 %v8888_v46, 16  ;;  %v1797_v18 = vrot.slane %v1795_v39, 4  ;;  %6584 = vmatprep.subr.bf16.mxu1 %v7033_v23 }
 0x170   : > { %v6285_v24 = vadd.f32 %v6284_v32, %v6283_v0  ;;  %v3434_v28 = vadd.f32 %v6173_v58, %v8666_v60  ;;  %v8901_v17 = vadd.f32 %v6282_v35, %v3431_v56  ;;  %v2079_v60 = vsel %vm7544_vm5, %v5776_v22, %v2078_v25 }
 0x171   : > { %v5920_v10 = vcombine.low %v2079_v60, %v2082_v29  ;;  %v1784_v35 = vrot.slane %v1782_v26, 4  ;;  %v1787_v0 = vrot.slane %v1785_v8, 5  ;;  %v1793_v51 = vrot.slane %v1791_v20, 5 }
 0x172   : > { %v8903_v62 = vadd.f32 %v6285_v24, %v3434_v28  ;;  %v6174_v19 = vpop.f32.mrb[36].mxu0  ;;  %v1801_v56 = vshll.u32 %v5744_v34, 16  ;;  %6585 = vmatpush3.bf16.msra.mxu1 %v7034_v41 }
 0x173   : > { %v6175_v13 = vpop.f32.mrb[37].mxu0  ;;  %v1788_v11 = vor.u32 %v1787_v0, %v1784_v35  ;;  %v1798_v24 = vor.u32 %v1797_v18, %v1793_v51  ;;  %v5725_v18 = vld [vmem:[%s7501_s13 + $0x9c] sm:$0xf] }
 0x174   : > { %v6286_v5 = vpop.f32.mrb[36].mxu1  ;;  %v6177_v1 = vpop.f32.mrb[38].mxu0  ;;  %v8917_v13 = vld [vmem:[%s7501_s13 + $0x94] sm:$0xf]  ;;  %v1830_v41 = vshrl.u32 %v5725_v18, 16 }
 0x175   : > { %v6287_v36 = vpop.f32.mrb[37].mxu1  ;;  %6789 = vmatmul.mubr.bf16.gmra.mrb[140].mxu0 %v5918_v30  ;;  %v6178_v43 = vpop.f32.mrb[39].mxu0  ;;  %v1789_v31 = vrot.slane %v1788_v11, 4  ;;  %v1799_v7 = vrot.slane %v1798_v24, 4  ;;  %v1803_v5 = vrot.slane %v1801_v56, 5 }
 0x176   : > { %v6289_v45 = vpop.f32.mrb[38].mxu1  ;;  %6792 = vmatprep.mubr.bf16.mxu0 %v5919_v57  ;;  %v5723_v36 = vld [vmem:[%s7501_s13 + $0x90] sm:$0xf]  ;;  %v1819_v43 = vshrl.u32 %v8917_v13, 16 }
 0x177   : > { %v6290_v38 = vpop.f32.mrb[39].mxu1  ;;  %v1794_v45 = vsel %vm7532_vm4, %v1789_v31, %v1793_v51  ;;  %v1804_v34 = vsel %vm7532_vm4, %v1799_v7, %v1803_v5  ;;  %v1806_v1 = vshrl.u32 %v5723_v36, 16  ;;  %v1809_v60 = vshll.u32 %v5723_v36, 16  ;;  %v7037_v31 = vld [vmem:[#allocation3 + $0x68] sm:$0xff]   ;;  %v8942_v5 = vld [vmem:[%s7501_s13 + $0xa4] sm:$0x1] }
 0x178   : > { %v5904_v29 = vcombine.low %v1794_v45, %v1804_v34  ;;  %v1815_v38 = vshll.u32 %v8917_v13, 16  ;;  %v7038_v7 = vld [vmem:[#allocation3 + $0x28] sm:$0xff]   ;;  %6586 = vmatprep.subr.bf16.mxu1 %v7037_v31 }
 0x179   : > { %v1811_v12 = vrot.slane %v1809_v60, 5  ;;  %6587 = vmatpush3.bf16.msra.mxu1 %v7038_v7 }
 0x17a   : > { %v6180_v33 = vpop.f32.mrb[40].mxu0  ;;  %3919 = vmatprep.mubr.bf16.mxu1 %v5904_v29  ;;  %v1849_v29 = vshll.u32 %v8942_v5, 16 }
 0x17b   : > { %v6181_v44 = vpop.f32.mrb[41].mxu0  ;;  %v8927_v33 = vld [vmem:[%s7501_s13 + $0x98] sm:$0x1]  ;;  %3920 = vmatmul.mubr.bf16.gmra.mrb[100].mxu1 %v5888_v2 }
 0x17c   : > { %v6292_v21 = vpop.f32.mrb[40].mxu1  ;;  %v6183_v57 = vpop.f32.mrb[42].mxu0  ;;  %v1821_v44 = vrot.slane %v1819_v43, 4 }
 0x17d   : > { %v6293_v55 = vpop.f32.mrb[41].mxu1  ;;  %6793 = vmatmul.mubr.bf16.gmra.mrb[144].mxu0 %v5920_v10  ;;  %v6184_v37 = vpop.f32.mrb[43].mxu0  ;;  %v1808_v10 = vrot.slane %v1806_v1, 4 }
 0x17e   : > { %v6295_v59 = vpop.f32.mrb[42].mxu1  ;;  %v1817_v55 = vrot.slane %v1815_v38, 5  ;;  %v1825_v37 = vshll.u32 %v8927_v33, 16 }
 0x17f   : > { %v6296_v15 = vpop.f32.mrb[43].mxu1 }
 0x180   : > { %v1812_v15 = vor.u32 %v1811_v12, %v1808_v10  ;;  %v1822_v20 = vor.u32 %v1821_v44, %v1817_v55  ;;  %v1827_v35 = vrot.slane %v1825_v37, 5  ;;  %v5727_v44 = vld [vmem:[%s7501_s13 + $0xa8] sm:$0xf] }
 0x181   : > { %v1854_v37 = vshrl.u32 %v5727_v44, 16 }
 0x182   : > { %v6186_v47 = vpop.f32.mrb[44].mxu0  ;;  %v1813_v39 = vrot.slane %v1812_v15, 4  ;;  %v1823_v51 = vrot.slane %v1822_v20, 4 }
 0x183   : > { %v6187_v58 = vpop.f32.mrb[45].mxu0  ;;  %v1833_v47 = vshll.u32 %v5725_v18, 16 }
 0x184   : > { %v6298_v32 = vpop.f32.mrb[44].mxu1  ;;  %v6189_v22 = vpop.f32.mrb[46].mxu0  ;;  %v1818_v23 = vsel %vm7532_vm4, %v1813_v39, %v1817_v55  ;;  %v1828_v11 = vsel %vm7532_vm4, %v1823_v51, %v1827_v35  ;;  %v5889_v58 = vcombine.low %v5723_v36, %v8917_v13  ;;  %v1856_v39 = vrot.slane %v1854_v37, 4  ;;  %v7042_v37 = vld [vmem:[#allocation3 + $0x30] sm:$0xff]  }
 0x185   : > { %v6299_v25 = vpop.f32.mrb[45].mxu1  ;;  %v6190_v19 = vpop.f32.mrb[47].mxu0  ;;  %v8932_v32 = vld [vmem:[%s7501_s13 + $0xa0] sm:$0xf]  ;;  %v5905_v56 = vcombine.low %v1818_v23, %v1828_v11  ;;  %v1835_v22 = vrot.slane %v1833_v47, 5 }
 0x186   : > { %v6301_v30 = vpop.f32.mrb[46].mxu1  ;;  %v1839_v25 = vshll.u32 %v8932_v32, 16  ;;  %v1843_v24 = vshrl.u32 %v8932_v32, 16  ;;  %v8957_v23 = vld [vmem:[%s7501_s13 + $0xb0] sm:$0x1] }
 0x187   : > { %v6302_v28 = vpop.f32.mrb[47].mxu1  ;;  %v1832_v30 = vrot.slane %v1830_v41, 4  ;;  %3927 = vmatprep.mubr.bf16.mxu1 %v5905_v56  ;;  %v1873_v56 = vshll.u32 %v8957_v23, 16 }
 0x188   : > { %v1841_v19 = vrot.slane %v1839_v25, 5  ;;  %v1845_v60 = vrot.slane %v1843_v24, 4  ;;  %3928 = vmatmul.mubr.bf16.gmra.mrb[104].mxu1 %v5889_v58 }
 0x189   : > { %v1836_v1 = vor.u32 %v1835_v22, %v1832_v30  ;;  %v1875_v7 = vrot.slane %v1873_v56, 5  ;;  %v8980_v56 = vld [vmem:[%s7501_s13 + $0xc0] sm:$0xf] }
 0x18a   : > { %v6192_v59 = vpop.f32.mrb[48].mxu0  ;;  %v1846_v12 = vor.u32 %v1845_v60, %v1841_v19 }
 0x18b   : > { %v6193_v26 = vpop.f32.mrb[49].mxu0  ;;  %v1837_v10 = vrot.slane %v1836_v1, 4  ;;  %v8947_v59 = vld [vmem:[%s7501_s13 + $0xac] sm:$0xf]  ;;  %v8964_v1 = vld [vmem:[%s7501_s13 + $0xb8] sm:$0xf] }
 0x18c   : > { %v6304_v21 = vpop.f32.mrb[48].mxu1  ;;  %v6195_v46 = vpop.f32.mrb[50].mxu0  ;;  %v1847_v15 = vrot.slane %v1846_v12, 4  ;;  %v1857_v26 = vshll.u32 %v5727_v44, 16  ;;  %v1867_v20 = vshrl.u32 %v8947_v59, 16  ;;  %v5891_v12 = vcombine.low %v5727_v44, %v8947_v59 }
 0x18d   : > { %v6305_v57 = vpop.f32.mrb[49].mxu1  ;;  %v6196_v0 = vpop.f32.mrb[51].mxu0  ;;  %v1851_v21 = vrot.slane %v1849_v29, 5 }
 0x18e   : > { %v6307_v8 = vpop.f32.mrb[50].mxu1  ;;  %v1842_v57 = vsel %vm7532_vm4, %v1837_v10, %v1841_v19  ;;  %v1859_v35 = vrot.slane %v1857_v26, 5  ;;  %v1869_v47 = vrot.slane %v1867_v20, 4  ;;  %v8976_v26 = vld [vmem:[%s7501_s13 + $0xbc] sm:$0x1] }
 0x18f   : > { %v6308_v50 = vpop.f32.mrb[51].mxu1  ;;  %v1863_v8 = vshll.u32 %v8947_v59, 16  ;;  %v1852_v46 = vsel %vm7532_vm4, %v1847_v15, %v1851_v21  ;;  %v7041_v15 = vld [vmem:[#allocation3 + $0x70] sm:$0xff]  }
 0x190   : > { %v5890_v50 = vcombine.low %v5725_v18, %v8932_v32  ;;  %v5906_v51 = vcombine.low %v1842_v57, %v1852_v46  ;;  %v1860_v24 = vor.u32 %v1859_v35, %v1856_v39  ;;  %v1897_v35 = vshll.u32 %v8976_v26, 16  ;;  %6588 = vmatprep.subr.bf16.mxu1 %v7041_v15 }
 0x191   : > { %v1865_v41 = vrot.slane %v1863_v8, 5  ;;  %6589 = vmatpush3.bf16.msra.mxu1 %v7042_v37 }
 0x192   : > { %v6198_v45 = vpop.f32.mrb[52].mxu0  ;;  %3935 = vmatprep.mubr.bf16.mxu1 %v5906_v51  ;;  %v1861_v31 = vrot.slane %v1860_v24, 4 }
 0x193   : > { %v6199_v38 = vpop.f32.mrb[53].mxu0  ;;  %v1870_v22 = vor.u32 %v1869_v47, %v1865_v41  ;;  %3936 = vmatmul.mubr.bf16.gmra.mrb[108].mxu1 %v5890_v50 }
 0x194   : > { %v6310_v28 = vpop.f32.mrb[52].mxu1  ;;  %v6201_v36 = vpop.f32.mrb[54].mxu0  ;;  %v1866_v60 = vsel %vm7532_vm4, %v1861_v31, %v1865_v41 }
 0x195   : > { %v6311_v34 = vpop.f32.mrb[53].mxu1  ;;  %v6202_v55 = vpop.f32.mrb[55].mxu0  ;;  %v1871_v45 = vrot.slane %v1870_v22, 4 }
 0x196   : > { %v6313_v43 = vpop.f32.mrb[54].mxu1  ;;  %v8961_v34 = vld [vmem:[%s7501_s13 + $0xb4] sm:$0xf] }
 0x197   : > { %v6314_v2 = vpop.f32.mrb[55].mxu1  ;;  %v1878_v29 = vshrl.u32 %v8961_v34, 16  ;;  %v1881_v38 = vshll.u32 %v8961_v34, 16  ;;  %v1887_v43 = vshll.u32 %v8964_v1, 16  ;;  %v1876_v36 = vsel %vm7532_vm4, %v1871_v45, %v1875_v7 }
 0x198   : > { %v1891_v2 = vshrl.u32 %v8964_v1, 16  ;;  %v5907_v10 = vcombine.low %v1866_v60, %v1876_v36  ;;  %v5892_v45 = vcombine.low %v8961_v34, %v8964_v1  ;;  %v7045_v36 = vld [vmem:[#allocation3 + $0x100] sm:$0xff]  }
 0x199   : > { %v1880_v21 = vrot.slane %v1878_v29, 4  ;;  %v1883_v55 = vrot.slane %v1881_v38, 5  ;;  %v1889_v8 = vrot.slane %v1887_v43, 5  ;;  %v7044_v43 = vld [vmem:[#allocation3 + $0x140] sm:$0xff]  }
 0x19a   : > { %v6204_v25 = vpop.f32.mrb[56].mxu0  ;;  %3943 = vmatprep.mubr.bf16.mxu1 %v5907_v10  ;;  %v1893_v39 = vrot.slane %v1891_v2, 4  ;;  %v8996_v2 = vld [vmem:[%s7501_s13 + $0xc8] sm:$0x1]  ;;  %6656 = vmatprep.subr.bf16.mxu0 %v7044_v43 }
 0x19b   : > { %v6205_v58 = vpop.f32.mrb[57].mxu0  ;;  %v1884_v50 = vor.u32 %v1883_v55, %v1880_v21  ;;  %3944 = vmatmul.mubr.bf16.gmra.mrb[112].mxu1 %v5891_v12  ;;  %v1921_v15 = vshll.u32 %v8996_v2, 16  ;;  %6657 = vmatpush3.bf16.msra.mxu0 %v7045_v36  ;;  %v2095_v36 = vrot.slane %v8942_v5, 5 }
 0x19c   : > { %v6316_v0 = vpop.f32.mrb[56].mxu1  ;;  %v6207_v18 = vpop.f32.mrb[58].mxu0  ;;  %v1894_v25 = vor.u32 %v1893_v39, %v1889_v8  ;;  %v8983_v58 = vld [vmem:[%s7501_s13 + $0xc4] sm:$0xf] }
 0x19d   : > { %v6317_v11 = vpop.f32.mrb[57].mxu1  ;;  %v6208_v19 = vpop.f32.mrb[59].mxu0  ;;  %v1885_v47 = vrot.slane %v1884_v50, 4  ;;  %v1902_v18 = vshrl.u32 %v8980_v56, 16  ;;  %v1911_v31 = vshll.u32 %v8983_v58, 16  ;;  %v1915_v7 = vshrl.u32 %v8983_v58, 16 }
 0x19e   : > { %v6319_v30 = vpop.f32.mrb[58].mxu1  ;;  %v1899_v11 = vrot.slane %v1897_v35, 5  ;;  %v1895_v22 = vrot.slane %v1894_v25, 4  ;;  %v1923_v39 = vrot.slane %v1921_v15, 5  ;;  %v5761_v25 = vld [vmem:[%s7501_s13 + $0x90] sm:$0xe] }
 0x19f   : > { %v6320_v28 = vpop.f32.mrb[59].mxu1  ;;  %v1890_v30 = vsel %vm7532_vm4, %v1885_v47, %v1889_v8  ;;  %v1904_v60 = vrot.slane %v1902_v18, 4  ;;  %v1913_v10 = vrot.slane %v1911_v31, 5  ;;  %v1917_v12 = vrot.slane %v1915_v7, 4 }
 0x1a0   : > { %v1905_v28 = vshll.u32 %v8980_v56, 16  ;;  %v1900_v19 = vsel %vm7532_vm4, %v1895_v22, %v1899_v11  ;;  %v2092_v11 = vrot.slane %v8932_v32, 5  ;;  %v5777_v18 = vrot.slane %v5761_v25, 9 }
 0x1a1   : > { %v5908_v38 = vcombine.low %v1890_v30, %v1900_v19  ;;  %v1918_v34 = vor.u32 %v1917_v12, %v1913_v10  ;;  %v7046_v30 = vld [vmem:[#allocation3 + $0x148] sm:$0xff]   ;;  %v2088_v31 = vrot.slane %v8927_v33, 5 }
 0x1a2   : > { %v6210_v20 = vpop.f32.mrb[60].mxu0  ;;  %v1907_v29 = vrot.slane %v1905_v28, 5  ;;  %v7047_v19 = vld [vmem:[#allocation3 + $0x108] sm:$0xff]   ;;  %6658 = vmatprep.subr.bf16.mxu0 %v7046_v30 }
 0x1a3   : > { %v6211_v0 = vpop.f32.mrb[61].mxu0  ;;  %3951 = vmatprep.mubr.bf16.mxu1 %v5908_v38  ;;  %v9015_v38 = vld [vmem:[%s7501_s13 + $0xd0] sm:$0xf]  ;;  %6659 = vmatpush3.bf16.msra.mxu0 %v7047_v19  ;;  %v7053_v19 = vld [vmem:[#allocation3 + $0x158] sm:$0xff]  }
 0x1a4   : > { %v6322_v57 = vpop.f32.mrb[60].mxu1  ;;  %v6213_v44 = vpop.f32.mrb[62].mxu0  ;;  %3952 = vmatmul.mubr.bf16.gmra.mrb[116].mxu1 %v5892_v45  ;;  %v5893_v45 = vcombine.low %v8980_v56, %v8983_v58  ;;  %v1935_v5 = vshll.u32 %v9015_v38, 16 }
 0x1a5   : > { %v6323_v46 = vpop.f32.mrb[61].mxu1  ;;  %v6214_v24 = vpop.f32.mrb[63].mxu0  ;;  %v1908_v57 = vor.u32 %v1907_v29, %v1904_v60  ;;  %v2085_v44 = vrot.slane %v8917_v13, 5  ;;  %v5762_v13 = vld [vmem:[%s7501_s13 + $0x9c] sm:$0xe]  ;;  %v2094_v29 = vrot.slane %v2092_v11, 4 }
 0x1a6   : > { %v6325_v51 = vpop.f32.mrb[62].mxu1  ;;  %v5778_v60 = vrot.slane %v5762_v13, 9 }
 0x1a7   : > { %v6326_v41 = vpop.f32.mrb[63].mxu1  ;;  %v1909_v50 = vrot.slane %v1908_v57, 4  ;;  %v1919_v51 = vrot.slane %v1918_v34, 4  ;;  %v2087_v28 = vrot.slane %v2085_v44, 4  ;;  %v2086_v32 = vsel %vm7544_vm5, %v5777_v18, %v2085_v44 }
 0x1a8   : > { %v9001_v41 = vld [vmem:[%s7501_s13 + $0xcc] sm:$0xf]  ;;  %v2093_v56 = vsel %vm7544_vm5, %v5778_v60, %v2092_v11  ;;  %v1939_v34 = vshrl.u32 %v9015_v38, 16  ;;  %v1937_v11 = vrot.slane %v1935_v5, 5 }
 0x1a9   : > { %v1914_v47 = vsel %vm7532_vm4, %v1909_v50, %v1913_v10  ;;  %v1926_v24 = vshrl.u32 %v9001_v41, 16  ;;  %v1924_v22 = vsel %vm7532_vm4, %v1919_v51, %v1923_v39  ;;  %v2089_v43 = vsel %vm7544_vm5, %v2087_v28, %v2088_v31  ;;  %v9030_v51 = vld [vmem:[%s7501_s13 + $0xd4] sm:$0x1]  ;;  %v7049_v28 = vld [vmem:[#allocation3 + $0x78] sm:$0xff]  }
 0x1aa   : > { %v6344_v21 = vpop.f32.mrb[64].mxu0  ;;  %v5909_v7 = vcombine.low %v1914_v47, %v1924_v22  ;;  %v5921_v12 = vcombine.low %v2086_v32, %v2089_v43  ;;  %v7051_v31 = vld [vmem:[#allocation3 + $0x38] sm:$0xff]   ;;  %v1945_v60 = vshll.u32 %v9030_v51, 16  ;;  %v5764_v32 = vld [vmem:[%s7501_s13 + $0xb4] sm:$0xe]  ;;  %6590 = vmatprep.subr.bf16.mxu1 %v7049_v28  ;;  %v7281_v28 = vmov 0.0  }
 0x1ab   : > { %v6345_v37 = vpop.f32.mrb[65].mxu0  ;;  %v1928_v21 = vrot.slane %v1926_v24, 4  ;;  %v1941_v24 = vrot.slane %v1939_v34, 4  ;;  %6591 = vmatpush3.bf16.msra.mxu1 %v7051_v31  ;;  %4216 = vst [vmem:[#allocation2] sm:$0xff] %v7281_v28  ;;  %4217 = vst [vmem:[#allocation2 + $0x8] sm:$0xff] %v7281_v28 }
 0x1ac   : > { %v6456_v55 = vpop.f32.mrb[64].mxu1  ;;  %v6347_v20 = vpop.f32.mrb[66].mxu0  ;;  %3959 = vmatprep.mubr.bf16.mxu1 %v5909_v7  ;;  %v2096_v37 = vsel %vm7544_vm5, %v2094_v29, %v2095_v36  ;;  %6796 = vmatprep.mubr.bf16.mxu0 %v5921_v12  ;;  %v5763_v7 = vld [vmem:[%s7501_s13 + $0xa8] sm:$0xe]  ;;  %4234 = vst [vmem:[#allocation2 + $0x90] sm:$0xff] %v7281_v28  ;;  %4235 = vst [vmem:[#allocation2 + $0x98] sm:$0xff] %v7281_v28 }
 0x1ad   : > { %v6457_v8 = vpop.f32.mrb[65].mxu1  ;;  %v6348_v35 = vpop.f32.mrb[67].mxu0  ;;  %v1929_v55 = vshll.u32 %v9001_v41, 16  ;;  %3960 = vmatmul.mubr.bf16.gmra.mrb[120].mxu1 %v5893_v45  ;;  %v1942_v45 = vor.u32 %v1941_v24, %v1937_v11  ;;  %v5779_v29 = vrot.slane %v5763_v7, 9  ;;  %v5765_v31 = vld [vmem:[%s7501_s13 + $0xc0] sm:$0xe] }
 0x1ae   : > { %v6459_v46 = vpop.f32.mrb[66].mxu1  ;;  %v7050_v8 = vld [vmem:[#allocation3 + $0x150] sm:$0xff]   ;;  %v5922_v35 = vcombine.low %v2093_v56, %v2096_v37  ;;  %v1947_v56 = vrot.slane %v1945_v60, 5  ;;  %v5780_v37 = vrot.slane %v5764_v32, 9  ;;  %v5781_v7 = vrot.slane %v5765_v31, 9 }
 0x1af   : > { %v6460_v0 = vpop.f32.mrb[67].mxu1  ;;  %v1931_v44 = vrot.slane %v1929_v55, 5  ;;  %6660 = vmatprep.subr.bf16.mxu0 %v7050_v8  ;;  %v1943_v12 = vrot.slane %v1942_v45, 4  ;;  %v2102_v55 = vrot.slane %v8957_v23, 5  ;;  %v2106_v8 = vrot.slane %v8964_v1, 5 }
 0x1b0   : > { %v7052_v0 = vld [vmem:[#allocation3 + $0x110] sm:$0xff]   ;;  %6797 = vmatmul.mubr.bf16.gmra.mrb[148].mxu0 %v5922_v35  ;;  %v2109_v23 = vrot.slane %v8976_v26, 5  ;;  %v2116_v45 = vrot.slane %v8996_v2, 5 }
 0x1b1   : > { %v1932_v13 = vor.u32 %v1931_v44, %v1928_v21  ;;  %6661 = vmatpush3.bf16.msra.mxu0 %v7052_v0  ;;  %v2099_v21 = vrot.slane %v8947_v59, 5  ;;  %v2108_v0 = vrot.slane %v2106_v8, 4  ;;  %v7057_v44 = vld [vmem:[#allocation3 + $0x120] sm:$0xff]  }
 0x1b2   : > { %v6350_v33 = vpop.f32.mrb[68].mxu0  ;;  %6662 = vmatprep.subr.bf16.mxu0 %v7053_v19 }
 0x1b3   : > { %v6351_v57 = vpop.f32.mrb[69].mxu0  ;;  %v2100_v34 = vsel %vm7544_vm5, %v5779_v29, %v2099_v21  ;;  %v2101_v59 = vrot.slane %v2099_v21, 4  ;;  %v2120_v21 = vrot.slane %v9015_v38, 5 }
 0x1b4   : > { %v6462_v10 = vpop.f32.mrb[68].mxu1  ;;  %v6352_v20 = vadd.f32 %v6351_v57, %v6350_v33  ;;  %v6353_v46 = vpop.f32.mrb[70].mxu0  ;;  %v7054_v33 = vld [vmem:[#allocation3 + $0x118] sm:$0xff]  }
 0x1b5   : > { %v6463_v15 = vpop.f32.mrb[69].mxu1  ;;  %v6354_v47 = vpop.f32.mrb[71].mxu0  ;;  %6663 = vmatpush3.bf16.msra.mxu0 %v7054_v33  ;;  %v2103_v53 = vsel %vm7544_vm5, %v2101_v59, %v2102_v55  ;;  %v5766_v33 = vld [vmem:[%s7501_s13 + $0xcc] sm:$0xe] }
 0x1b6   : > { %v6464_v50 = vadd.f32 %v6463_v15, %v6462_v10  ;;  %v6465_v39 = vpop.f32.mrb[70].mxu1  ;;  %v3697_v30 = vadd.f32 %v6352_v20, %v8690_v6  ;;  %v6355_v22 = vadd.f32 %v6354_v47, %v6353_v46  ;;  %v1933_v6 = vrot.slane %v1932_v13, 4  ;;  %v7056_v20 = vld [vmem:[#allocation3 + $0x160] sm:$0xff]  }
 0x1b7   : > { %v6466_v25 = vpop.f32.mrb[71].mxu1  ;;  %v5894_v10 = vcombine.low %v9001_v41, %v9015_v38  ;;  %v1948_v41 = vsel %vm7532_vm4, %v1943_v12, %v1947_v56  ;;  %6664 = vmatprep.subr.bf16.mxu0 %v7056_v20  ;;  %v5782_v56 = vrot.slane %v5766_v33, 9  ;;  %v7063_v38 = vld [vmem:[#allocation3 + $0x130] sm:$0xff]  }
 0x1b8   : > { %v6467_v18 = vadd.f32 %v6466_v25, %v6465_v39  ;;  %v3700_v43 = vadd.f32 %v6355_v22, %v8697_v4  ;;  %v9037_v36 = vadd.f32 %v6464_v50, %v3697_v30  ;;  %v1938_v4 = vsel %vm7532_vm4, %v1933_v6, %v1937_v11  ;;  %v7059_v6 = vld [vmem:[#allocation3 + $0x128] sm:$0xff]  }
 0x1b9   : > { %v5910_v35 = vcombine.low %v1938_v4, %v1948_v41  ;;  %v2107_v25 = vsel %vm7544_vm5, %v5780_v37, %v2106_v8  ;;  %v2113_v11 = vrot.slane %v8983_v58, 5  ;;  %6665 = vmatpush3.bf16.msra.mxu0 %v7057_v44  ;;  %v7058_v58 = vld [vmem:[#allocation3 + $0x168] sm:$0xff]   ;;  %v2121_v37 = vsel %vm7544_vm5, %v5782_v56, %v2120_v21  ;;  %v7061_v41 = vld [vmem:[#allocation3 + $0x170] sm:$0xff]  }
 0x1ba   : > { %v6356_v57 = vpop.f32.mrb[72].mxu0  ;;  %v9043_v15 = vadd.f32 %v6467_v18, %v3700_v43  ;;  %v5923_v18 = vcombine.low %v2100_v34, %v2103_v53  ;;  %6666 = vmatprep.subr.bf16.mxu0 %v7058_v58  ;;  %v2122_v8 = vrot.slane %v2120_v21, 4 }
 0x1bb   : > { %v6357_v5 = vpop.f32.mrb[73].mxu0  ;;  %3967 = vmatprep.mubr.bf16.mxu1 %v5910_v35  ;;  %v2115_v19 = vrot.slane %v2113_v11, 4 }
 0x1bc   : > { %v6358_v46 = vadd.f32 %v6357_v5, %v6356_v57  ;;  %v6359_v50 = vpop.f32.mrb[74].mxu0  ;;  %v6468_v39 = vpop.f32.mrb[72].mxu1  ;;  %3968 = vmatmul.mubr.bf16.gmra.mrb[124].mxu1 %v5894_v10  ;;  %6800 = vmatprep.mubr.bf16.mxu0 %v5923_v18  ;;  %v2114_v10 = vsel %vm7544_vm5, %v5781_v7, %v2113_v11  ;;  %v2123_v57 = vrot.slane %v9030_v51, 5  ;;  %v7060_v5 = vld [vmem:[#allocation3 + $0xc0] sm:$0xff]  }
 0x1bd   : > { %v6360_v47 = vpop.f32.mrb[75].mxu0  ;;  %v6469_v1 = vpop.f32.mrb[73].mxu1  ;;  %v2117_v12 = vsel %vm7544_vm5, %v2115_v19, %v2116_v45  ;;  %6667 = vmatpush3.bf16.msra.mxu0 %v7059_v6  ;;  %6616 = vmatprep.subr.bf16.mxu1 %v7060_v5 }
 0x1be   : > { %v3705_v26 = vadd.f32 %v6358_v46, %v8719_v61  ;;  %v6361_v24 = vadd.f32 %v6360_v47, %v6359_v50  ;;  %v6470_v30 = vadd.f32 %v6469_v1, %v6468_v39  ;;  %v6471_v22 = vpop.f32.mrb[74].mxu1  ;;  %v2110_v61 = vsel %vm7544_vm5, %v2108_v0, %v2109_v23  ;;  %6668 = vmatprep.subr.bf16.mxu0 %v7061_v41  ;;  %v7065_v1 = vld [vmem:[#allocation3 + $0x178] sm:$0xff]  }
 0x1bf   : > { %v6472_v13 = vpop.f32.mrb[75].mxu1  ;;  %v5924_v43 = vcombine.low %v2107_v25, %v2110_v61  ;;  %v2124_v50 = vsel %vm7544_vm5, %v2122_v8, %v2123_v57 }
 0x1c0   : > { %v3708_v60 = vadd.f32 %v6361_v24, %v8726_v54  ;;  %v6473_v29 = vadd.f32 %v6472_v13, %v6471_v22  ;;  %v9068_v32 = vadd.f32 %v6470_v30, %v3705_v26  ;;  %v5925_v54 = vcombine.low %v2114_v10, %v2117_v12  ;;  %v7067_v26 = vld [vmem:[#allocation3 + $0x138] sm:$0xff]  }
 0x1c1   : > { %6801 = vmatmul.mubr.bf16.gmra.mrb[152].mxu0 %v5924_v43  ;;  %v5926_v44 = vcombine.low %v2121_v37, %v2124_v50 }
 0x1c2   : > { %v6362_v2 = vpop.f32.mrb[76].mxu0  ;;  %v9076_v55 = vadd.f32 %v6473_v29, %v3708_v60  ;;  %6804 = vmatprep.mubr.bf16.mxu0 %v5925_v54  ;;  %6669 = vmatpush3.bf16.msra.mxu0 %v7063_v38 }
 0x1c3   : > { %v6363_v4 = vpop.f32.mrb[77].mxu0  ;;  %6670 = vmatprep.subr.bf16.mxu0 %v7065_v1 }
 0x1c4   : > { %v6364_v34 = vadd.f32 %v6363_v4, %v6362_v2  ;;  %v6365_v59 = vpop.f32.mrb[78].mxu0  ;;  %v6474_v23 = vpop.f32.mrb[76].mxu1 }
 0x1c5   : > { %v6366_v20 = vpop.f32.mrb[79].mxu0  ;;  %v6475_v46 = vpop.f32.mrb[77].mxu1 }
 0x1c6   : > { %v3713_v51 = vadd.f32 %v6364_v34, %v8764_v40  ;;  %v6367_v39 = vadd.f32 %v6366_v20, %v6365_v59  ;;  %v6476_v35 = vadd.f32 %v6475_v46, %v6474_v23  ;;  %v6477_v0 = vpop.f32.mrb[78].mxu1  ;;  %6671 = vmatpush3.bf16.msra.mxu0 %v7067_v26  ;;  %v9089_v40 = vld [vmem:[#allocation3 + $0x200] sm:$0xff]  }
 0x1c7   : > { %v6478_v47 = vpop.f32.mrb[79].mxu1  ;;  %6808 = vmatprep.subr.bf16.mxu0 %v9089_v40 }
 0x1c8   : > { %v3716_v53 = vadd.f32 %v6367_v39, %v8776_v27  ;;  %v6479_v25 = vadd.f32 %v6478_v47, %v6477_v0  ;;  %v9085_v11 = vadd.f32 %v6476_v35, %v3713_v51 }
 0x1c9   : > { %6805 = vmatmul.mubr.bf16.gmra.mrb[156].mxu0 %v5926_v44 }
 0x1ca   : > { %v6368_v63 = vpop.f32.mrb[80].mxu0  ;;  %v9087_v24 = vadd.f32 %v6479_v25, %v3716_v53 }
 0x1cb   : > { %v6369_v30 = vpop.f32.mrb[81].mxu0 }
 0x1cc   : > { %v6370_v22 = vadd.f32 %v6369_v30, %v6368_v63  ;;  %v6371_v18 = vpop.f32.mrb[82].mxu0 }
 0x1cd   : > { %v6372_v31 = vpop.f32.mrb[83].mxu0 }
 0x1ce   : > { %v3721_v27 = vadd.f32 %v6370_v22, %v8809_v52  ;;  %v6480_v13 = vpop.f32.mrb[80].mxu1  ;;  %v6373_v61 = vadd.f32 %v6372_v31, %v6371_v18 }
 0x1cf   : > { %v6481_v58 = vpop.f32.mrb[81].mxu1 }
 0x1d0   : > { %v3724_v7 = vadd.f32 %v6373_v61, %v8819_v14  ;;  %v6482_v19 = vadd.f32 %v6481_v58, %v6480_v13  ;;  %v6483_v45 = vpop.f32.mrb[82].mxu1 }
 0x1d1   : > { %v6484_v60 = vpop.f32.mrb[83].mxu1 }
 0x1d2   : > { %v6485_v29 = vadd.f32 %v6484_v60, %v6483_v45  ;;  %v6374_v43 = vpop.f32.mrb[84].mxu0  ;;  %v9094_v6 = vadd.f32 %v6482_v19, %v3721_v27 }
 0x1d3   : > { %v6375_v33 = vpop.f32.mrb[85].mxu0 }
 0x1d4   : > { %v6376_v10 = vadd.f32 %v6375_v33, %v6374_v43  ;;  %v6377_v12 = vpop.f32.mrb[86].mxu0  ;;  %v9096_v56 = vadd.f32 %v6485_v29, %v3724_v7 }
 0x1d5   : > { %v6378_v21 = vpop.f32.mrb[87].mxu0 }
 0x1d6   : > { %v3729_v52 = vadd.f32 %v6376_v10, %v8842_v16  ;;  %v6379_v2 = vadd.f32 %v6378_v21, %v6377_v12 }
 0x1d8   : > { %v6486_v54 = vpop.f32.mrb[84].mxu1  ;;  %v3732_v57 = vadd.f32 %v6379_v2, %v8845_v42 }
 0x1d9   : > { %v6487_v14 = vpop.f32.mrb[85].mxu1 }
 0x1da   : > { %v6488_v4 = vadd.f32 %v6487_v14, %v6486_v54  ;;  %v6489_v37 = vpop.f32.mrb[86].mxu1 }
 0x1db   : > { %v6490_v8 = vpop.f32.mrb[87].mxu1 }
 0x1dc   : > { %v6491_v5 = vadd.f32 %v6490_v8, %v6489_v37  ;;  %v6380_v41 = vpop.f32.mrb[88].mxu0  ;;  %v9100_v34 = vadd.f32 %v6488_v4, %v3729_v52 }
 0x1dd   : > { %v6381_v59 = vpop.f32.mrb[89].mxu0 }
 0x1de   : > { %v6382_v23 = vadd.f32 %v6381_v59, %v6380_v41  ;;  %v6383_v38 = vpop.f32.mrb[90].mxu0  ;;  %v9102_v20 = vadd.f32 %v6491_v5, %v3732_v57 }
 0x1df   : > { %v6384_v46 = vpop.f32.mrb[91].mxu0 }
 0x1e0   : > { %v3737_v16 = vadd.f32 %v6382_v23, %v8867_v49  ;;  %v6385_v50 = vadd.f32 %v6384_v46, %v6383_v38 }
 0x1e2   : > { %v6492_v51 = vpop.f32.mrb[88].mxu1  ;;  %v3740_v42 = vadd.f32 %v6385_v50, %v8870_v3 }
 0x1e3   : > { %v6493_v39 = vpop.f32.mrb[89].mxu1 }
 0x1e4   : > { %v6494_v35 = vadd.f32 %v6493_v39, %v6492_v51  ;;  %v6495_v0 = vpop.f32.mrb[90].mxu1 }
 0x1e5   : > { %v6496_v44 = vpop.f32.mrb[91].mxu1  ;;  %v6386_v47 = vpop.f32.mrb[92].mxu0 }
 0x1e6   : > { %v6497_v1 = vadd.f32 %v6496_v44, %v6495_v0  ;;  %v6387_v53 = vpop.f32.mrb[93].mxu0  ;;  %v9106_v25 = vadd.f32 %v6494_v35, %v3737_v16 }
 0x1e7   : > { %v6388_v26 = vadd.f32 %v6387_v53, %v6386_v47  ;;  %v6389_v63 = vpop.f32.mrb[94].mxu0 }
 0x1e8   : > { %v6390_v30 = vpop.f32.mrb[95].mxu0  ;;  %v9108_v22 = vadd.f32 %v6497_v1, %v3740_v42 }
 0x1e9   : > { %v3745_v49 = vadd.f32 %v6388_v26, %v8885_v9  ;;  %v6391_v18 = vadd.f32 %v6390_v30, %v6389_v63 }
 0x1ea   : > { %v6498_v31 = vpop.f32.mrb[92].mxu1 }
 0x1eb   : > { %v3748_v3 = vadd.f32 %v6391_v18, %v8890_v48  ;;  %v6499_v27 = vpop.f32.mrb[93].mxu1 }
 0x1ec   : > { %v6500_v13 = vadd.f32 %v6499_v27, %v6498_v31  ;;  %v6501_v61 = vpop.f32.mrb[94].mxu1  ;;  %v4169_v31 = vlaneseq }
 0x1ed   : > { %v6502_v58 = vpop.f32.mrb[95].mxu1 }
 0x1ee   : > { %v6503_v19 = vadd.f32 %v6502_v58, %v6501_v61  ;;  %v9112_v60 = vadd.f32 %v6500_v13, %v3745_v49  ;;  %v9122_v61 = vshrl.u32 %v4169_v31, 7 }
 0x1ef   : > { %v6392_v7 = vpop.f32.mrb[96].mxu0 }
 0x1f0   : > { %v6393_v45 = vpop.f32.mrb[97].mxu0  ;;  %v9114_v10 = vadd.f32 %v6503_v19, %v3748_v3  ;;  %vm4172_vm6 = vcmp.ge.s32.totalorder %v9122_v61, 1 }
 0x1f1   : > { %v6394_v29 = vadd.f32 %v6393_v45, %v6392_v7  ;;  %v6395_v43 = vpop.f32.mrb[98].mxu0  ;;  %v9125_v7 = vadd.s32 8, %v9122_v61  ;;  %vm7146_vm9 = vmpackc.low %vm4172_vm6, %vm7282_vm8 }
 0x1f2   : > { %v6396_v33 = vpop.f32.mrb[99].mxu0  ;;  %vm9206_vm10 = vmpackc.low %vm4172_vm6, %vm4172_vm6 }
 0x1f3   : > { %v3753_v9 = vadd.f32 %v6394_v29, %v8901_v17  ;;  %v6397_v12 = vadd.f32 %v6396_v33, %v6395_v43  ;;  %vm4179_vm7 = vcmp.le.s32.totalorder %v9125_v7, 8  ;;  %v7084_v7 = vld [vmem:[#allocation3 + $0x228] sm:$0xff]   ;;  %vm7179_vm12 = vmpackc.low %vm7282_vm8, %vm4172_vm6 }
 0x1f4   : > { %v6504_v48 = vpop.f32.mrb[96].mxu1 }
 0x1f5   : > { %v3756_v21 = vadd.f32 %v6397_v12, %v8903_v62  ;;  %v6505_v52 = vpop.f32.mrb[97].mxu1 }
 0x1f6   : > { %v6506_v2 = vadd.f32 %v6505_v52, %v6504_v48  ;;  %v6507_v54 = vpop.f32.mrb[98].mxu1 }
 0x1f7   : > { %v6508_v57 = vpop.f32.mrb[99].mxu1 }
 0x1f8   : > { %v6398_v14 = vpop.f32.mrb[100].mxu0  ;;  %v6509_v4 = vadd.f32 %v6508_v57, %v6507_v54  ;;  %v9118_v8 = vadd.f32 %v6506_v2, %v3753_v9 }
 0x1f9   : > { %v6399_v37 = vpop.f32.mrb[101].mxu0 }
 0x1fa   : > { %v6401_v5 = vpop.f32.mrb[102].mxu0  ;;  %v9120_v59 = vadd.f32 %v6509_v4, %v3756_v21 }
 0x1fb   : > { %v6402_v41 = vpop.f32.mrb[103].mxu0 }
 0x200   : > { %v6404_v23 = vpop.f32.mrb[104].mxu0 }
 0x201   : > { %v6405_v38 = vpop.f32.mrb[105].mxu0 }
 0x202   : > { %v6407_v17 = vpop.f32.mrb[106].mxu0  ;;  %v4256_v38 = vld [vmem:[#allocation2 + $0x1] sm:$0xff] }
 0x203   : > { %v6408_v46 = vpop.f32.mrb[107].mxu0 }
 0x208   : > { %v6410_v16 = vpop.f32.mrb[108].mxu0 }
 0x209   : > { %v6411_v62 = vpop.f32.mrb[109].mxu0 }
 0x20a   : > { %v6413_v50 = vpop.f32.mrb[110].mxu0  ;;  %v7062_v62 = vld [vmem:[#allocation3 + $0x80] sm:$0xff]  }
 0x20b   : > { %v6414_v51 = vpop.f32.mrb[111].mxu0 }
 0x210   : > { %v6416_v42 = vpop.f32.mrb[112].mxu0 }
 0x211   : > { %v6417_v39 = vpop.f32.mrb[113].mxu0  ;;  %v7064_v42 = vld [vmem:[#allocation3 + $0xc8] sm:$0xff]  }
 0x212   : > { %v6419_v35 = vpop.f32.mrb[114].mxu0 }
 0x213   : > { %v6420_v0 = vpop.f32.mrb[115].mxu0 }
 0x218   : > { %v6422_v44 = vpop.f32.mrb[116].mxu0 }
 0x219   : > { %v6423_v47 = vpop.f32.mrb[117].mxu0 }
 0x21a   : > { %v6425_v1 = vpop.f32.mrb[118].mxu0 }
 0x21b   : > { %v6426_v53 = vpop.f32.mrb[119].mxu0 }
 0x21c   : > { %v7066_v53 = vld [vmem:[#allocation3 + $0x88] sm:$0xff]  }
 0x220   : > { %v6428_v26 = vpop.f32.mrb[120].mxu0 }
 0x221   : > { %v6429_v63 = vpop.f32.mrb[121].mxu0 }
 0x222   : > { %v6431_v30 = vpop.f32.mrb[122].mxu0  ;;  %v7068_v63 = vld [vmem:[#allocation3 + $0xd0] sm:$0xff]  }
 0x223   : > { %v6432_v49 = vpop.f32.mrb[123].mxu0 }
 0x228   : > { %v6434_v18 = vpop.f32.mrb[124].mxu0 }
 0x229   : > { %v6435_v3 = vpop.f32.mrb[125].mxu0 }
 0x22a   : > { %v6437_v27 = vpop.f32.mrb[126].mxu0 }
 0x22b   : > { %v6438_v13 = vpop.f32.mrb[127].mxu0 }
 0x230   : > { %v6778_v58 = vpop.f32.mrb[128].mxu0 }
 0x231   : > { %v4019_v19 = vadd.f32 %v6778_v58, %v9037_v36  ;;  %v4010_v45 = vpop.f32.mrb[129].mxu0 }
 0x232   : > { %v6779_v29 = vpop.f32.mrb[130].mxu0 }
 0x233   : > { %v9129_v43 = vmax.f32 %v4019_v19, 0.0  ;;  %v4022_v33 = vadd.f32 %v6779_v29, %v9043_v15  ;;  %v4013_v9 = vpop.f32.mrb[131].mxu0 }
 0x234   : > { %v7070_v9 = vld [vmem:[#allocation3 + $0x90] sm:$0xff]  }
 0x235   : > { %v4186_v12 = vsel %vm4172_vm6, %v9129_v43, 0.0  ;;  %v4140_v21 = vmax.f32 %v4022_v33, 0.0  ;;  %v7147_v1 = vpack.c.bf16 %v9129_v43, %v7281_v28 }
 0x236   : > { %4218 = vst [vmem:[#allocation2 + $0x10] sm:$0xff] %v4186_v12 }
 0x237   : > { %v4187_v36 = vsel %vm4179_vm7, %v4140_v21, 0.0 }
 0x238   : > { %4219 = vst [vmem:[#allocation2 + $0x18] sm:$0xff] %v4187_v36  ;;  %v6782_v48 = vpop.f32.mrb[132].mxu0  ;;  %v7071_v36 = vld [vmem:[#allocation3 + $0xd8] sm:$0xff]  }
 0x239   : > { %v4035_v52 = vadd.f32 %v6782_v48, %v9085_v11  ;;  %v4026_v2 = vpop.f32.mrb[133].mxu0  ;;  %v7072_v48 = vld [vmem:[#allocation3 + $0x208] sm:$0xff]  }
 0x23a   : > { %v4027_v54 = vadd.f32 %v4026_v2, %v9068_v32  ;;  %v6783_v15 = vpop.f32.mrb[134].mxu0 }
 0x23b   : > { %v9140_v57 = vmax.f32 %v4035_v52, 0.0  ;;  %v4038_v14 = vadd.f32 %v6783_v15, %v9087_v24  ;;  %v4029_v4 = vpop.f32.mrb[135].mxu0 }
 0x23c   : > { %v9143_v37 = vmax.f32 %v4027_v54, 0.0  ;;  %v4030_v5 = vadd.f32 %v4029_v4, %v9076_v55  ;;  %v7073_v4 = vld [vmem:[#allocation3 + $0x98] sm:$0xff]  }
 0x23d   : > { %v4190_v41 = vsel %vm4172_vm6, %v9140_v57, 0.0  ;;  %v4144_v23 = vmax.f32 %v4038_v14, 0.0 }
 0x23e   : > { %4222 = vst [vmem:[#allocation2 + $0x30] sm:$0xff] %v4190_v41  ;;  %v4188_v32 = vsel %vm4172_vm6, %v9143_v37, 0.0  ;;  %v4142_v11 = vmax.f32 %v4030_v5, 0.0  ;;  %v9212_v14 = vpack.c.bf16 %v9140_v57, %v9143_v37 }
 0x23f   : > { %4220 = vst [vmem:[#allocation2 + $0x20] sm:$0xff] %v4188_v32  ;;  %v4191_v24 = vsel %vm4179_vm7, %v4144_v23, 0.0  ;;  %v9154_v17 = vld [vmem:[#allocation2 + $0x11] sm:$0xff]  ;;  %v7074_v23 = vld [vmem:[#allocation3 + $0xe0] sm:$0xff]  }
 0x240   : > { %4223 = vst [vmem:[#allocation2 + $0x38] sm:$0xff] %v4191_v24  ;;  %v4189_v55 = vsel %vm4179_vm7, %v4142_v11, 0.0  ;;  %v6786_v46 = vpop.f32.mrb[136].mxu0  ;;  %v4323_v16 = vpack.c.bf16 %v9154_v17, %v4256_v38  ;;  %v9184_v27 = vld [vmem:[#allocation2 + $0x12] sm:$0xff] }
 0x241   : > { %4221 = vst [vmem:[#allocation2 + $0x28] sm:$0xff] %v4189_v55  ;;  %v4051_v50 = vadd.f32 %v6786_v46, %v9100_v34  ;;  %v4042_v51 = vpop.f32.mrb[137].mxu0  ;;  %v7075_v38 = vld [vmem:[#allocation3 + $0x210] sm:$0xff]  }
 0x242   : > { %v4043_v39 = vadd.f32 %v4042_v51, %v9094_v6  ;;  %v6787_v35 = vpop.f32.mrb[138].mxu0  ;;  %4973 = vmatprep.mubr.bf16.mxu1 %v4323_v16 }
 0x243   : > { %v9161_v0 = vmax.f32 %v4051_v50, 0.0  ;;  %v4054_v44 = vadd.f32 %v6787_v35, %v9102_v20  ;;  %v4045_v47 = vpop.f32.mrb[139].mxu0  ;;  %7148 = vmatmul.mubr.msk.bf16.vlgmr.msra.gmra.mrb[128].mxu1 %vm7146_vm9, %v7147_v1 }
 0x244   : > { %v9169_v34 = vmax.f32 %v4043_v39, 0.0  ;;  %v4046_v6 = vadd.f32 %v4045_v47, %v9096_v56  ;;  %6617 = vmatpush3.bf16.msra.mxu1 %v7062_v62  ;;  %v7078_v47 = vld [vmem:[#allocation3 + $0x218] sm:$0xff]  }
 0x245   : > { %v4194_v20 = vsel %vm4172_vm6, %v9161_v0, 0.0  ;;  %v4148_v26 = vmax.f32 %v4054_v44, 0.0  ;;  %6618 = vmatprep.subr.bf16.mxu1 %v7064_v42  ;;  %v7076_v42 = vld [vmem:[#allocation3 + $0xa0] sm:$0xff]   ;;  %v7077_v44 = vld [vmem:[#allocation3 + $0xe8] sm:$0xff]  }
 0x246   : > { %4226 = vst [vmem:[#allocation2 + $0x50] sm:$0xff] %v4194_v20  ;;  %v4192_v30 = vsel %vm4172_vm6, %v9169_v34, 0.0  ;;  %v4146_v28 = vmax.f32 %v4046_v6, 0.0  ;;  %v9244_v20 = vpack.c.bf16 %v9161_v0, %v9169_v34 }
 0x247   : > { %4224 = vst [vmem:[#allocation2 + $0x40] sm:$0xff] %v4192_v30  ;;  %v4195_v49 = vsel %vm4179_vm7, %v4148_v26, 0.0  ;;  %v9180_v56 = vld [vmem:[#allocation2 + $0x31] sm:$0xff]  ;;  %v7081_v30 = vld [vmem:[#allocation3 + $0x220] sm:$0xff]  }
 0x248   : > { %4227 = vst [vmem:[#allocation2 + $0x58] sm:$0xff] %v4195_v49  ;;  %v4193_v18 = vsel %vm4179_vm7, %v4146_v28, 0.0  ;;  %v6790_v31 = vpop.f32.mrb[140].mxu0  ;;  %6619 = vmatpush3.bf16.msra.mxu1 %v7066_v53  ;;  %v4258_v3 = vld [vmem:[#allocation2 + $0x21] sm:$0xff]  ;;  %v9228_v55 = vld [vmem:[#allocation2 + $0x32] sm:$0xff] }
 0x249   : > { %v9186_v13 = vld [vmem:[#allocation2 + $0x22] sm:$0xff]  ;;  %4225 = vst [vmem:[#allocation2 + $0x48] sm:$0xff] %v4193_v18  ;;  %v4067_v58 = vadd.f32 %v6790_v31, %v9112_v60  ;;  %v4058_v19 = vpop.f32.mrb[141].mxu0  ;;  %v9190_v45 = vpack.c.bf16 %v9180_v56, %v4258_v3  ;;  %6620 = vmatprep.subr.bf16.mxu1 %v7068_v63  ;;  %v4326_v33 = vpack.c.bf16 %v4258_v3, %v9154_v17 }
 0x24a   : > { %v4327_v29 = vpack.c.bf16 %v9186_v13, %v9184_v27  ;;  %v4059_v12 = vadd.f32 %v4058_v19, %v9106_v25  ;;  %v6791_v21 = vpop.f32.mrb[142].mxu0 }
 0x24b   : > { %v9196_v52 = vmax.f32 %v4067_v58, 0.0  ;;  %v4070_v60 = vadd.f32 %v6791_v21, %v9114_v10  ;;  %v4061_v2 = vpop.f32.mrb[143].mxu0  ;;  %4981 = vmatprep.mubr.bf16.mxu1 %v9190_v45  ;;  %v7085_v21 = vld [vmem:[#allocation3 + $0xb8] sm:$0xff]  }
 0x24c   : > { %5103 = vmatprep.mubr.bf16.mxu0 %v4327_v29  ;;  %v9200_v54 = vmax.f32 %v4059_v12, 0.0  ;;  %v4062_v15 = vadd.f32 %v4061_v2, %v9108_v22  ;;  %7151 = vmatmul.mubr.msk.bf16.gmra.mrb[132].mxu1 %vm9206_vm10, %v9212_v14  ;;  %v7082_v29 = vld [vmem:[#allocation3 + $0xb0] sm:$0xff]   ;;  %v7159_v12 = vpack.c.bf16 %v9143_v37, %v9129_v43  ;;  %v7088_v37 = vld [vmem:[#allocation3 + $0x180] sm:$0xff]  }
 0x24d   : > { %5104 = vmatmul.mubr.bf16.vlgmr.msra.gmra.mrb[160].mxu0 %v4326_v33  ;;  %v4198_v22 = vsel %vm4172_vm6, %v9196_v52, 0.0  ;;  %v4152_v10 = vmax.f32 %v4070_v60, 0.0  ;;  %6621 = vmatpush3.bf16.msra.mxu1 %v7070_v9  ;;  %v7083_v33 = vld [vmem:[#allocation3 + $0xf8] sm:$0xff]   ;;  %v7087_v60 = vld [vmem:[#allocation3 + $0x230] sm:$0xff]  }
 0x24e   : > { %6809 = vmatpush3.bf16.msra.mxu0 %v9089_v40  ;;  %4230 = vst [vmem:[#allocation2 + $0x70] sm:$0xff] %v4198_v22  ;;  %v4196_v5 = vsel %vm4172_vm6, %v9200_v54, 0.0  ;;  %v4150_v41 = vmax.f32 %v4062_v15, 0.0  ;;  %6622 = vmatprep.subr.bf16.mxu1 %v7071_v36  ;;  %v9265_v9 = vpack.c.bf16 %v9196_v52, %v9200_v54  ;;  %v7086_v36 = vld [vmem:[#allocation3 + $0x1c0] sm:$0xff]   ;;  %v6510_v2 = vpop.f32.mrb[100].mxu1 }
 0x24f   : > { %6810 = vmatprep.subr.bf16.mxu0 %v7072_v48  ;;  %4228 = vst [vmem:[#allocation2 + $0x60] sm:$0xff] %v4196_v5  ;;  %v4199_v32 = vsel %vm4179_vm7, %v4152_v10, 0.0  ;;  %v4261_v11 = vld [vmem:[#allocation2 + $0x51] sm:$0xff]  ;;  %v6073_v2 = vld [vmem:[%s7501_s13 + $0x18] sm:$0xe] }
 0x250   : > { %4231 = vst [vmem:[#allocation2 + $0x78] sm:$0xff] %v4199_v32  ;;  %v4197_v40 = vsel %vm4179_vm7, %v4150_v41, 0.0  ;;  %v6794_v24 = vpop.f32.mrb[144].mxu0  ;;  %v4260_v17 = vld [vmem:[#allocation2 + $0x41] sm:$0xff]  ;;  %v9254_v18 = vld [vmem:[#allocation2 + $0x52] sm:$0xff] }
 0x251   : > { %v9230_v46 = vld [vmem:[#allocation2 + $0x42] sm:$0xff]  ;;  %4229 = vst [vmem:[#allocation2 + $0x68] sm:$0xff] %v4197_v40  ;;  %v4074_v16 = vpop.f32.mrb[145].mxu0  ;;  %6623 = vmatpush3.bf16.msra.mxu1 %v7073_v4  ;;  %v9232_v62 = vpack.c.bf16 %v4261_v11, %v4260_v17  ;;  %v4335_v51 = vpack.c.bf16 %v4260_v17, %v9180_v56  ;;  %v6511_v4 = vpop.f32.mrb[101].mxu1  ;;  %v4330_v40 = vpack.c.bf16 %v9228_v55, %v9186_v13 }
 0x252   : > { %6811 = vmatpush3.bf16.msra.mxu0 %v7072_v48  ;;  %v4336_v50 = vpack.c.bf16 %v9230_v46, %v9228_v55  ;;  %v4075_v39 = vadd.f32 %v4074_v16, %v9118_v8  ;;  %v6795_v35 = vpop.f32.mrb[146].mxu0  ;;  %6624 = vmatprep.subr.bf16.mxu1 %v7074_v23  ;;  %v7079_v8 = vld [vmem:[#allocation3 + $0xa8] sm:$0xff]   ;;  %v6513_v41 = vpop.f32.mrb[102].mxu1  ;;  %v7162_v24 = vpack.c.bf16 %v9169_v34, %v9140_v57  ;;  %v7094_v34 = vld [vmem:[#allocation3 + $0x1d8] sm:$0xff]   ;;  %v6075_v4 = vld [vmem:[%s7501_s13 + $0x24] sm:$0xe] }
 0x253   : > { %6812 = vmatprep.subr.bf16.mxu0 %v7075_v38  ;;  %v4077_v1 = vpop.f32.mrb[147].mxu0  ;;  %4989 = vmatprep.mubr.bf16.mxu1 %v9232_v62  ;;  %v4264_v48 = vld [vmem:[#allocation2 + $0x2] sm:$0xff]  ;;  %v4339_v57 = vpack.c.bf16 %v9254_v18, %v9230_v46  ;;  %v7095_v35 = vld [vmem:[#allocation3 + $0x198] sm:$0xff]   ;;  %v5290_v41 = vunpack.c.l.bf16 %v6073_v2 }
 0x254   : > { %5111 = vmatprep.mubr.bf16.mxu0 %v4336_v50  ;;  %v9239_v6 = vmax.f32 %v4075_v39, 0.0  ;;  %v4078_v53 = vadd.f32 %v4077_v1, %v9120_v59  ;;  %7154 = vmatmul.mubr.msk.bf16.gmra.mrb[136].mxu1 %vm9206_vm10, %v9244_v20  ;;  %v7080_v59 = vld [vmem:[#allocation3 + $0xf0] sm:$0xff]   ;;  %v4324_v23 = vpack.c.bf16 %v9184_v27, %v4264_v48  ;;  %v7089_v32 = vld [vmem:[#allocation3 + $0x1c8] sm:$0xff]   ;;  %v7165_v39 = vpack.c.bf16 %v9200_v54, %v9161_v0  ;;  %v7097_v46 = vld [vmem:[#allocation3 + $0x1a0] sm:$0xff]  }
 0x255   : > { %5112 = vmatmul.mubr.bf16.gmra.mrb[164].mxu0 %v4335_v51  ;;  %6625 = vmatpush3.bf16.msra.mxu1 %v7076_v42  ;;  %v7091_v17 = vld [vmem:[#allocation3 + $0x188] sm:$0xff]   ;;  %v7092_v27 = vld [vmem:[#allocation3 + $0x1d0] sm:$0xff]   ;;  %v7107_v48 = vld [vmem:[%s9442_s5 + $0x18] sm:$0xff]  }
 0x256   : > { %6813 = vmatpush3.bf16.msra.mxu0 %v7075_v38  ;;  %v4200_v26 = vsel %vm4172_vm6, %v9239_v6, 0.0  ;;  %v4154_v63 = vmax.f32 %v4078_v53, 0.0  ;;  %6626 = vmatprep.subr.bf16.mxu1 %v7077_v44  ;;  %v6514_v38 = vpop.f32.mrb[103].mxu1  ;;  %v7093_v51 = vld [vmem:[#allocation3 + $0x190] sm:$0xff]   ;;  %v7096_v44 = vld [vmem:[#allocation3 + $0x1e0] sm:$0xff]   ;;  %v7168_v0 = vpack.c.bf16 %v9239_v6, %v9196_v52  ;;  %v7099_v54 = vld [vmem:[#allocation3 + $0x1a8] sm:$0xff]  }
 0x257   : > { %6814 = vmatprep.subr.bf16.mxu0 %v7078_v47  ;;  %4232 = vst [vmem:[#allocation2 + $0x80] sm:$0xff] %v4200_v26  ;;  %v4263_v28 = vld [vmem:[#allocation2 + $0x71] sm:$0xff]  ;;  %v7098_v26 = vld [vmem:[#allocation3 + $0x1e8] sm:$0xff]  }
 0x258   : > { %v4201_v49 = vsel %vm4179_vm7, %v4154_v63, 0.0  ;;  %v4262_v56 = vld [vmem:[#allocation2 + $0x61] sm:$0xff]  ;;  %v4295_v15 = vld [vmem:[#allocation2 + $0x72] sm:$0xff] }
 0x259   : > { %v9256_v31 = vld [vmem:[#allocation2 + $0x62] sm:$0xff]  ;;  %4233 = vst [vmem:[#allocation2 + $0x88] sm:$0xff] %v4201_v49  ;;  %6627 = vmatpush3.bf16.msra.mxu1 %v7079_v8  ;;  %v9258_v3 = vpack.c.bf16 %v4263_v28, %v4262_v56  ;;  %v4344_v19 = vpack.c.bf16 %v4262_v56, %v4261_v11  ;;  %v7090_v11 = vld [vmem:[#allocation3 + $0x238] sm:$0xff]   ;;  %v7101_v49 = vld [vmem:[#allocation3 + $0x1b0] sm:$0xff]  }
 0x25a   : > { %6815 = vmatpush3.bf16.msra.mxu0 %v7078_v47  ;;  %v4345_v58 = vpack.c.bf16 %v9256_v31, %v9254_v18  ;;  %6628 = vmatprep.subr.bf16.mxu1 %v7080_v59  ;;  %v4348_v42 = vpack.c.bf16 %v4295_v15, %v9256_v31  ;;  %v4321_v47 = vld [vmem:[#allocation2 + $0x92] sm:$0xff] }
 0x25b   : > { %6816 = vmatprep.subr.bf16.mxu0 %v7081_v30  ;;  %4997 = vmatprep.mubr.bf16.mxu1 %v9258_v3  ;;  %v6516_v16 = vpop.f32.mrb[104].mxu1  ;;  %v7102_v18 = vld [vmem:[#allocation3 + $0x1f8] sm:$0xff]  }
 0x25c   : > { %5119 = vmatprep.mubr.bf16.mxu0 %v4345_v58  ;;  %7157 = vmatmul.mubr.msk.bf16.gmra.mrb[140].mxu1 %vm9206_vm10, %v9265_v9  ;;  %v6517_v50 = vpop.f32.mrb[105].mxu1  ;;  %v7103_v52 = vld [vmem:[#allocation3 + $0x1b8] sm:$0xff]   ;;  %v5323_v16 = vrot.slane %v5290_v41, 2 }
 0x25d   : > { %5120 = vmatmul.mubr.bf16.gmra.mrb[168].mxu0 %v4344_v19  ;;  %6629 = vmatpush3.bf16.msra.mxu1 %v7082_v29  ;;  %v6519_v13 = vpop.f32.mrb[106].mxu1  ;;  %v7104_v19 = vld [vmem:[%s9442_s5] sm:$0xff]  }
 0x25e   : > { %7160 = vmatprep.mubr.msk.bf16.mxu1 %vm9206_vm10, %v7159_v12  ;;  %6817 = vmatpush3.bf16.msra.mxu0 %v7081_v30  ;;  %v6520_v55 = vpop.f32.mrb[107].mxu1  ;;  %v7100_v30 = vld [vmem:[#allocation3 + $0x1f0] sm:$0xff]  }
 0x25f   : > { %6630 = vmatprep.subr.bf16.mxu1 %v7083_v33  ;;  %6818 = vmatprep.subr.bf16.mxu0 %v7084_v7  ;;  %v6082_v55 = vld [vmem:[%s7501_s13 + $0x4c] sm:$0x1] }
 0x260   : > { %v4296_v22 = vld [vmem:[#allocation2 + $0x82] sm:$0xff]  ;;  %v5299_v25 = vunpack.c.l.bf16 %v6082_v55 }
 0x261   : > { %v9274_v10 = vld [vmem:[#allocation2 + $0x81] sm:$0xff]  ;;  %6631 = vmatpush3.bf16.msra.mxu1 %v7085_v21  ;;  %v4354_v5 = vpack.c.bf16 %v4296_v22, %v4295_v15  ;;  %v4357_v8 = vpack.c.bf16 %v4321_v47, %v4296_v22  ;;  %v7106_v21 = vld [vmem:[%s9442_s5 + $0x10] sm:$0xff]   ;;  %v6074_v15 = vld [vmem:[%s7501_s13 + $0x1c] sm:$0x1] }
 0x262   : > { %v4353_v43 = vpack.c.bf16 %v9274_v10, %v4263_v28  ;;  %6819 = vmatpush3.bf16.msra.mxu0 %v7084_v7  ;;  %6696 = vmatprep.subr.bf16.mxu1 %v7086_v36  ;;  %v7105_v7 = vld [vmem:[%s9442_s5 + $0x8] sm:$0xff]  }
 0x263   : > { %5127 = vmatprep.mubr.bf16.mxu0 %v4354_v5  ;;  %6820 = vmatprep.subr.bf16.mxu0 %v7087_v60 }
 0x264   : > { %5039 = vmatmul.mubr.bf16.vlgmr.msra.gmra.mrb[144].mxu1 %v4324_v23  ;;  %v5291_v23 = vunpack.c.l.bf16 %v6074_v15  ;;  %v6088_v15 = vld [vmem:[%s7501_s13 + $0x70] sm:$0x1] }
 0x265   : > { %5128 = vmatmul.mubr.bf16.gmra.mrb[172].mxu0 %v4353_v43  ;;  %7163 = vmatprep.mubr.msk.bf16.mxu1 %vm9206_vm10, %v7162_v24  ;;  %v4313_v24 = vld [vmem:[#allocation2 + $0x91] sm:$0xff] }
 0x266   : > { %6697 = vmatpush3.bf16.msra.mxu1 %v7088_v37  ;;  %6821 = vmatpush3.bf16.msra.mxu0 %v7087_v60  ;;  %v6522_v1 = vpop.f32.mrb[108].mxu1  ;;  %v5324_v50 = vrot.slane %v5291_v23, 2 }
 0x267   : > { %6824 = vmatprep.mubr.bf16.mxu0 %v4330_v40  ;;  %6698 = vmatprep.subr.bf16.mxu1 %v7089_v32  ;;  %v6523_v53 = vpop.f32.mrb[109].mxu1  ;;  %v7108_v32 = vld [vmem:[%s9442_s5 + $0x20] sm:$0xff]  }
 0x268   : > { %6822 = vmatprep.subr.bf16.mxu0 %v7090_v11  ;;  %v6525_v63 = vpop.f32.mrb[110].mxu1 }
 0x269   : > { %v6526_v59 = vpop.f32.mrb[111].mxu1 }
 0x26a   : > { %6699 = vmatpush3.bf16.msra.mxu1 %v7091_v17  ;;  %6823 = vmatpush3.bf16.msra.mxu0 %v7090_v11  ;;  %v5292_v11 = vunpack.c.l.bf16 %v6075_v4  ;;  %v6077_v17 = vld [vmem:[%s7501_s13 + $0x30] sm:$0xe] }
 0x26b   : > { %6700 = vmatprep.subr.bf16.mxu1 %v7092_v27  ;;  %v7109_v27 = vld [vmem:[%s9442_s5 + $0x28] sm:$0xff]  }
 0x26c   : > { %5047 = vmatmul.mubr.bf16.gmra.mrb[148].mxu1 %v4330_v40  ;;  %v5326_v13 = vrot.slane %v5292_v11, 2 }
 0x26d   : > { %6825 = vmatmul.mubr.bf16.vlgmr.msra.gmra.mrb[176].mxu0 %v4339_v57  ;;  %7166 = vmatprep.mubr.msk.bf16.mxu1 %vm9206_vm10, %v7165_v39  ;;  %v5294_v39 = vunpack.c.l.bf16 %v6077_v17 }
 0x26e   : > { %6701 = vmatpush3.bf16.msra.mxu1 %v7093_v51  ;;  %6828 = vmatprep.mubr.bf16.mxu0 %v4348_v42  ;;  %v6528_v28 = vpop.f32.mrb[112].mxu1  ;;  %v6080_v51 = vld [vmem:[%s7501_s13 + $0x40] sm:$0x1] }
 0x26f   : > { %6702 = vmatprep.subr.bf16.mxu1 %v7094_v34  ;;  %v6529_v56 = vpop.f32.mrb[113].mxu1  ;;  %v6081_v34 = vld [vmem:[%s7501_s13 + $0x48] sm:$0xe]  ;;  %v5297_v53 = vunpack.c.l.bf16 %v6080_v51 }
 0x270   : > { %v6531_v31 = vpop.f32.mrb[114].mxu1  ;;  %v5298_v63 = vunpack.c.l.bf16 %v6081_v34 }
 0x271   : > { %v6532_v58 = vpop.f32.mrb[115].mxu1 }
 0x272   : > { %6703 = vmatpush3.bf16.msra.mxu1 %v7095_v35  ;;  %v6083_v35 = vld [vmem:[%s7501_s13 + $0x54] sm:$0xe]  ;;  %v5333_v58 = vrot.slane %v5297_v53, 2 }
 0x273   : > { %6704 = vmatprep.subr.bf16.mxu1 %v7096_v44  ;;  %v6084_v44 = vld [vmem:[%s7501_s13 + $0x58] sm:$0x1] }
 0x274   : > { %5055 = vmatmul.mubr.bf16.gmra.mrb[152].mxu1 %v4339_v57 }
 0x275   : > { %6829 = vmatmul.mubr.bf16.gmra.mrb[180].mxu0 %v4357_v8  ;;  %7169 = vmatprep.mubr.msk.bf16.mxu1 %vm9206_vm10, %v7168_v0 }
 0x276   : > { %6705 = vmatpush3.bf16.msra.mxu1 %v7097_v46 }
 0x277   : > { %6706 = vmatprep.subr.bf16.mxu1 %v7098_v26  ;;  %v6534_v29 = vpop.f32.mrb[116].mxu1  ;;  %v5325_v26 = vsel %vm5322_vm11, %v5323_v16, %v5324_v50 }
 0x278   : > { %v6535_v33 = vpop.f32.mrb[117].mxu1 }
 0x279   : > { %v6537_v12 = vpop.f32.mrb[118].mxu1  ;;  %v5335_v33 = vrot.slane %v5298_v63, 2 }
 0x27a   : > { %6707 = vmatpush3.bf16.msra.mxu1 %v7099_v54  ;;  %v5301_v54 = vunpack.c.l.bf16 %v6084_v44  ;;  %v6087_v12 = vld [vmem:[%s7501_s13 + $0x6c] sm:$0xe] }
 0x27b   : > { %6708 = vmatprep.subr.bf16.mxu1 %v7100_v30 }
 0x27c   : > { %5063 = vmatmul.mubr.bf16.gmra.mrb[156].mxu1 %v4348_v42  ;;  %v4356_v42 = vpack.c.bf16 %v4313_v24, %v9274_v10  ;;  %v7110_v10 = vld [vmem:[%s9442_s5 + $0x30] sm:$0xff]   ;;  %v5339_v2 = vrot.slane %v5301_v54, 2 }
 0x27d   : > { %5168 = vmatprep.mubr.bf16.mxu1 %v9190_v45  ;;  %v6538_v45 = vpop.f32.mrb[119].mxu1 }
 0x27e   : > { %6709 = vmatpush3.bf16.msra.mxu1 %v7101_v49  ;;  %v5329_v49 = vrot.slane %v5294_v39, 2 }
 0x27f   : > { %6710 = vmatprep.subr.bf16.mxu1 %v7102_v18 }
 0x280   : > { %v6540_v36 = vpop.f32.mrb[120].mxu1 }
 0x281   : > { %v6541_v60 = vpop.f32.mrb[121].mxu1  ;;  %v7111_v36 = vld [vmem:[%s9442_s5 + $0x38] sm:$0xff]  }
 0x282   : > { %6711 = vmatpush3.bf16.msra.mxu1 %v7103_v52  ;;  %v6543_v22 = vpop.f32.mrb[122].mxu1  ;;  %v6085_v52 = vld [vmem:[%s7501_s13 + $0x60] sm:$0xe] }
 0x283   : > { %6832 = vmatprep.subr.bf16.mxu1 %v7104_v19  ;;  %v6544_v5 = vpop.f32.mrb[123].mxu1  ;;  %v5302_v4 = vunpack.c.l.bf16 %v6085_v52 }
 0x285   : > { %7172 = vmatmul.mubr.msk.bf16.vlgmr.msra.gmra.mrb[160].mxu1 %vm9206_vm10, %v9212_v14  ;;  %v6798_v14 = vpop.f32.mrb[148].mxu0 }
 0x286   : > { %5176 = vmatprep.mubr.bf16.mxu1 %v9232_v62  ;;  %6833 = vmatpush3.bf16.msra.mxu1 %v7104_v19  ;;  %v6076_v62 = vld [vmem:[%s7501_s13 + $0x28] sm:$0x1]  ;;  %v4090_v43 = vpop.f32.mrb[149].mxu0 }
 0x287   : > { %6834 = vmatprep.subr.bf16.mxu1 %v7105_v7  ;;  %v6799_v37 = vpop.f32.mrb[150].mxu0  ;;  %v5293_v40 = vunpack.c.l.bf16 %v6076_v62  ;;  %v5304_v43 = vunpack.c.l.bf16 %v6087_v12 }
 0x288   : > { %v4093_v38 = vpop.f32.mrb[151].mxu0  ;;  %v5305_v37 = vunpack.c.l.bf16 %v6088_v15 }
 0x289   : > { %v5327_v57 = vrot.slane %v5293_v40, 2  ;;  %v5344_v17 = vrot.slane %v5304_v43, 2 }
 0x28a   : > { %6835 = vmatpush3.bf16.msra.mxu1 %v7105_v7  ;;  %v6086_v7 = vld [vmem:[%s7501_s13 + $0x64] sm:$0x1] }
 0x28b   : > { %6836 = vmatprep.subr.bf16.mxu1 %v7106_v21  ;;  %v5328_v0 = vsel %vm5322_vm11, %v5326_v13, %v5327_v57  ;;  %v5303_v5 = vunpack.c.l.bf16 %v6086_v7 }
 0x28c   : > { %v5355_v29 = vpack.c.bf16 %v5328_v0, %v5325_v26 }
 0x28d   : > { %7175 = vmatmul.mubr.msk.bf16.gmra.mrb[164].mxu1 %vm9206_vm10, %v9244_v20  ;;  %v6078_v20 = vld [vmem:[%s7501_s13 + $0x34] sm:$0x1]  ;;  %v5342_v24 = vrot.slane %v5303_v5, 2 }
 0x28e   : > { %5184 = vmatprep.mubr.bf16.mxu1 %v9258_v3  ;;  %6837 = vmatpush3.bf16.msra.mxu1 %v7106_v21  ;;  %v6079_v3 = vld [vmem:[%s7501_s13 + $0x3c] sm:$0xe]  ;;  %v5295_v1 = vunpack.c.l.bf16 %v6078_v20  ;;  %v7145_v21 = vld [vmem:[#allocation2] sm:$0xff]  ;;  %v5345_v20 = vrot.slane %v5305_v37, 2  ;;  %s7214_s13 = sshll.u32 %s7283_s15, 4  ;;  %s7215_s13 = int_to_ptr.vmem [resolvable:$false] %s7214_s13 }
 0x28f   : > { %6838 = vmatprep.subr.bf16.mxu1 %v7107_v48  ;;  %v6546_v47 = vpop.f32.mrb[124].mxu1  ;;  %v5296_v46 = vunpack.c.l.bf16 %v6079_v3  ;;  %v7180_v22 = vpack.c.bf16 %v7145_v21, %v9239_v6  ;;  %v5341_v6 = vrot.slane %v5302_v4, 2  ;;  %s7216_s22 = scalar_lea.vmem %s7215_s13, 2048  ;;  %p7217_p2 = scmp.lt.s32.totalorder %s9383_s17, %s7215_s13 }
 0x290   : > { %v6547_v8 = vpop.f32.mrb[125].mxu1  ;;  %v5330_v18 = vrot.slane %v5295_v1, 2  ;;  %v5346_v16 = vsel %vm5322_vm11, %v5344_v17, %v5345_v20  ;;  %p7218_p3 = scmp.lt.s32.totalorder %s7216_s22, %s7210_s16 }
 0x291   : > { %v6549_v59 = vpop.f32.mrb[126].mxu1  ;;  %v5332_v31 = vrot.slane %v5296_v46, 2 }
 0x292   : > { %6839 = vmatpush3.bf16.msra.mxu1 %v7107_v48  ;;  %v6550_v30 = vpop.f32.mrb[127].mxu1  ;;  %v5336_v48 = vrot.slane %v5299_v25, 2  ;;  %v5331_v14 = vsel %vm5322_vm11, %v5329_v49, %v5330_v18  ;;  %p7219_p4 = por %p7218_p3, %p7217_p2 }
 0x293   : > { %6840 = vmatprep.subr.bf16.mxu1 %v7108_v32  ;;  %v5334_v62 = vsel %vm5322_vm11, %v5332_v31, %v5333_v58 }
 0x294   : > { %v6802_v28 = vpop.f32.mrb[152].mxu0  ;;  %v5337_v41 = vsel %vm5322_vm11, %v5335_v33, %v5336_v48  ;;  %p7220_p7 = pnand %p7219_p4, %p7213_p12 }
 0x295   : > { %7178 = vmatmul.mubr.msk.bf16.gmra.mrb[168].mxu1 %vm9206_vm10, %v9265_v9  ;;  %v5300_v9 = vunpack.c.l.bf16 %v6083_v35  ;;  %v4106_v56 = vpop.f32.mrb[153].mxu0 }
 0x296   : > { %5192 = vmatprep.mubr.bf16.mxu1 %v4356_v42  ;;  %6841 = vmatpush3.bf16.msra.mxu1 %v7108_v32  ;;  %v6803_v19 = vpop.f32.mrb[154].mxu0  ;;  %v5356_v32 = vpack.c.bf16 %v5334_v62, %v5331_v14 }
 0x297   : > { %6842 = vmatprep.subr.bf16.mxu1 %v7109_v27  ;;  %v4109_v45 = vpop.f32.mrb[155].mxu0  ;;  %v5338_v60 = vrot.slane %v5300_v9, 2 }
 0x299   : > { %v5340_v61 = vsel %vm5322_vm11, %v5338_v60, %v5339_v2 }
 0x29a   : > { %6843 = vmatpush3.bf16.msra.mxu1 %v7109_v27  ;;  %v5357_v40 = vpack.c.bf16 %v5340_v61, %v5337_v41  ;;  %v5343_v27 = vsel %vm5322_vm11, %v5341_v6, %v5342_v24 }
 0x29b   : > { %6844 = vmatprep.subr.bf16.mxu1 %v7110_v10  ;;  %v5358_v50 = vpack.c.bf16 %v5346_v16, %v5343_v27 }
 0x29c   : > { %v6806_v23 = vpop.f32.mrb[156].mxu0 }
 0x29d   : > { %7181 = vmatmul.mubr.msk.bf16.gmra.mrb[172].mxu1 %vm7179_vm12, %v7180_v22  ;;  %v4122_v38 = vpop.f32.mrb[157].mxu0  ;;  %v6000_v22 = vld [vmem:[%s9441_s4] ss:$0 sm:$0xff] }
 0x29e   : > { %6845 = vmatpush3.bf16.msra.mxu1 %v7110_v10  ;;  %6848 = vmatprep.mubr.bf16.mxu1 %v5355_v29  ;;  %v6807_v11 = vpop.f32.mrb[158].mxu0 }
 0x29f   : > { %6846 = vmatprep.subr.bf16.mxu1 %v7111_v36  ;;  %v4125_v3 = vpop.f32.mrb[159].mxu0 }
 0x2a2   : > { %6847 = vmatpush3.bf16.msra.mxu1 %v7111_v36 }
 0x2a5   : > { %6849 = vmatmul.mubr.bf16.vlgmr.msra.gmra.mrb[176].mxu1 %v5356_v32 }
 0x2a6   : > { %6852 = vmatprep.mubr.bf16.mxu1 %v5357_v40 }
 0x2ad   : > { %6853 = vmatmul.mubr.bf16.gmra.mrb[180].mxu1 %v5358_v50 }
 0x316   : > { %v6592_v51 = vpop.f32.mrb[128].mxu1 }
 0x317   : > { %v6593_v13 = vpop.f32.mrb[129].mxu1 }
 0x318   : > { %v6594_v57 = vadd.f32 %v6593_v13, %v6592_v51  ;;  %v6595_v34 = vpop.f32.mrb[130].mxu1 }
 0x319   : > { %v6596_v55 = vpop.f32.mrb[131].mxu1 }
 0x31a   : > { %v6597_v42 = vadd.f32 %v6596_v55, %v6595_v34  ;;  %v4976_v43 = vadd.f32 %v6594_v57, %v6000_v22 }
 0x31c   : > { %v4979_v6 = vadd.f32 %v6597_v42, %v6000_v22 }
 0x31f   : > { %v6598_v39 = vpop.f32.mrb[132].mxu1 }
 0x320   : > { %v6672_v35 = vpop.f32.mrb[160].mxu0  ;;  %v6599_v44 = vpop.f32.mrb[133].mxu1 }
 0x321   : > { %v6673_v47 = vpop.f32.mrb[161].mxu0  ;;  %v6600_v1 = vadd.f32 %v6599_v44, %v6598_v39  ;;  %v6601_v53 = vpop.f32.mrb[134].mxu1 }
 0x322   : > { %v6674_v46 = vadd.f32 %v6673_v47, %v6672_v35  ;;  %v6675_v8 = vpop.f32.mrb[162].mxu0  ;;  %v6602_v26 = vpop.f32.mrb[135].mxu1 }
 0x323   : > { %v6676_v63 = vpop.f32.mrb[163].mxu0  ;;  %v6603_v59 = vadd.f32 %v6602_v26, %v6601_v53  ;;  %v4984_v51 = vadd.f32 %v6600_v1, %v6000_v22 }
 0x324   : > { %v6677_v10 = vadd.f32 %v6676_v63, %v6675_v8 }
 0x325   : > { %v4987_v35 = vadd.f32 %v6603_v59, %v6000_v22 }
 0x327   : > { %v6604_v0 = vpop.f32.mrb[136].mxu1 }
 0x328   : > { %v6678_v25 = vpop.f32.mrb[164].mxu0  ;;  %v6605_v9 = vpop.f32.mrb[137].mxu1 }
 0x329   : > { %v6679_v54 = vpop.f32.mrb[165].mxu0  ;;  %v6606_v30 = vadd.f32 %v6605_v9, %v6604_v0  ;;  %v6607_v49 = vpop.f32.mrb[138].mxu1 }
 0x32a   : > { %v6680_v28 = vadd.f32 %v6679_v54, %v6678_v25  ;;  %v6681_v56 = vpop.f32.mrb[166].mxu0  ;;  %v6608_v18 = vpop.f32.mrb[139].mxu1 }
 0x32b   : > { %v6682_v31 = vpop.f32.mrb[167].mxu0  ;;  %v6609_v58 = vadd.f32 %v6608_v18, %v6607_v49 }
 0x32c   : > { %v6683_v52 = vadd.f32 %v6682_v31, %v6681_v56 }
 0x32d   : > { %v4995_v56 = vadd.f32 %v6609_v58, %v6000_v22 }
 0x32f   : > { %v6610_v19 = vpop.f32.mrb[140].mxu1 }
 0x330   : > { %v6684_v29 = vpop.f32.mrb[168].mxu0  ;;  %v6611_v33 = vpop.f32.mrb[141].mxu1 }
 0x331   : > { %v6685_v7 = vpop.f32.mrb[169].mxu0  ;;  %v6612_v12 = vadd.f32 %v6611_v33, %v6610_v19  ;;  %v6613_v21 = vpop.f32.mrb[142].mxu1 }
 0x332   : > { %v6686_v45 = vadd.f32 %v6685_v7, %v6684_v29  ;;  %v6687_v36 = vpop.f32.mrb[170].mxu0  ;;  %v6614_v48 = vpop.f32.mrb[143].mxu1 }
 0x333   : > { %v6688_v60 = vpop.f32.mrb[171].mxu0  ;;  %v6615_v2 = vadd.f32 %v6614_v48, %v6613_v21 }
 0x334   : > { %v6689_v15 = vadd.f32 %v6688_v60, %v6687_v36 }
 0x337   : > { %v6632_v14 = vpop.f32.mrb[144].mxu1 }
 0x338   : > { %v6690_v4 = vpop.f32.mrb[172].mxu0  ;;  %v6633_v62 = vpop.f32.mrb[145].mxu1 }
 0x339   : > { %v6691_v5 = vpop.f32.mrb[173].mxu0  ;;  %v6634_v37 = vadd.f32 %v6633_v62, %v6632_v14  ;;  %v6635_v61 = vpop.f32.mrb[146].mxu1 }
 0x33a   : > { %v6692_v41 = vadd.f32 %v6691_v5, %v6690_v4  ;;  %v6693_v23 = vpop.f32.mrb[174].mxu0  ;;  %v6636_v38 = vpop.f32.mrb[147].mxu1 }
 0x33b   : > { %v6694_v32 = vpop.f32.mrb[175].mxu0  ;;  %v5041_v11 = vadd.f32 %v6634_v37, %v4976_v43  ;;  %v6637_v40 = vadd.f32 %v6636_v38, %v6635_v61 }
 0x33c   : > { %v6695_v24 = vadd.f32 %v6694_v32, %v6693_v23 }
 0x33d   : > { %v5044_v17 = vadd.f32 %v6637_v40, %v4979_v6  ;;  %v5106_v20 = vadd.f32 %v6674_v46, %v5041_v11 }
 0x33f   : > { %v6638_v3 = vpop.f32.mrb[148].mxu1  ;;  %v5109_v27 = vadd.f32 %v6677_v10, %v5044_v17  ;;  %v4992_v10 = vadd.f32 %v6606_v30, %v6000_v22  ;;  %v5003_v30 = vadd.f32 %v6615_v2, %v6000_v22 }
 0x340   : > { %v6826_v16 = vpop.f32.mrb[176].mxu0  ;;  %v6639_v50 = vpop.f32.mrb[149].mxu1 }
 0x341   : > { %v6640_v13 = vadd.f32 %v6639_v50, %v6638_v3  ;;  %v5235_v34 = vpop.f32.mrb[177].mxu0  ;;  %v6641_v57 = vpop.f32.mrb[150].mxu1 }
 0x342   : > { %v6827_v55 = vpop.f32.mrb[178].mxu0  ;;  %v6642_v39 = vpop.f32.mrb[151].mxu1 }
 0x343   : > { %v5049_v44 = vadd.f32 %v6640_v13, %v4984_v51  ;;  %v6643_v47 = vadd.f32 %v6642_v39, %v6641_v57  ;;  %v5238_v53 = vpop.f32.mrb[179].mxu0 }
 0x345   : > { %v5052_v42 = vadd.f32 %v6643_v47, %v4987_v35  ;;  %v5114_v8 = vadd.f32 %v6680_v28, %v5049_v44 }
 0x347   : > { %v6644_v26 = vpop.f32.mrb[152].mxu1  ;;  %v5117_v63 = vadd.f32 %v6683_v52, %v5052_v42  ;;  %v5000_v52 = vadd.f32 %v6612_v12, %v6000_v22 }
 0x348   : > { %v9363_v0 = vpop.f32.mrb[180].mxu0  ;;  %v6645_v46 = vpop.f32.mrb[153].mxu1 }
 0x349   : > { %v6646_v25 = vadd.f32 %v6645_v46, %v6644_v26  ;;  %v5251_v9 = vpop.f32.mrb[181].mxu0  ;;  %v6647_v1 = vpop.f32.mrb[154].mxu1 }
 0x34a   : > { %v9365_v54 = vpop.f32.mrb[182].mxu0  ;;  %v6648_v49 = vpop.f32.mrb[155].mxu1 }
 0x34b   : > { %v5057_v18 = vadd.f32 %v6646_v25, %v4992_v10  ;;  %v6649_v59 = vadd.f32 %v6648_v49, %v6647_v1  ;;  %v5254_v31 = vpop.f32.mrb[183].mxu0  ;;  %v6089_v25 = vld [vmem:[%s9443_s6] ss:$0 sm:$0xff] }
 0x34d   : > { %v5060_v19 = vadd.f32 %v6649_v59, %v4995_v56  ;;  %v5122_v29 = vadd.f32 %v6686_v45, %v5057_v18 }
 0x34f   : > { %v6650_v33 = vpop.f32.mrb[156].mxu1  ;;  %v5125_v28 = vadd.f32 %v6689_v15, %v5060_v19 }
 0x350   : > { %v6651_v7 = vpop.f32.mrb[157].mxu1 }
 0x351   : > { %v6652_v21 = vadd.f32 %v6651_v7, %v6650_v33  ;;  %v6653_v36 = vpop.f32.mrb[158].mxu1 }
 0x352   : > { %v6654_v48 = vpop.f32.mrb[159].mxu1 }
 0x353   : > { %v5065_v60 = vadd.f32 %v6652_v21, %v5000_v52  ;;  %v6655_v14 = vadd.f32 %v6654_v48, %v6653_v36 }
 0x355   : > { %v5068_v4 = vadd.f32 %v6655_v14, %v5003_v30  ;;  %v5130_v62 = vadd.f32 %v6692_v41, %v5065_v60 }
 0x357   : > { %v5133_v5 = vadd.f32 %v6695_v24, %v5068_v4 }
 0x358   : > { %v6712_v43 = vpop.f32.mrb[160].mxu1 }
 0x359   : > { %v6713_v58 = vpop.f32.mrb[161].mxu1 }
 0x35a   : > { %v6714_v37 = vadd.f32 %v6713_v58, %v6712_v43  ;;  %v6715_v61 = vpop.f32.mrb[162].mxu1 }
 0x35b   : > { %v6716_v23 = vpop.f32.mrb[163].mxu1 }
 0x35c   : > { %v5171_v38 = vadd.f32 %v6714_v37, %v5106_v20  ;;  %v6717_v45 = vadd.f32 %v6716_v23, %v6715_v61 }
 0x35e   : > { %v5236_v32 = vadd.f32 %v5235_v34, %v5171_v38  ;;  %v5174_v15 = vadd.f32 %v6717_v45, %v5109_v27 }
 0x360   : > { %v5239_v6 = vadd.f32 %v5238_v53, %v5174_v15  ;;  %v6718_v12 = vpop.f32.mrb[164].mxu1  ;;  %v5266_v59 = vmax.f32 %v5236_v32, 0.0 }
 0x361   : > { %v6719_v11 = vpop.f32.mrb[165].mxu1 }
 0x362   : > { %v6720_v40 = vadd.f32 %v6719_v11, %v6718_v12  ;;  %v6721_v17 = vpop.f32.mrb[166].mxu1  ;;  %v5267_v52 = vmax.f32 %v5239_v6, 0.0 }
 0x363   : > { %v6722_v2 = vpop.f32.mrb[167].mxu1 }
 0x364   : > { %v5179_v22 = vadd.f32 %v6720_v40, %v5114_v8  ;;  %v6723_v3 = vadd.f32 %v6722_v2, %v6721_v17 }
 0x366   : > { %v5244_v50 = vadd.f32 %v6826_v16, %v5179_v22  ;;  %v5182_v41 = vadd.f32 %v6723_v3, %v5117_v63 }
 0x368   : > { %v5247_v24 = vadd.f32 %v6827_v55, %v5182_v41  ;;  %v6724_v51 = vpop.f32.mrb[168].mxu1  ;;  %v5268_v49 = vmax.f32 %v5244_v50, 0.0 }
 0x369   : > { %v6725_v13 = vpop.f32.mrb[169].mxu1 }
 0x36a   : > { %v6726_v57 = vadd.f32 %v6725_v13, %v6724_v51  ;;  %v6727_v39 = vpop.f32.mrb[170].mxu1  ;;  %v5269_v33 = vmax.f32 %v5247_v24, 0.0 }
 0x36b   : > { %v6728_v20 = vpop.f32.mrb[171].mxu1 }
 0x36c   : > { %v5187_v35 = vadd.f32 %v6726_v57, %v5122_v29  ;;  %v6729_v27 = vadd.f32 %v6728_v20, %v6727_v39 }
 0x36e   : > { %v5252_v34 = vadd.f32 %v5251_v9, %v5187_v35  ;;  %v5190_v44 = vadd.f32 %v6729_v27, %v5125_v28 }
 0x370   : > { %v5255_v47 = vadd.f32 %v5254_v31, %v5190_v44  ;;  %v6730_v53 = vpop.f32.mrb[172].mxu1  ;;  %v5270_v4 = vmax.f32 %v5252_v34, 0.0 }
 0x371   : > { %v6731_v42 = vpop.f32.mrb[173].mxu1 }
 0x372   : > { %v6732_v26 = vadd.f32 %v6731_v42, %v6730_v53  ;;  %v6733_v8 = vpop.f32.mrb[174].mxu1  ;;  %v5271_v38 = vmax.f32 %v5255_v47, 0.0 }
 0x373   : > { %v6734_v46 = vpop.f32.mrb[175].mxu1 }
 0x374   : > { %v5195_v16 = vadd.f32 %v6732_v26, %v5130_v62  ;;  %v6735_v63 = vadd.f32 %v6734_v46, %v6733_v8 }
 0x376   : > { %v5260_v55 = vadd.f32 %v9363_v0, %v5195_v16  ;;  %v5198_v10 = vadd.f32 %v6735_v63, %v5133_v5 }
 0x378   : > { %v5263_v9 = vadd.f32 %v9365_v54, %v5198_v10  ;;  %v6850_v1 = vpop.f32.mrb[176].mxu1  ;;  %v5272_v30 = vmax.f32 %v5260_v55, 0.0 }
 0x379   : > { %v5473_v56 = vadd.f32 %v6850_v1, %v6089_v25  ;;  %v5464_v18 = vpop.f32.mrb[177].mxu1 }
 0x37a   : > { %v5465_v31 = vadd.f32 %v6089_v25, %v5464_v18  ;;  %v6851_v19 = vpop.f32.mrb[178].mxu1  ;;  %v5273_v58 = vmax.f32 %v5263_v9, 0.0 }
 0x37b   : > { %v5497_v29 = vadd.f32 %v5473_v56, %v5268_v49  ;;  %v5476_v28 = vadd.f32 %v6851_v19, %v6089_v25  ;;  %v5467_v0 = vpop.f32.mrb[179].mxu1 }
 0x37c   : > { %v5495_v7 = vadd.f32 %v5465_v31, %v5266_v59  ;;  %v5468_v21 = vadd.f32 %v6089_v25, %v5467_v0 }
 0x37d   : > { %5505 = vst [vmem:[%s9375_s14 + $0x10] sm:$0xff] %v5497_v29  ;;  %v5498_v54 = vadd.f32 %v5476_v28, %v5269_v33 }
 0x37e   : > { %5503 = vst [vmem:[%s9375_s14] sm:$0xff] %v5495_v7  ;;  %v5496_v36 = vadd.f32 %v5468_v21, %v5267_v52 }
 0x37f   : > { %5506 = vst [vmem:[%s9375_s14 + $0x18] sm:$0xff] %v5498_v54 }
 0x380   : > { %5504 = vst [vmem:[%s9375_s14 + $0x8] sm:$0xff] %v5496_v36  ;;  %v6854_v48 = vpop.f32.mrb[180].mxu1 }
 0x381   : > { %v5489_v60 = vadd.f32 %v6854_v48, %v6089_v25  ;;  %v5480_v14 = vpop.f32.mrb[181].mxu1 }
 0x382   : > { %v5481_v62 = vadd.f32 %v6089_v25, %v5480_v14  ;;  %v6855_v5 = vpop.f32.mrb[182].mxu1 }
 0x383   : > { %v5501_v43 = vadd.f32 %v5489_v60, %v5272_v30  ;;  %v5492_v37 = vadd.f32 %v6855_v5, %v6089_v25  ;;  %v5483_v61 = vpop.f32.mrb[183].mxu1 }
 0x384   : > { %v5499_v23 = vadd.f32 %v5481_v62, %v5270_v4  ;;  %v5484_v45 = vadd.f32 %v6089_v25, %v5483_v61 }
 0x385   : > { %5509 = vst [vmem:[%s9375_s14 + $0x30] sm:$0xff] %v5501_v43  ;;  %v5502_v32 = vadd.f32 %v5492_v37, %v5273_v58 }
 0x386   : > { %5507 = vst [vmem:[%s9375_s14 + $0x20] sm:$0xff] %v5499_v23  ;;  %v5500_v15 = vadd.f32 %v5484_v45, %v5271_v38 }
 0x387   : > { %5510 = vst [vmem:[%s9375_s14 + $0x38] sm:$0xff] %v5502_v32 }
 0x388   : > { %5508 = vst [vmem:[%s9375_s14 + $0x28] sm:$0xff] %v5500_v15 }
 0x389   : > { %7223 = shalt.err (!%p7220_p7)
}
 0x38a   : > { %s7224_s23 = scalar_lea.hbm %s9390_s18, 1024  ;;  %s7228_s29 = scalar_lea.hbm %s9444_s7, 2048 }
 0x38b   : > { %p7225_p8 = scmp.ne.s32.totalorder %s9390_s18, %s7224_s23  ;;  %p7229_p1 = scmp.lt.u32.totalorder %s9390_s18, %s9444_s7 }
 0x38c   : > { %p7230_p0 = scmp.lt.u32.totalorder %s7228_s29, %s7224_s23  ;;  %p7232_p6 = scmp.lt.u32.totalorder %s7224_s23, %s9390_s18 }
 0x38d   : > { %p7226_p11 = pnand %p7225_p8, %p9508_p9 }
 0x38e   : > { %p7231_p5 = por %p7230_p0, %p7229_p1 }
 0x38f   : > { %p7227_p13 = pneg %p7226_p11 }
 0x390   : > { %p7233_p10 = por %p7232_p6, %p7231_p5 }
 0x392   : > { %p7234_p12 = pnand %p7233_p10, %p7227_p13 }
 0x394   : > { %7237 = shalt.err (!%p7234_p12)
}
 0x395   : > { %s7284_s20 = smov 128   ;;  %s7285_s21 = smov 8  }
 0x396   : > { %6861 = dma.vmem_to_hbm [thread:$0]  (%p9508_p9), %s9383_s17, 1024, %s9390_s18, %s9396_s28, %s7284_s20, %s7284_s20, %s7285_s21  }
 0x397 PF: > { %p6873_p2 = scmp.ge.s32.totalorder %s7276_s27, 2  ;;  %s5540_s16 = sand.u32 1, %s7264_s24  }
 0x398   : > { %p9509_p3 = scmp.ne.s32.totalorder %s9454_s12, 0  ;;  %s5541_s15 = scalar_lea.sflag [#allocation5], %s5540_s16 }
 0x39a   : > { %p6868_p4 = pnand %p6873_p2, %p9509_p3 }
 0x39c   : > { %7259 = dma.done.wait (!%p6868_p4), %s5541_s15, 1024  }
 0x39d   : > { %7261 = vsyncadd (!%p6868_p4), %s5541_s15, 4294966272  ;;  %p18_p7 = scmp.ge.s32.totalorder %s7351_s30, 4   ;;  %s9510_s24 = smov %s7268_s25 }
 0x39e   : > { %s9511_s25 = smov %s7272_s26  ;;  %s9512_s26 = smov %s7362_s10 }
 0x39f   : > { %s9513_s27 = smov %s7351_s30  ;;  %20 = sbr.rel (!%p18_p7) target bundleno = 4 (0x4), region = 92 }
 0x3a6   :  { %5546 = vsyncpa [#allocation4], 1 }
 0x3a7   :  { %5548 = vsyncpa [#allocation4 + $0x1], 1 }
 0x3a8   :  { %5549 = vsyncpa [#allocation5], 1 }
 0x3a9   :  { %5551 = vsyncpa [#allocation5 + $0x1], 1 }

</bundles_post_ra>
